<compile_context>
chip_gen: v7x
topology: tpu7x:2x2x1
jax: 0.10.0
libtpu: 0.0.40
codegen_flags: <defaults>
</compile_context>

<pallas_src>
import math
import numpy as np
import jax
import jax.numpy as jnp
from jax import lax
from jax.experimental import pallas as pl
from jax.experimental.pallas import tpu as pltpu

# ---------------- static configuration (small shapes consistent with the module) --------
B = 2
L = 16                 # seq_len (even => rfft/irfft autocorr == circular cross-correlation)
C_IN = 4               # enc_in; equals timeF freq_map['h'] so x_mark = series type-checks
D_MODEL = 32
N_HEADS = 4            # aggregation/correlation are head-independent -> mean over d_model
D_FF = 64
E_LAYERS = 1
MOVING_AVG = 5         # odd kernel => moving average preserves sequence length
FACTOR = 1
TOP_K = int(FACTOR * math.log(L))   # AutoCorrelation top-k lags (inference aggregation)
assert TOP_K >= 1
LN_EPS = 1e-5
N_STREAMS = 2          # 0: seasonal, 1: trend
BL = B * L
# dropout -> identity (eval mode)


# ---------------- host-side constant operators -------------------------------------------
def moving_avg_matrix(seq_len, kernel_size):
    """Linear operator of AvgPool1d(k, stride=1) with replicate padding (series_decomp)."""
    p = (kernel_size - 1) // 2
    m = np.zeros((seq_len, seq_len), np.float32)
    for t in range(seq_len):
        for j in range(kernel_size):
            s = min(max(t + j - p, 0), seq_len - 1)
            m[t, s] += 1.0 / kernel_size
    return m


def shift_matrix(seq_len, shift):
    """G[t, s] = 1 iff s == (t + shift) % L, so (G @ x)[t] = x[(t + shift) % L]."""
    idx = np.arange(seq_len)
    return (idx[None, :] == ((idx + shift) % seq_len)[:, None]).astype(np.float32)


def block_diag_np(m, reps):
    """Block-diagonal replication so per-sample L x L operators act on a (B*L, .) slab."""
    n = m.shape[0]
    out = np.zeros((n * reps, n * reps), np.float32)
    for i in range(reps):
        out[i * n:(i + 1) * n, i * n:(i + 1) * n] = m
    return out


# ---------------- the fused Pallas kernel -------------------------------------------------
def fused_forward_kernel(x_ref, sop_ref, wc_ref, wqkv_ref, bqkv_ref, wo_ref, bo_ref,
                         w1_ref, w2_ref, consts_ref, shifts_ref, gamma_ref, beta_ref,
                         out_ref, vagg_ref):
    f32 = jnp.float32
    x = x_ref[...]                      # (B*L, C_IN) raw input series, batch folded in rows
    ma = consts_ref[0]                  # (B*L, B*L) block-diag moving-average operator
    submean = consts_ref[1]             # (B*L, B*L) I - per-sample mean over the L rows
    gp = consts_ref[2]                  # (B*L, B*L) block-diag circular shift: y[(t-1)%L]
    gn = consts_ref[3]                  # (B*L, B*L) block-diag circular shift: y[(t+1)%L]

    # ---- series_decomp + stream select (operator prebuilt per stream on host) ----
    series = jnp.dot(sop_ref[0], x, preferred_element_type=f32)       # (B*L, C_IN)
    s_m1 = jnp.dot(gp, series, preferred_element_type=f32)            # x[(t-1)%L]
    s_p1 = jnp.dot(gn, series, preferred_element_type=f32)            # x[(t+1)%L]

    # ---- DataEmbedding_wo_pos: circular Conv1d(k=3, bias=False) token embedding
    #      + timeF Linear temporal embedding (x_mark == series, folded into tap 1 on host)
    wc = wc_ref[0]                      # (3, C_IN, D_MODEL)
    h = (jnp.dot(s_m1, wc[0], preferred_element_type=f32)
         + jnp.dot(series, wc[1], preferred_element_type=f32)
         + jnp.dot(s_p1, wc[2], preferred_element_type=f32))          # (B*L, D_MODEL)

    lane = lax.broadcasted_iota(jnp.int32, (1, L), 1)                 # lag index row

    # ---- Encoder layers (shared seasonal_encoder weights for both streams) ----
    for li in range(E_LAYERS):
        # fused Q|K|V projection over the whole (B*L) slab
        qkv = jnp.dot(h, wqkv_ref[li], preferred_element_type=f32) + bqkv_ref[li]   # (B*L, 3D)

        # AutoCorrelation is per-sample (top-k lags depend on the sample): tiny static loop.
        for b in range(B):
            r0 = b * L
            qs = qkv[r0:r0 + L, 0:D_MODEL]
            ks = qkv[r0:r0 + L, D_MODEL:2 * D_MODEL]
            vs = qkv[r0:r0 + L, 2 * D_MODEL:3 * D_MODEL]

            # R[t, s] = sum_d Q[t, d] K[s, d]  (one small MXU matmul, no (L*L, D) expansion)
            R = lax.dot_general(qs, ks, (((1,), (1,)), ((), ())),
                                preferred_element_type=f32)           # (L, L)

            # mv[tau] = (1/D) sum_t R[t, (t - tau) % L]  == irfft(rfft(Q)*conj(rfft(K))) mean
            mv = jnp.zeros((1, L), f32)
            for tau in range(L):
                dmask = shifts_ref[(L - tau) % L]                     # 1{s == (t - tau) % L}
                s = jnp.sum(R * dmask, axis=0, keepdims=True)         # (1, L)
                s = jnp.sum(s, axis=1, keepdims=True)                 # (1, 1)
                mv = mv + s * (lane == tau).astype(f32)
            mv = mv * (1.0 / D_MODEL)

            # top-k lags (first-occurrence tie-break, like torch.topk) + softmax over them
            rem = mv
            sel = jnp.zeros((1, L), f32)
            for _ in range(TOP_K):
                mx = jnp.max(rem, axis=1, keepdims=True)
                first = jnp.min(jnp.where(rem == mx, lane, L), axis=1, keepdims=True)
                oh = (lane == first).astype(f32)
                sel = sel + oh
                rem = jnp.where(oh > 0.0, -jnp.inf, rem)
            num = jnp.exp(mv - jnp.max(mv, axis=1, keepdims=True)) * sel
            agg = num / jnp.sum(num, axis=1, keepdims=True)           # (1, L) sparse weights

            # circulant W[t, s] = agg[(s - t) % L];  delays_agg = W @ V
            W = jnp.zeros((L, L), f32)
            for tau in range(L):
                W = W + agg[:, tau:tau + 1] * shifts_ref[tau]
            vagg_ref[r0:r0 + L, :] = jnp.dot(W, vs, preferred_element_type=f32)

        attn = jnp.dot(vagg_ref[...], wo_ref[li], preferred_element_type=f32) + bo_ref[li]
        u = h + attn                                                  # residual (dropout = id)
        s1 = u - jnp.dot(ma, u, preferred_element_type=f32)           # decomp1 (seasonal part)
        y = jnp.maximum(jnp.dot(s1, w1_ref[li], preferred_element_type=f32), 0.0)   # relu
        y = jnp.dot(y, w2_ref[li], preferred_element_type=f32)
        z = s1 + y
        # TODO(synk): kefvp Encoder 'mode' kwarg source unavailable; both decomps assumed to
        #             return the seasonal (residual) component, as in vanilla Autoformer.
        h = z - jnp.dot(ma, z, preferred_element_type=f32)            # decomp2

    # ---- my_Layernorm: LayerNorm(d_model) minus its per-sequence mean ----
    mu = jnp.mean(h, axis=-1, keepdims=True)
    var = jnp.mean((h - mu) ** 2, axis=-1, keepdims=True)
    xh = (h - mu) * lax.rsqrt(var + LN_EPS) * gamma_ref[...] + beta_ref[...]
    out_ref[0] = jnp.dot(submean, xh, preferred_element_type=f32).astype(out_ref.dtype)


# ---------------- pallas_call wrapper -----------------------------------------------------
def _shared_spec(shape):
    nd = len(shape)
    return pl.BlockSpec(tuple(shape), lambda s, _nd=nd: (0,) * _nd)


def autoformer_fused(x_enc, fused):
    x_flat = x_enc.reshape(BL, C_IN)
    in_specs = [
        _shared_spec((BL, C_IN)),                                          # x (both samples)
        pl.BlockSpec((1, BL, BL), lambda s: (s, 0, 0)),                    # per-stream decomp op
        pl.BlockSpec((1, 3, C_IN, D_MODEL), lambda s: (s, 0, 0, 0)),       # per-stream embed W
        _shared_spec(fused["wqkv"].shape),
        _shared_spec(fused["bqkv"].shape),
        _shared_spec(fused["wo"].shape),
        _shared_spec(fused["bo"].shape),
        _shared_spec(fused["w1"].shape),
        _shared_spec(fused["w2"].shape),
        _shared_spec(fused["consts"].shape),
        _shared_spec(fused["shifts"].shape),
        _shared_spec(fused["ln_gamma"].shape),
        _shared_spec(fused["ln_beta"].shape),
    ]
    out = pl.pallas_call(
        fused_forward_kernel,
        grid=(N_STREAMS,),
        in_specs=in_specs,
        out_specs=pl.BlockSpec((1, BL, D_MODEL), lambda s: (s, 0, 0)),
        out_shape=jax.ShapeDtypeStruct((N_STREAMS, BL, D_MODEL), jnp.float32),
        scratch_shapes=[pltpu.VMEM((BL, D_MODEL), jnp.float32)],
        compiler_params=pltpu.CompilerParams(dimension_semantics=("parallel",)),
    )(x_flat, fused["sop"], fused["wc"], fused["wqkv"], fused["bqkv"], fused["wo"],
      fused["bo"], fused["w1"], fused["w2"], fused["consts"], fused["shifts"],
      fused["ln_gamma"], fused["ln_beta"])
    out = out.reshape(N_STREAMS, B, L, D_MODEL)
    return out[0], out[1]


def autoformer_forward(x_enc, x_mark_enc, fused):
    del x_mark_enc  # the reference forward embeds the decomposed series itself, not x_mark_enc
    return autoformer_fused(x_enc, fused)        # (seasonal_enc_out, trend_enc_out)


# ---------------- parameters --------------------------------------------------------------
def init_params(key):
    keys = iter(jax.random.split(key, 64))

    def nrm(shape, scale=0.1):
        return scale * jax.random.normal(next(keys), shape, jnp.float32)

    def embed_params():
        return dict(w_conv=nrm((3, C_IN, D_MODEL)), w_temp=nrm((C_IN, D_MODEL)))

    def layer_params():
        return dict(
            wq=nrm((D_MODEL, D_MODEL)), bq=nrm((1, D_MODEL)),
            wk=nrm((D_MODEL, D_MODEL)), bk=nrm((1, D_MODEL)),
            wv=nrm((D_MODEL, D_MODEL)), bv=nrm((1, D_MODEL)),
            wo=nrm((D_MODEL, D_MODEL)), bo=nrm((1, D_MODEL)),
            w1=nrm((D_MODEL, D_FF)), w2=nrm((D_FF, D_MODEL)),
        )

    def encoder_params():
        return dict(
            layers=[layer_params() for _ in range(E_LAYERS)],
            ln_gamma=jnp.ones((1, D_MODEL), jnp.float32),
            ln_beta=jnp.zeros((1, D_MODEL), jnp.float32),
        )

    return dict(
        seasonal_embed=embed_params(),
        trend_embed=embed_params(),
        seasonal_encoder=encoder_params(),
        trend_encoder=encoder_params(),     # constructed (as in __init__) but unused in forward
    )


def prepare_fused_params(params):
    """Host-side one-time packing of module parameters into the fused-kernel operand set."""
    def emb_weight(p):
        wcv = np.array(p["w_conv"], np.float32).copy()
        wcv[1] = wcv[1] + np.array(p["w_temp"], np.float32)  # x_mark == x => fold timeF linear
        return wcv

    wc = np.stack([emb_weight(params["seasonal_embed"]), emb_weight(params["trend_embed"])])
    enc = params["seasonal_encoder"]     # both streams use the seasonal encoder (as in reference)
    layers = enc["layers"]
    wqkv = np.stack([np.concatenate([np.array(lp["wq"]), np.array(lp["wk"]),
                                     np.array(lp["wv"])], axis=1) for lp in layers])
    bqkv = np.stack([np.concatenate([np.array(lp["bq"]), np.array(lp["bk"]),
                                     np.array(lp["bv"])], axis=1) for lp in layers])
    wo = np.stack([np.array(lp["wo"]) for lp in layers])
    bo = np.stack([np.array(lp["bo"]) for lp in layers])
    w1 = np.stack([np.array(lp["w1"]) for lp in layers])
    w2 = np.stack([np.array(lp["w2"]) for lp in layers])

    ma_bd = block_diag_np(moving_avg_matrix(L, MOVING_AVG), B)
    gp_bd = block_diag_np(shift_matrix(L, -1), B)
    gn_bd = block_diag_np(shift_matrix(L, +1), B)
    eye_bd = np.eye(BL, dtype=np.float32)
    submean = eye_bd - block_diag_np(np.full((L, L), 1.0 / L, np.float32), B)
    sop = np.stack([eye_bd - ma_bd, ma_bd])                  # stream 0: seasonal, 1: trend
    consts = np.stack([ma_bd, submean, gp_bd, gn_bd])
    shifts = np.stack([shift_matrix(L, a) for a in range(L)])  # shifts[a][t,s]=1{s==(t+a)%L}

    bundle = dict(
        wc=wc, wqkv=wqkv, bqkv=bqkv, wo=wo, bo=bo, w1=w1, w2=w2,
        sop=sop, consts=consts, shifts=shifts,
        ln_gamma=np.array(enc["ln_gamma"], np.float32),
        ln_beta=np.array(enc["ln_beta"], np.float32),
    )
    return {k: jnp.asarray(v, jnp.float32) for k, v in bundle.items()}


# ---------------- pure-JAX (XLA) reference of the same forward ----------------------------
def reference_forward(x_enc, params):
    ma = jnp.asarray(moving_avg_matrix(L, MOVING_AVG))

    def decomp(x):
        trend = jnp.einsum('ls,bsc->blc', ma, x)
        return x - trend, trend

    def embed(x, p):
        out = jnp.einsum('blc,cd->bld', x, p["w_temp"])
        for j in range(3):
            xs = jnp.take(x, (jnp.arange(L) + j - 1) % L, axis=1)
            out = out + jnp.einsum('blc,cd->bld', xs, p["w_conv"][j])
        return out

    def enc_layer(x, lp):
        q = x @ lp["wq"] + lp["bq"]
        k = x @ lp["wk"] + lp["bk"]
        v = x @ lp["wv"] + lp["bv"]
        mv = jnp.stack(
            [jnp.sum(q * jnp.take(k, (jnp.arange(L) - tau) % L, axis=1), axis=(1, 2))
             for tau in range(L)], axis=-1) / D_MODEL                       # (B, L)
        w, delay = lax.top_k(mv, TOP_K)
        tmp = jax.nn.softmax(w, axis=-1)
        agg = jnp.zeros_like(v)
        for i in range(TOP_K):
            idxs = (jnp.arange(L)[None, :] + delay[:, i:i + 1]) % L
            agg = agg + tmp[:, i][:, None, None] * jnp.take_along_axis(v, idxs[:, :, None], axis=1)
        attn = agg @ lp["wo"] + lp["bo"]
        x = x + attn
        x, _ = decomp(x)
        y = jax.nn.relu(x @ lp["w1"]) @ lp["w2"]
        res, _ = decomp(x + y)
        return res

    def encoder(x, ep):
        for lp in ep["layers"]:
            x = enc_layer(x, lp)
        mu = jnp.mean(x, axis=-1, keepdims=True)
        var = jnp.mean((x - mu) ** 2, axis=-1, keepdims=True)
        xh = (x - mu) * lax.rsqrt(var + LN_EPS) * ep["ln_gamma"] + ep["ln_beta"]
        return xh - jnp.mean(xh, axis=1, keepdims=True)

    seasonal_init, trend_init = decomp(x_enc)
    sea = encoder(embed(seasonal_init, params["seasonal_embed"]), params["seasonal_encoder"])
    tre = encoder(embed(trend_init, params["trend_embed"]), params["seasonal_encoder"])
    return sea, tre


# ---------------- main --------------------------------------------------------------------
if __name__ == "__main__":
    key = jax.random.PRNGKey(0)
    k_x, k_mark, k_p = jax.random.split(key, 3)
    x_enc = jax.random.normal(k_x, (B, L, C_IN), jnp.float32)
    x_mark_enc = jax.random.normal(k_mark, (B, L, C_IN), jnp.float32)
    params = init_params(k_p)
    fused = prepare_fused_params(params)

    fwd = jax.jit(lambda x, xm: autoformer_forward(x, xm, fused))
    seasonal_out, trend_out = fwd(x_enc, x_mark_enc)
    jax.block_until_ready((seasonal_out, trend_out))

    assert seasonal_out.shape == (B, L, D_MODEL)
    assert trend_out.shape == (B, L, D_MODEL)
    assert bool(jnp.all(jnp.isfinite(seasonal_out))) and bool(jnp.all(jnp.isfinite(trend_out)))

    # numerical check against a pure-JAX/XLA implementation of the same forward pass
    with jax.default_matmul_precision("highest"):
        ref_sea, ref_tre = jax.jit(lambda x: reference_forward(x, params))(x_enc)
    np.testing.assert_allclose(np.array(seasonal_out), np.array(ref_sea), rtol=2e-2, atol=2e-2)
    np.testing.assert_allclose(np.array(trend_out), np.array(ref_tre), rtol=2e-2, atol=2e-2)

    print("KERNEL_OK")
</pallas_src>

<mosaic_0001>
module attributes {stable_mosaic.version = 11 : i64} {
  func.func @fused_forward_kernel(%arg0: i32, %arg1: memref<32x4xf32, #tpu.memory_space<vmem>>, %arg2: memref<1x32x32xf32, #tpu.memory_space<vmem>>, %arg3: memref<1x3x4x32xf32, #tpu.memory_space<vmem>>, %arg4: memref<1x32x96xf32, #tpu.memory_space<vmem>>, %arg5: memref<1x1x96xf32, #tpu.memory_space<vmem>>, %arg6: memref<1x32x32xf32, #tpu.memory_space<vmem>>, %arg7: memref<1x1x32xf32, #tpu.memory_space<vmem>>, %arg8: memref<1x32x64xf32, #tpu.memory_space<vmem>>, %arg9: memref<1x64x32xf32, #tpu.memory_space<vmem>>, %arg10: memref<4x32x32xf32, #tpu.memory_space<vmem>>, %arg11: memref<16x16x16xf32, #tpu.memory_space<vmem>>, %arg12: memref<1x32xf32, #tpu.memory_space<vmem>>, %arg13: memref<1x32xf32, #tpu.memory_space<vmem>>, %arg14: memref<1x32x32xf32, #tpu.memory_space<vmem>>, %arg15: memref<32x32xf32, #tpu.memory_space<vmem>>) attributes {dimension_semantics = [#tpu.dimension_semantics<parallel>], iteration_bounds = array<i64: 2>, scalar_prefetch = 0 : i64, scratch_operands = 1 : i64, tpu.core_type = #tpu.core_type<tc>, window_params = [{pipeline_mode = #tpu.pipeline_mode<synchronous>, transform_indices = @transform_0, window_bounds = array<i64: 32, 4>}, {transform_indices = @transform_1, window_bounds = array<i64: 1, 32, 32>}, {transform_indices = @transform_2, window_bounds = array<i64: 1, 3, 4, 32>}, {pipeline_mode = #tpu.pipeline_mode<synchronous>, transform_indices = @transform_3, window_bounds = array<i64: 1, 32, 96>}, {pipeline_mode = #tpu.pipeline_mode<synchronous>, transform_indices = @transform_4, window_bounds = array<i64: 1, 1, 96>}, {pipeline_mode = #tpu.pipeline_mode<synchronous>, transform_indices = @transform_5, window_bounds = array<i64: 1, 32, 32>}, {pipeline_mode = #tpu.pipeline_mode<synchronous>, transform_indices = @transform_6, window_bounds = array<i64: 1, 1, 32>}, {pipeline_mode = #tpu.pipeline_mode<synchronous>, transform_indices = @transform_7, window_bounds = array<i64: 1, 32, 64>}, {pipeline_mode = #tpu.pipeline_mode<synchronous>, transform_indices = @transform_8, window_bounds = array<i64: 1, 64, 32>}, {pipeline_mode = #tpu.pipeline_mode<synchronous>, transform_indices = @transform_9, window_bounds = array<i64: 4, 32, 32>}, {pipeline_mode = #tpu.pipeline_mode<synchronous>, transform_indices = @transform_10, window_bounds = array<i64: 16, 16, 16>}, {pipeline_mode = #tpu.pipeline_mode<synchronous>, transform_indices = @transform_11, window_bounds = array<i64: 1, 32>}, {pipeline_mode = #tpu.pipeline_mode<synchronous>, transform_indices = @transform_12, window_bounds = array<i64: 1, 32>}, {transform_indices = @transform_13, window_bounds = array<i64: 1, 32, 32>}]} {
    %c0 = arith.constant 0 : index
    %c0_0 = arith.constant 0 : index
    %0 = vector.load %arg1[%c0, %c0_0] : memref<32x4xf32, #tpu.memory_space<vmem>>, vector<32x4xf32>
    %c0_1 = arith.constant 0 : index
    %c0_2 = arith.constant 0 : index
    %c0_3 = arith.constant 0 : index
    %1 = vector.load %arg10[%c0_1, %c0_2, %c0_3] : memref<4x32x32xf32, #tpu.memory_space<vmem>>, vector<1x32x32xf32>
    %2 = vector.shape_cast %1 : vector<1x32x32xf32> to vector<32x32xf32>
    %c1 = arith.constant 1 : index
    %c0_4 = arith.constant 0 : index
    %c0_5 = arith.constant 0 : index
    %3 = vector.load %arg10[%c1, %c0_4, %c0_5] : memref<4x32x32xf32, #tpu.memory_space<vmem>>, vector<1x32x32xf32>
    %4 = vector.shape_cast %3 : vector<1x32x32xf32> to vector<32x32xf32>
    %c2 = arith.constant 2 : index
    %c0_6 = arith.constant 0 : index
    %c0_7 = arith.constant 0 : index
    %5 = vector.load %arg10[%c2, %c0_6, %c0_7] : memref<4x32x32xf32, #tpu.memory_space<vmem>>, vector<1x32x32xf32>
    %6 = vector.shape_cast %5 : vector<1x32x32xf32> to vector<32x32xf32>
    %c3 = arith.constant 3 : index
    %c0_8 = arith.constant 0 : index
    %c0_9 = arith.constant 0 : index
    %7 = vector.load %arg10[%c3, %c0_8, %c0_9] : memref<4x32x32xf32, #tpu.memory_space<vmem>>, vector<1x32x32xf32>
    %8 = vector.shape_cast %7 : vector<1x32x32xf32> to vector<32x32xf32>
    %c0_10 = arith.constant 0 : index
    %c0_11 = arith.constant 0 : index
    %c0_12 = arith.constant 0 : index
    %9 = vector.load %arg2[%c0_10, %c0_11, %c0_12] : memref<1x32x32xf32, #tpu.memory_space<vmem>>, vector<1x32x32xf32>
    %10 = vector.shape_cast %9 : vector<1x32x32xf32> to vector<32x32xf32>
    %cst = arith.constant dense<0.000000e+00> : vector<32x4xf32>
    %11 = tpu.matmul %10, %0, %cst {dimension_numbers = #tpu.dot_dimension_numbers<[1], [0], [0], [1], [0, 0, 1, 1], [], []>} : vector<32x32xf32>, vector<32x4xf32>, vector<32x4xf32> -> vector<32x4xf32>
    %cst_13 = arith.constant dense<0.000000e+00> : vector<32x4xf32>
    %12 = tpu.matmul %6, %11, %cst_13 {dimension_numbers = #tpu.dot_dimension_numbers<[1], [0], [0], [1], [0, 0, 1, 1], [], []>} : vector<32x32xf32>, vector<32x4xf32>, vector<32x4xf32> -> vector<32x4xf32>
    %cst_14 = arith.constant dense<0.000000e+00> : vector<32x4xf32>
    %13 = tpu.matmul %8, %11, %cst_14 {dimension_numbers = #tpu.dot_dimension_numbers<[1], [0], [0], [1], [0, 0, 1, 1], [], []>} : vector<32x32xf32>, vector<32x4xf32>, vector<32x4xf32> -> vector<32x4xf32>
    %c0_15 = arith.constant 0 : index
    %c0_16 = arith.constant 0 : index
    %c0_17 = arith.constant 0 : index
    %c0_18 = arith.constant 0 : index
    %14 = vector.load %arg3[%c0_15, %c0_16, %c0_17, %c0_18] : memref<1x3x4x32xf32, #tpu.memory_space<vmem>>, vector<1x3x4x32xf32>
    %15 = vector.shape_cast %14 : vector<1x3x4x32xf32> to vector<3x4x32xf32>
    %16 = vector.extract_strided_slice %15 {offsets = [0, 0, 0], sizes = [1, 4, 32], strides = [1, 1, 1]} : vector<3x4x32xf32> to vector<1x4x32xf32>
    %17 = vector.shape_cast %16 : vector<1x4x32xf32> to vector<4x32xf32>
    %cst_19 = arith.constant dense<0.000000e+00> : vector<32x32xf32>
    %18 = tpu.matmul %12, %17, %cst_19 {dimension_numbers = #tpu.dot_dimension_numbers<[1], [0], [0], [1], [0, 0, 1, 1], [], []>} : vector<32x4xf32>, vector<4x32xf32>, vector<32x32xf32> -> vector<32x32xf32>
    %19 = vector.extract_strided_slice %15 {offsets = [1, 0, 0], sizes = [1, 4, 32], strides = [1, 1, 1]} : vector<3x4x32xf32> to vector<1x4x32xf32>
    %20 = vector.shape_cast %19 : vector<1x4x32xf32> to vector<4x32xf32>
    %cst_20 = arith.constant dense<0.000000e+00> : vector<32x32xf32>
    %21 = tpu.matmul %11, %20, %cst_20 {dimension_numbers = #tpu.dot_dimension_numbers<[1], [0], [0], [1], [0, 0, 1, 1], [], []>} : vector<32x4xf32>, vector<4x32xf32>, vector<32x32xf32> -> vector<32x32xf32>
    %22 = arith.addf %18, %21 : vector<32x32xf32>
    %23 = vector.extract_strided_slice %15 {offsets = [2, 0, 0], sizes = [1, 4, 32], strides = [1, 1, 1]} : vector<3x4x32xf32> to vector<1x4x32xf32>
    %24 = vector.shape_cast %23 : vector<1x4x32xf32> to vector<4x32xf32>
    %cst_21 = arith.constant dense<0.000000e+00> : vector<32x32xf32>
    %25 = tpu.matmul %13, %24, %cst_21 {dimension_numbers = #tpu.dot_dimension_numbers<[1], [0], [0], [1], [0, 0, 1, 1], [], []>} : vector<32x4xf32>, vector<4x32xf32>, vector<32x32xf32> -> vector<32x32xf32>
    %26 = arith.addf %22, %25 : vector<32x32xf32>
    %27 = tpu.iota {dimensions = array<i32: 1>} : vector<1x16xi32>
    %c0_22 = arith.constant 0 : index
    %c0_23 = arith.constant 0 : index
    %c0_24 = arith.constant 0 : index
    %28 = vector.load %arg4[%c0_22, %c0_23, %c0_24] : memref<1x32x96xf32, #tpu.memory_space<vmem>>, vector<1x32x96xf32>
    %29 = vector.shape_cast %28 : vector<1x32x96xf32> to vector<32x96xf32>
    %cst_25 = arith.constant dense<0.000000e+00> : vector<32x96xf32>
    %30 = tpu.matmul %26, %29, %cst_25 {dimension_numbers = #tpu.dot_dimension_numbers<[1], [0], [0], [1], [0, 0, 1, 1], [], []>} : vector<32x32xf32>, vector<32x96xf32>, vector<32x96xf32> -> vector<32x96xf32>
    %c0_26 = arith.constant 0 : index
    %c0_27 = arith.constant 0 : index
    %c0_28 = arith.constant 0 : index
    %31 = vector.load %arg5[%c0_26, %c0_27, %c0_28] : memref<1x1x96xf32, #tpu.memory_space<vmem>>, vector<1x1x96xf32>
    %32 = vector.shape_cast %31 : vector<1x1x96xf32> to vector<1x96xf32>
    %33 = vector.broadcast %32 : vector<1x96xf32> to vector<32x96xf32>
    %34 = arith.addf %30, %33 : vector<32x96xf32>
    %35 = vector.extract_strided_slice %34 {offsets = [0, 0], sizes = [16, 32], strides = [1, 1]} : vector<32x96xf32> to vector<16x32xf32>
    %36 = vector.extract_strided_slice %34 {offsets = [0, 32], sizes = [16, 32], strides = [1, 1]} : vector<32x96xf32> to vector<16x32xf32>
    %37 = vector.extract_strided_slice %34 {offsets = [0, 64], sizes = [16, 32], strides = [1, 1]} : vector<32x96xf32> to vector<16x32xf32>
    %cst_29 = arith.constant dense<0.000000e+00> : vector<16x16xf32>
    %38 = tpu.matmul %35, %36, %cst_29 {dimension_numbers = #tpu.dot_dimension_numbers<[1], [1], [0], [0], [0, 0, 1, 0], [], []>} : vector<16x32xf32>, vector<16x32xf32>, vector<16x16xf32> -> vector<16x16xf32>
    %cst_30 = arith.constant 0.000000e+00 : f32
    %39 = vector.broadcast %cst_30 : f32 to vector<1x16xf32>
    %c0_31 = arith.constant 0 : index
    %c0_32 = arith.constant 0 : index
    %c0_33 = arith.constant 0 : index
    %40 = vector.load %arg11[%c0_31, %c0_32, %c0_33] : memref<16x16x16xf32, #tpu.memory_space<vmem>>, vector<1x16x16xf32>
    %41 = vector.shape_cast %40 : vector<1x16x16xf32> to vector<16x16xf32>
    %42 = arith.mulf %38, %41 : vector<16x16xf32>
    %cst_34 = arith.constant dense<0.000000e+00> : vector<16xf32>
    %43 = vector.multi_reduction <add>, %42, %cst_34 [0] : vector<16x16xf32> to vector<16xf32>
    %44 = vector.shape_cast %43 : vector<16xf32> to vector<1x16xf32>
    %cst_35 = arith.constant dense<0.000000e+00> : vector<1xf32>
    %45 = vector.multi_reduction <add>, %44, %cst_35 [1] : vector<1x16xf32> to vector<1xf32>
    %46 = vector.shape_cast %45 : vector<1xf32> to vector<1x1xf32>
    %c0_i32 = arith.constant 0 : i32
    %47 = vector.broadcast %c0_i32 : i32 to vector<1x16xi32>
    %48 = arith.cmpi eq, %27, %47 : vector<1x16xi32>
    %49 = arith.extui %48 : vector<1x16xi1> to vector<1x16xi32>
    %50 = arith.sitofp %49 : vector<1x16xi32> to vector<1x16xf32>
    %51 = vector.broadcast %46 : vector<1x1xf32> to vector<1x16xf32>
    %52 = arith.mulf %51, %50 : vector<1x16xf32>
    %53 = arith.addf %39, %52 : vector<1x16xf32>
    %c15 = arith.constant 15 : index
    %c0_36 = arith.constant 0 : index
    %c0_37 = arith.constant 0 : index
    %54 = vector.load %arg11[%c15, %c0_36, %c0_37] : memref<16x16x16xf32, #tpu.memory_space<vmem>>, vector<1x16x16xf32>
    %55 = vector.shape_cast %54 : vector<1x16x16xf32> to vector<16x16xf32>
    %56 = arith.mulf %38, %55 : vector<16x16xf32>
    %cst_38 = arith.constant dense<0.000000e+00> : vector<16xf32>
    %57 = vector.multi_reduction <add>, %56, %cst_38 [0] : vector<16x16xf32> to vector<16xf32>
    %58 = vector.shape_cast %57 : vector<16xf32> to vector<1x16xf32>
    %cst_39 = arith.constant dense<0.000000e+00> : vector<1xf32>
    %59 = vector.multi_reduction <add>, %58, %cst_39 [1] : vector<1x16xf32> to vector<1xf32>
    %60 = vector.shape_cast %59 : vector<1xf32> to vector<1x1xf32>
    %c1_i32 = arith.constant 1 : i32
    %61 = vector.broadcast %c1_i32 : i32 to vector<1x16xi32>
    %62 = arith.cmpi eq, %27, %61 : vector<1x16xi32>
    %63 = arith.extui %62 : vector<1x16xi1> to vector<1x16xi32>
    %64 = arith.sitofp %63 : vector<1x16xi32> to vector<1x16xf32>
    %65 = vector.broadcast %60 : vector<1x1xf32> to vector<1x16xf32>
    %66 = arith.mulf %65, %64 : vector<1x16xf32>
    %67 = arith.addf %53, %66 : vector<1x16xf32>
    %c14 = arith.constant 14 : index
    %c0_40 = arith.constant 0 : index
    %c0_41 = arith.constant 0 : index
    %68 = vector.load %arg11[%c14, %c0_40, %c0_41] : memref<16x16x16xf32, #tpu.memory_space<vmem>>, vector<1x16x16xf32>
    %69 = vector.shape_cast %68 : vector<1x16x16xf32> to vector<16x16xf32>
    %70 = arith.mulf %38, %69 : vector<16x16xf32>
    %cst_42 = arith.constant dense<0.000000e+00> : vector<16xf32>
    %71 = vector.multi_reduction <add>, %70, %cst_42 [0] : vector<16x16xf32> to vector<16xf32>
    %72 = vector.shape_cast %71 : vector<16xf32> to vector<1x16xf32>
    %cst_43 = arith.constant dense<0.000000e+00> : vector<1xf32>
    %73 = vector.multi_reduction <add>, %72, %cst_43 [1] : vector<1x16xf32> to vector<1xf32>
    %74 = vector.shape_cast %73 : vector<1xf32> to vector<1x1xf32>
    %c2_i32 = arith.constant 2 : i32
    %75 = vector.broadcast %c2_i32 : i32 to vector<1x16xi32>
    %76 = arith.cmpi eq, %27, %75 : vector<1x16xi32>
    %77 = arith.extui %76 : vector<1x16xi1> to vector<1x16xi32>
    %78 = arith.sitofp %77 : vector<1x16xi32> to vector<1x16xf32>
    %79 = vector.broadcast %74 : vector<1x1xf32> to vector<1x16xf32>
    %80 = arith.mulf %79, %78 : vector<1x16xf32>
    %81 = arith.addf %67, %80 : vector<1x16xf32>
    %c13 = arith.constant 13 : index
    %c0_44 = arith.constant 0 : index
    %c0_45 = arith.constant 0 : index
    %82 = vector.load %arg11[%c13, %c0_44, %c0_45] : memref<16x16x16xf32, #tpu.memory_space<vmem>>, vector<1x16x16xf32>
    %83 = vector.shape_cast %82 : vector<1x16x16xf32> to vector<16x16xf32>
    %84 = arith.mulf %38, %83 : vector<16x16xf32>
    %cst_46 = arith.constant dense<0.000000e+00> : vector<16xf32>
    %85 = vector.multi_reduction <add>, %84, %cst_46 [0] : vector<16x16xf32> to vector<16xf32>
    %86 = vector.shape_cast %85 : vector<16xf32> to vector<1x16xf32>
    %cst_47 = arith.constant dense<0.000000e+00> : vector<1xf32>
    %87 = vector.multi_reduction <add>, %86, %cst_47 [1] : vector<1x16xf32> to vector<1xf32>
    %88 = vector.shape_cast %87 : vector<1xf32> to vector<1x1xf32>
    %c3_i32 = arith.constant 3 : i32
    %89 = vector.broadcast %c3_i32 : i32 to vector<1x16xi32>
    %90 = arith.cmpi eq, %27, %89 : vector<1x16xi32>
    %91 = arith.extui %90 : vector<1x16xi1> to vector<1x16xi32>
    %92 = arith.sitofp %91 : vector<1x16xi32> to vector<1x16xf32>
    %93 = vector.broadcast %88 : vector<1x1xf32> to vector<1x16xf32>
    %94 = arith.mulf %93, %92 : vector<1x16xf32>
    %95 = arith.addf %81, %94 : vector<1x16xf32>
    %c12 = arith.constant 12 : index
    %c0_48 = arith.constant 0 : index
    %c0_49 = arith.constant 0 : index
    %96 = vector.load %arg11[%c12, %c0_48, %c0_49] : memref<16x16x16xf32, #tpu.memory_space<vmem>>, vector<1x16x16xf32>
    %97 = vector.shape_cast %96 : vector<1x16x16xf32> to vector<16x16xf32>
    %98 = arith.mulf %38, %97 : vector<16x16xf32>
    %cst_50 = arith.constant dense<0.000000e+00> : vector<16xf32>
    %99 = vector.multi_reduction <add>, %98, %cst_50 [0] : vector<16x16xf32> to vector<16xf32>
    %100 = vector.shape_cast %99 : vector<16xf32> to vector<1x16xf32>
    %cst_51 = arith.constant dense<0.000000e+00> : vector<1xf32>
    %101 = vector.multi_reduction <add>, %100, %cst_51 [1] : vector<1x16xf32> to vector<1xf32>
    %102 = vector.shape_cast %101 : vector<1xf32> to vector<1x1xf32>
    %c4_i32 = arith.constant 4 : i32
    %103 = vector.broadcast %c4_i32 : i32 to vector<1x16xi32>
    %104 = arith.cmpi eq, %27, %103 : vector<1x16xi32>
    %105 = arith.extui %104 : vector<1x16xi1> to vector<1x16xi32>
    %106 = arith.sitofp %105 : vector<1x16xi32> to vector<1x16xf32>
    %107 = vector.broadcast %102 : vector<1x1xf32> to vector<1x16xf32>
    %108 = arith.mulf %107, %106 : vector<1x16xf32>
    %109 = arith.addf %95, %108 : vector<1x16xf32>
    %c11 = arith.constant 11 : index
    %c0_52 = arith.constant 0 : index
    %c0_53 = arith.constant 0 : index
    %110 = vector.load %arg11[%c11, %c0_52, %c0_53] : memref<16x16x16xf32, #tpu.memory_space<vmem>>, vector<1x16x16xf32>
    %111 = vector.shape_cast %110 : vector<1x16x16xf32> to vector<16x16xf32>
    %112 = arith.mulf %38, %111 : vector<16x16xf32>
    %cst_54 = arith.constant dense<0.000000e+00> : vector<16xf32>
    %113 = vector.multi_reduction <add>, %112, %cst_54 [0] : vector<16x16xf32> to vector<16xf32>
    %114 = vector.shape_cast %113 : vector<16xf32> to vector<1x16xf32>
    %cst_55 = arith.constant dense<0.000000e+00> : vector<1xf32>
    %115 = vector.multi_reduction <add>, %114, %cst_55 [1] : vector<1x16xf32> to vector<1xf32>
    %116 = vector.shape_cast %115 : vector<1xf32> to vector<1x1xf32>
    %c5_i32 = arith.constant 5 : i32
    %117 = vector.broadcast %c5_i32 : i32 to vector<1x16xi32>
    %118 = arith.cmpi eq, %27, %117 : vector<1x16xi32>
    %119 = arith.extui %118 : vector<1x16xi1> to vector<1x16xi32>
    %120 = arith.sitofp %119 : vector<1x16xi32> to vector<1x16xf32>
    %121 = vector.broadcast %116 : vector<1x1xf32> to vector<1x16xf32>
    %122 = arith.mulf %121, %120 : vector<1x16xf32>
    %123 = arith.addf %109, %122 : vector<1x16xf32>
    %c10 = arith.constant 10 : index
    %c0_56 = arith.constant 0 : index
    %c0_57 = arith.constant 0 : index
    %124 = vector.load %arg11[%c10, %c0_56, %c0_57] : memref<16x16x16xf32, #tpu.memory_space<vmem>>, vector<1x16x16xf32>
    %125 = vector.shape_cast %124 : vector<1x16x16xf32> to vector<16x16xf32>
    %126 = arith.mulf %38, %125 : vector<16x16xf32>
    %cst_58 = arith.constant dense<0.000000e+00> : vector<16xf32>
    %127 = vector.multi_reduction <add>, %126, %cst_58 [0] : vector<16x16xf32> to vector<16xf32>
    %128 = vector.shape_cast %127 : vector<16xf32> to vector<1x16xf32>
    %cst_59 = arith.constant dense<0.000000e+00> : vector<1xf32>
    %129 = vector.multi_reduction <add>, %128, %cst_59 [1] : vector<1x16xf32> to vector<1xf32>
    %130 = vector.shape_cast %129 : vector<1xf32> to vector<1x1xf32>
    %c6_i32 = arith.constant 6 : i32
    %131 = vector.broadcast %c6_i32 : i32 to vector<1x16xi32>
    %132 = arith.cmpi eq, %27, %131 : vector<1x16xi32>
    %133 = arith.extui %132 : vector<1x16xi1> to vector<1x16xi32>
    %134 = arith.sitofp %133 : vector<1x16xi32> to vector<1x16xf32>
    %135 = vector.broadcast %130 : vector<1x1xf32> to vector<1x16xf32>
    %136 = arith.mulf %135, %134 : vector<1x16xf32>
    %137 = arith.addf %123, %136 : vector<1x16xf32>
    %c9 = arith.constant 9 : index
    %c0_60 = arith.constant 0 : index
    %c0_61 = arith.constant 0 : index
    %138 = vector.load %arg11[%c9, %c0_60, %c0_61] : memref<16x16x16xf32, #tpu.memory_space<vmem>>, vector<1x16x16xf32>
    %139 = vector.shape_cast %138 : vector<1x16x16xf32> to vector<16x16xf32>
    %140 = arith.mulf %38, %139 : vector<16x16xf32>
    %cst_62 = arith.constant dense<0.000000e+00> : vector<16xf32>
    %141 = vector.multi_reduction <add>, %140, %cst_62 [0] : vector<16x16xf32> to vector<16xf32>
    %142 = vector.shape_cast %141 : vector<16xf32> to vector<1x16xf32>
    %cst_63 = arith.constant dense<0.000000e+00> : vector<1xf32>
    %143 = vector.multi_reduction <add>, %142, %cst_63 [1] : vector<1x16xf32> to vector<1xf32>
    %144 = vector.shape_cast %143 : vector<1xf32> to vector<1x1xf32>
    %c7_i32 = arith.constant 7 : i32
    %145 = vector.broadcast %c7_i32 : i32 to vector<1x16xi32>
    %146 = arith.cmpi eq, %27, %145 : vector<1x16xi32>
    %147 = arith.extui %146 : vector<1x16xi1> to vector<1x16xi32>
    %148 = arith.sitofp %147 : vector<1x16xi32> to vector<1x16xf32>
    %149 = vector.broadcast %144 : vector<1x1xf32> to vector<1x16xf32>
    %150 = arith.mulf %149, %148 : vector<1x16xf32>
    %151 = arith.addf %137, %150 : vector<1x16xf32>
    %c8 = arith.constant 8 : index
    %c0_64 = arith.constant 0 : index
    %c0_65 = arith.constant 0 : index
    %152 = vector.load %arg11[%c8, %c0_64, %c0_65] : memref<16x16x16xf32, #tpu.memory_space<vmem>>, vector<1x16x16xf32>
    %153 = vector.shape_cast %152 : vector<1x16x16xf32> to vector<16x16xf32>
    %154 = arith.mulf %38, %153 : vector<16x16xf32>
    %cst_66 = arith.constant dense<0.000000e+00> : vector<16xf32>
    %155 = vector.multi_reduction <add>, %154, %cst_66 [0] : vector<16x16xf32> to vector<16xf32>
    %156 = vector.shape_cast %155 : vector<16xf32> to vector<1x16xf32>
    %cst_67 = arith.constant dense<0.000000e+00> : vector<1xf32>
    %157 = vector.multi_reduction <add>, %156, %cst_67 [1] : vector<1x16xf32> to vector<1xf32>
    %158 = vector.shape_cast %157 : vector<1xf32> to vector<1x1xf32>
    %c8_i32 = arith.constant 8 : i32
    %159 = vector.broadcast %c8_i32 : i32 to vector<1x16xi32>
    %160 = arith.cmpi eq, %27, %159 : vector<1x16xi32>
    %161 = arith.extui %160 : vector<1x16xi1> to vector<1x16xi32>
    %162 = arith.sitofp %161 : vector<1x16xi32> to vector<1x16xf32>
    %163 = vector.broadcast %158 : vector<1x1xf32> to vector<1x16xf32>
    %164 = arith.mulf %163, %162 : vector<1x16xf32>
    %165 = arith.addf %151, %164 : vector<1x16xf32>
    %c7 = arith.constant 7 : index
    %c0_68 = arith.constant 0 : index
    %c0_69 = arith.constant 0 : index
    %166 = vector.load %arg11[%c7, %c0_68, %c0_69] : memref<16x16x16xf32, #tpu.memory_space<vmem>>, vector<1x16x16xf32>
    %167 = vector.shape_cast %166 : vector<1x16x16xf32> to vector<16x16xf32>
    %168 = arith.mulf %38, %167 : vector<16x16xf32>
    %cst_70 = arith.constant dense<0.000000e+00> : vector<16xf32>
    %169 = vector.multi_reduction <add>, %168, %cst_70 [0] : vector<16x16xf32> to vector<16xf32>
    %170 = vector.shape_cast %169 : vector<16xf32> to vector<1x16xf32>
    %cst_71 = arith.constant dense<0.000000e+00> : vector<1xf32>
    %171 = vector.multi_reduction <add>, %170, %cst_71 [1] : vector<1x16xf32> to vector<1xf32>
    %172 = vector.shape_cast %171 : vector<1xf32> to vector<1x1xf32>
    %c9_i32 = arith.constant 9 : i32
    %173 = vector.broadcast %c9_i32 : i32 to vector<1x16xi32>
    %174 = arith.cmpi eq, %27, %173 : vector<1x16xi32>
    %175 = arith.extui %174 : vector<1x16xi1> to vector<1x16xi32>
    %176 = arith.sitofp %175 : vector<1x16xi32> to vector<1x16xf32>
    %177 = vector.broadcast %172 : vector<1x1xf32> to vector<1x16xf32>
    %178 = arith.mulf %177, %176 : vector<1x16xf32>
    %179 = arith.addf %165, %178 : vector<1x16xf32>
    %c6 = arith.constant 6 : index
    %c0_72 = arith.constant 0 : index
    %c0_73 = arith.constant 0 : index
    %180 = vector.load %arg11[%c6, %c0_72, %c0_73] : memref<16x16x16xf32, #tpu.memory_space<vmem>>, vector<1x16x16xf32>
    %181 = vector.shape_cast %180 : vector<1x16x16xf32> to vector<16x16xf32>
    %182 = arith.mulf %38, %181 : vector<16x16xf32>
    %cst_74 = arith.constant dense<0.000000e+00> : vector<16xf32>
    %183 = vector.multi_reduction <add>, %182, %cst_74 [0] : vector<16x16xf32> to vector<16xf32>
    %184 = vector.shape_cast %183 : vector<16xf32> to vector<1x16xf32>
    %cst_75 = arith.constant dense<0.000000e+00> : vector<1xf32>
    %185 = vector.multi_reduction <add>, %184, %cst_75 [1] : vector<1x16xf32> to vector<1xf32>
    %186 = vector.shape_cast %185 : vector<1xf32> to vector<1x1xf32>
    %c10_i32 = arith.constant 10 : i32
    %187 = vector.broadcast %c10_i32 : i32 to vector<1x16xi32>
    %188 = arith.cmpi eq, %27, %187 : vector<1x16xi32>
    %189 = arith.extui %188 : vector<1x16xi1> to vector<1x16xi32>
    %190 = arith.sitofp %189 : vector<1x16xi32> to vector<1x16xf32>
    %191 = vector.broadcast %186 : vector<1x1xf32> to vector<1x16xf32>
    %192 = arith.mulf %191, %190 : vector<1x16xf32>
    %193 = arith.addf %179, %192 : vector<1x16xf32>
    %c5 = arith.constant 5 : index
    %c0_76 = arith.constant 0 : index
    %c0_77 = arith.constant 0 : index
    %194 = vector.load %arg11[%c5, %c0_76, %c0_77] : memref<16x16x16xf32, #tpu.memory_space<vmem>>, vector<1x16x16xf32>
    %195 = vector.shape_cast %194 : vector<1x16x16xf32> to vector<16x16xf32>
    %196 = arith.mulf %38, %195 : vector<16x16xf32>
    %cst_78 = arith.constant dense<0.000000e+00> : vector<16xf32>
    %197 = vector.multi_reduction <add>, %196, %cst_78 [0] : vector<16x16xf32> to vector<16xf32>
    %198 = vector.shape_cast %197 : vector<16xf32> to vector<1x16xf32>
    %cst_79 = arith.constant dense<0.000000e+00> : vector<1xf32>
    %199 = vector.multi_reduction <add>, %198, %cst_79 [1] : vector<1x16xf32> to vector<1xf32>
    %200 = vector.shape_cast %199 : vector<1xf32> to vector<1x1xf32>
    %c11_i32 = arith.constant 11 : i32
    %201 = vector.broadcast %c11_i32 : i32 to vector<1x16xi32>
    %202 = arith.cmpi eq, %27, %201 : vector<1x16xi32>
    %203 = arith.extui %202 : vector<1x16xi1> to vector<1x16xi32>
    %204 = arith.sitofp %203 : vector<1x16xi32> to vector<1x16xf32>
    %205 = vector.broadcast %200 : vector<1x1xf32> to vector<1x16xf32>
    %206 = arith.mulf %205, %204 : vector<1x16xf32>
    %207 = arith.addf %193, %206 : vector<1x16xf32>
    %c4 = arith.constant 4 : index
    %c0_80 = arith.constant 0 : index
    %c0_81 = arith.constant 0 : index
    %208 = vector.load %arg11[%c4, %c0_80, %c0_81] : memref<16x16x16xf32, #tpu.memory_space<vmem>>, vector<1x16x16xf32>
    %209 = vector.shape_cast %208 : vector<1x16x16xf32> to vector<16x16xf32>
    %210 = arith.mulf %38, %209 : vector<16x16xf32>
    %cst_82 = arith.constant dense<0.000000e+00> : vector<16xf32>
    %211 = vector.multi_reduction <add>, %210, %cst_82 [0] : vector<16x16xf32> to vector<16xf32>
    %212 = vector.shape_cast %211 : vector<16xf32> to vector<1x16xf32>
    %cst_83 = arith.constant dense<0.000000e+00> : vector<1xf32>
    %213 = vector.multi_reduction <add>, %212, %cst_83 [1] : vector<1x16xf32> to vector<1xf32>
    %214 = vector.shape_cast %213 : vector<1xf32> to vector<1x1xf32>
    %c12_i32 = arith.constant 12 : i32
    %215 = vector.broadcast %c12_i32 : i32 to vector<1x16xi32>
    %216 = arith.cmpi eq, %27, %215 : vector<1x16xi32>
    %217 = arith.extui %216 : vector<1x16xi1> to vector<1x16xi32>
    %218 = arith.sitofp %217 : vector<1x16xi32> to vector<1x16xf32>
    %219 = vector.broadcast %214 : vector<1x1xf32> to vector<1x16xf32>
    %220 = arith.mulf %219, %218 : vector<1x16xf32>
    %221 = arith.addf %207, %220 : vector<1x16xf32>
    %c3_84 = arith.constant 3 : index
    %c0_85 = arith.constant 0 : index
    %c0_86 = arith.constant 0 : index
    %222 = vector.load %arg11[%c3_84, %c0_85, %c0_86] : memref<16x16x16xf32, #tpu.memory_space<vmem>>, vector<1x16x16xf32>
    %223 = vector.shape_cast %222 : vector<1x16x16xf32> to vector<16x16xf32>
    %224 = arith.mulf %38, %223 : vector<16x16xf32>
    %cst_87 = arith.constant dense<0.000000e+00> : vector<16xf32>
    %225 = vector.multi_reduction <add>, %224, %cst_87 [0] : vector<16x16xf32> to vector<16xf32>
    %226 = vector.shape_cast %225 : vector<16xf32> to vector<1x16xf32>
    %cst_88 = arith.constant dense<0.000000e+00> : vector<1xf32>
    %227 = vector.multi_reduction <add>, %226, %cst_88 [1] : vector<1x16xf32> to vector<1xf32>
    %228 = vector.shape_cast %227 : vector<1xf32> to vector<1x1xf32>
    %c13_i32 = arith.constant 13 : i32
    %229 = vector.broadcast %c13_i32 : i32 to vector<1x16xi32>
    %230 = arith.cmpi eq, %27, %229 : vector<1x16xi32>
    %231 = arith.extui %230 : vector<1x16xi1> to vector<1x16xi32>
    %232 = arith.sitofp %231 : vector<1x16xi32> to vector<1x16xf32>
    %233 = vector.broadcast %228 : vector<1x1xf32> to vector<1x16xf32>
    %234 = arith.mulf %233, %232 : vector<1x16xf32>
    %235 = arith.addf %221, %234 : vector<1x16xf32>
    %c2_89 = arith.constant 2 : index
    %c0_90 = arith.constant 0 : index
    %c0_91 = arith.constant 0 : index
    %236 = vector.load %arg11[%c2_89, %c0_90, %c0_91] : memref<16x16x16xf32, #tpu.memory_space<vmem>>, vector<1x16x16xf32>
    %237 = vector.shape_cast %236 : vector<1x16x16xf32> to vector<16x16xf32>
    %238 = arith.mulf %38, %237 : vector<16x16xf32>
    %cst_92 = arith.constant dense<0.000000e+00> : vector<16xf32>
    %239 = vector.multi_reduction <add>, %238, %cst_92 [0] : vector<16x16xf32> to vector<16xf32>
    %240 = vector.shape_cast %239 : vector<16xf32> to vector<1x16xf32>
    %cst_93 = arith.constant dense<0.000000e+00> : vector<1xf32>
    %241 = vector.multi_reduction <add>, %240, %cst_93 [1] : vector<1x16xf32> to vector<1xf32>
    %242 = vector.shape_cast %241 : vector<1xf32> to vector<1x1xf32>
    %c14_i32 = arith.constant 14 : i32
    %243 = vector.broadcast %c14_i32 : i32 to vector<1x16xi32>
    %244 = arith.cmpi eq, %27, %243 : vector<1x16xi32>
    %245 = arith.extui %244 : vector<1x16xi1> to vector<1x16xi32>
    %246 = arith.sitofp %245 : vector<1x16xi32> to vector<1x16xf32>
    %247 = vector.broadcast %242 : vector<1x1xf32> to vector<1x16xf32>
    %248 = arith.mulf %247, %246 : vector<1x16xf32>
    %249 = arith.addf %235, %248 : vector<1x16xf32>
    %c1_94 = arith.constant 1 : index
    %c0_95 = arith.constant 0 : index
    %c0_96 = arith.constant 0 : index
    %250 = vector.load %arg11[%c1_94, %c0_95, %c0_96] : memref<16x16x16xf32, #tpu.memory_space<vmem>>, vector<1x16x16xf32>
    %251 = vector.shape_cast %250 : vector<1x16x16xf32> to vector<16x16xf32>
    %252 = arith.mulf %38, %251 : vector<16x16xf32>
    %cst_97 = arith.constant dense<0.000000e+00> : vector<16xf32>
    %253 = vector.multi_reduction <add>, %252, %cst_97 [0] : vector<16x16xf32> to vector<16xf32>
    %254 = vector.shape_cast %253 : vector<16xf32> to vector<1x16xf32>
    %cst_98 = arith.constant dense<0.000000e+00> : vector<1xf32>
    %255 = vector.multi_reduction <add>, %254, %cst_98 [1] : vector<1x16xf32> to vector<1xf32>
    %256 = vector.shape_cast %255 : vector<1xf32> to vector<1x1xf32>
    %c15_i32 = arith.constant 15 : i32
    %257 = vector.broadcast %c15_i32 : i32 to vector<1x16xi32>
    %258 = arith.cmpi eq, %27, %257 : vector<1x16xi32>
    %259 = arith.extui %258 : vector<1x16xi1> to vector<1x16xi32>
    %260 = arith.sitofp %259 : vector<1x16xi32> to vector<1x16xf32>
    %261 = vector.broadcast %256 : vector<1x1xf32> to vector<1x16xf32>
    %262 = arith.mulf %261, %260 : vector<1x16xf32>
    %263 = arith.addf %249, %262 : vector<1x16xf32>
    %cst_99 = arith.constant 3.125000e-02 : f32
    %264 = vector.broadcast %cst_99 : f32 to vector<1x16xf32>
    %265 = arith.mulf %263, %264 : vector<1x16xf32>
    %cst_100 = arith.constant 0.000000e+00 : f32
    %266 = vector.broadcast %cst_100 : f32 to vector<1x16xf32>
    %cst_101 = arith.constant dense<0xFF800000> : vector<1xf32>
    %267 = vector.multi_reduction <maximumf>, %265, %cst_101 [1] : vector<1x16xf32> to vector<1xf32>
    %268 = vector.shape_cast %267 : vector<1xf32> to vector<1x1xf32>
    %269 = vector.broadcast %268 : vector<1x1xf32> to vector<1x16xf32>
    %270 = arith.cmpf oeq, %265, %269 : vector<1x16xf32>
    %c16_i32 = arith.constant 16 : i32
    %271 = vector.broadcast %c16_i32 : i32 to vector<1x16xi32>
    %272 = arith.select %270, %27, %271 : vector<1x16xi1>, vector<1x16xi32>
    %cst_102 = arith.constant dense<2147483647> : vector<1xi32>
    %273 = vector.multi_reduction <minsi>, %272, %cst_102 [1] : vector<1x16xi32> to vector<1xi32>
    %274 = vector.shape_cast %273 : vector<1xi32> to vector<1x1xi32>
    %275 = vector.broadcast %274 : vector<1x1xi32> to vector<1x16xi32>
    %276 = arith.cmpi eq, %27, %275 : vector<1x16xi32>
    %277 = arith.extui %276 : vector<1x16xi1> to vector<1x16xi32>
    %278 = arith.sitofp %277 : vector<1x16xi32> to vector<1x16xf32>
    %279 = arith.addf %266, %278 : vector<1x16xf32>
    %cst_103 = arith.constant 0.000000e+00 : f32
    %280 = vector.broadcast %cst_103 : f32 to vector<1x16xf32>
    %281 = arith.cmpf ogt, %278, %280 : vector<1x16xf32>
    %cst_104 = arith.constant 0xFF800000 : f32
    %282 = vector.broadcast %cst_104 : f32 to vector<1x16xf32>
    %283 = arith.select %281, %282, %265 : vector<1x16xi1>, vector<1x16xf32>
    %cst_105 = arith.constant dense<0xFF800000> : vector<1xf32>
    %284 = vector.multi_reduction <maximumf>, %283, %cst_105 [1] : vector<1x16xf32> to vector<1xf32>
    %285 = vector.shape_cast %284 : vector<1xf32> to vector<1x1xf32>
    %286 = vector.broadcast %285 : vector<1x1xf32> to vector<1x16xf32>
    %287 = arith.cmpf oeq, %283, %286 : vector<1x16xf32>
    %c16_i32_106 = arith.constant 16 : i32
    %288 = vector.broadcast %c16_i32_106 : i32 to vector<1x16xi32>
    %289 = arith.select %287, %27, %288 : vector<1x16xi1>, vector<1x16xi32>
    %cst_107 = arith.constant dense<2147483647> : vector<1xi32>
    %290 = vector.multi_reduction <minsi>, %289, %cst_107 [1] : vector<1x16xi32> to vector<1xi32>
    %291 = vector.shape_cast %290 : vector<1xi32> to vector<1x1xi32>
    %292 = vector.broadcast %291 : vector<1x1xi32> to vector<1x16xi32>
    %293 = arith.cmpi eq, %27, %292 : vector<1x16xi32>
    %294 = arith.extui %293 : vector<1x16xi1> to vector<1x16xi32>
    %295 = arith.sitofp %294 : vector<1x16xi32> to vector<1x16xf32>
    %296 = arith.addf %279, %295 : vector<1x16xf32>
    %cst_108 = arith.constant dense<0xFF800000> : vector<1xf32>
    %297 = vector.multi_reduction <maximumf>, %265, %cst_108 [1] : vector<1x16xf32> to vector<1xf32>
    %298 = vector.shape_cast %297 : vector<1xf32> to vector<1x1xf32>
    %299 = vector.broadcast %298 : vector<1x1xf32> to vector<1x16xf32>
    %300 = arith.subf %265, %299 : vector<1x16xf32>
    %301 = math.exp %300 : vector<1x16xf32>
    %302 = arith.mulf %301, %296 : vector<1x16xf32>
    %cst_109 = arith.constant dense<0.000000e+00> : vector<1xf32>
    %303 = vector.multi_reduction <add>, %302, %cst_109 [1] : vector<1x16xf32> to vector<1xf32>
    %304 = vector.shape_cast %303 : vector<1xf32> to vector<1x1xf32>
    %305 = vector.broadcast %304 : vector<1x1xf32> to vector<1x16xf32>
    %306 = arith.divf %302, %305 : vector<1x16xf32>
    %cst_110 = arith.constant 0.000000e+00 : f32
    %307 = vector.broadcast %cst_110 : f32 to vector<16x16xf32>
    %308 = vector.extract_strided_slice %306 {offsets = [0, 0], sizes = [1, 1], strides = [1, 1]} : vector<1x16xf32> to vector<1x1xf32>
    %c0_111 = arith.constant 0 : index
    %c0_112 = arith.constant 0 : index
    %c0_113 = arith.constant 0 : index
    %309 = vector.load %arg11[%c0_111, %c0_112, %c0_113] : memref<16x16x16xf32, #tpu.memory_space<vmem>>, vector<1x16x16xf32>
    %310 = vector.shape_cast %309 : vector<1x16x16xf32> to vector<16x16xf32>
    %311 = vector.broadcast %308 : vector<1x1xf32> to vector<16x16xf32>
    %312 = arith.mulf %311, %310 : vector<16x16xf32>
    %313 = arith.addf %307, %312 : vector<16x16xf32>
    %314 = vector.extract_strided_slice %306 {offsets = [0, 1], sizes = [1, 1], strides = [1, 1]} : vector<1x16xf32> to vector<1x1xf32>
    %c1_114 = arith.constant 1 : index
    %c0_115 = arith.constant 0 : index
    %c0_116 = arith.constant 0 : index
    %315 = vector.load %arg11[%c1_114, %c0_115, %c0_116] : memref<16x16x16xf32, #tpu.memory_space<vmem>>, vector<1x16x16xf32>
    %316 = vector.shape_cast %315 : vector<1x16x16xf32> to vector<16x16xf32>
    %317 = vector.broadcast %314 : vector<1x1xf32> to vector<16x16xf32>
    %318 = arith.mulf %317, %316 : vector<16x16xf32>
    %319 = arith.addf %313, %318 : vector<16x16xf32>
    %320 = vector.extract_strided_slice %306 {offsets = [0, 2], sizes = [1, 1], strides = [1, 1]} : vector<1x16xf32> to vector<1x1xf32>
    %c2_117 = arith.constant 2 : index
    %c0_118 = arith.constant 0 : index
    %c0_119 = arith.constant 0 : index
    %321 = vector.load %arg11[%c2_117, %c0_118, %c0_119] : memref<16x16x16xf32, #tpu.memory_space<vmem>>, vector<1x16x16xf32>
    %322 = vector.shape_cast %321 : vector<1x16x16xf32> to vector<16x16xf32>
    %323 = vector.broadcast %320 : vector<1x1xf32> to vector<16x16xf32>
    %324 = arith.mulf %323, %322 : vector<16x16xf32>
    %325 = arith.addf %319, %324 : vector<16x16xf32>
    %326 = vector.extract_strided_slice %306 {offsets = [0, 3], sizes = [1, 1], strides = [1, 1]} : vector<1x16xf32> to vector<1x1xf32>
    %c3_120 = arith.constant 3 : index
    %c0_121 = arith.constant 0 : index
    %c0_122 = arith.constant 0 : index
    %327 = vector.load %arg11[%c3_120, %c0_121, %c0_122] : memref<16x16x16xf32, #tpu.memory_space<vmem>>, vector<1x16x16xf32>
    %328 = vector.shape_cast %327 : vector<1x16x16xf32> to vector<16x16xf32>
    %329 = vector.broadcast %326 : vector<1x1xf32> to vector<16x16xf32>
    %330 = arith.mulf %329, %328 : vector<16x16xf32>
    %331 = arith.addf %325, %330 : vector<16x16xf32>
    %332 = vector.extract_strided_slice %306 {offsets = [0, 4], sizes = [1, 1], strides = [1, 1]} : vector<1x16xf32> to vector<1x1xf32>
    %c4_123 = arith.constant 4 : index
    %c0_124 = arith.constant 0 : index
    %c0_125 = arith.constant 0 : index
    %333 = vector.load %arg11[%c4_123, %c0_124, %c0_125] : memref<16x16x16xf32, #tpu.memory_space<vmem>>, vector<1x16x16xf32>
    %334 = vector.shape_cast %333 : vector<1x16x16xf32> to vector<16x16xf32>
    %335 = vector.broadcast %332 : vector<1x1xf32> to vector<16x16xf32>
    %336 = arith.mulf %335, %334 : vector<16x16xf32>
    %337 = arith.addf %331, %336 : vector<16x16xf32>
    %338 = vector.extract_strided_slice %306 {offsets = [0, 5], sizes = [1, 1], strides = [1, 1]} : vector<1x16xf32> to vector<1x1xf32>
    %c5_126 = arith.constant 5 : index
    %c0_127 = arith.constant 0 : index
    %c0_128 = arith.constant 0 : index
    %339 = vector.load %arg11[%c5_126, %c0_127, %c0_128] : memref<16x16x16xf32, #tpu.memory_space<vmem>>, vector<1x16x16xf32>
    %340 = vector.shape_cast %339 : vector<1x16x16xf32> to vector<16x16xf32>
    %341 = vector.broadcast %338 : vector<1x1xf32> to vector<16x16xf32>
    %342 = arith.mulf %341, %340 : vector<16x16xf32>
    %343 = arith.addf %337, %342 : vector<16x16xf32>
    %344 = vector.extract_strided_slice %306 {offsets = [0, 6], sizes = [1, 1], strides = [1, 1]} : vector<1x16xf32> to vector<1x1xf32>
    %c6_129 = arith.constant 6 : index
    %c0_130 = arith.constant 0 : index
    %c0_131 = arith.constant 0 : index
    %345 = vector.load %arg11[%c6_129, %c0_130, %c0_131] : memref<16x16x16xf32, #tpu.memory_space<vmem>>, vector<1x16x16xf32>
    %346 = vector.shape_cast %345 : vector<1x16x16xf32> to vector<16x16xf32>
    %347 = vector.broadcast %344 : vector<1x1xf32> to vector<16x16xf32>
    %348 = arith.mulf %347, %346 : vector<16x16xf32>
    %349 = arith.addf %343, %348 : vector<16x16xf32>
    %350 = vector.extract_strided_slice %306 {offsets = [0, 7], sizes = [1, 1], strides = [1, 1]} : vector<1x16xf32> to vector<1x1xf32>
    %c7_132 = arith.constant 7 : index
    %c0_133 = arith.constant 0 : index
    %c0_134 = arith.constant 0 : index
    %351 = vector.load %arg11[%c7_132, %c0_133, %c0_134] : memref<16x16x16xf32, #tpu.memory_space<vmem>>, vector<1x16x16xf32>
    %352 = vector.shape_cast %351 : vector<1x16x16xf32> to vector<16x16xf32>
    %353 = vector.broadcast %350 : vector<1x1xf32> to vector<16x16xf32>
    %354 = arith.mulf %353, %352 : vector<16x16xf32>
    %355 = arith.addf %349, %354 : vector<16x16xf32>
    %356 = vector.extract_strided_slice %306 {offsets = [0, 8], sizes = [1, 1], strides = [1, 1]} : vector<1x16xf32> to vector<1x1xf32>
    %c8_135 = arith.constant 8 : index
    %c0_136 = arith.constant 0 : index
    %c0_137 = arith.constant 0 : index
    %357 = vector.load %arg11[%c8_135, %c0_136, %c0_137] : memref<16x16x16xf32, #tpu.memory_space<vmem>>, vector<1x16x16xf32>
    %358 = vector.shape_cast %357 : vector<1x16x16xf32> to vector<16x16xf32>
    %359 = vector.broadcast %356 : vector<1x1xf32> to vector<16x16xf32>
    %360 = arith.mulf %359, %358 : vector<16x16xf32>
    %361 = arith.addf %355, %360 : vector<16x16xf32>
    %362 = vector.extract_strided_slice %306 {offsets = [0, 9], sizes = [1, 1], strides = [1, 1]} : vector<1x16xf32> to vector<1x1xf32>
    %c9_138 = arith.constant 9 : index
    %c0_139 = arith.constant 0 : index
    %c0_140 = arith.constant 0 : index
    %363 = vector.load %arg11[%c9_138, %c0_139, %c0_140] : memref<16x16x16xf32, #tpu.memory_space<vmem>>, vector<1x16x16xf32>
    %364 = vector.shape_cast %363 : vector<1x16x16xf32> to vector<16x16xf32>
    %365 = vector.broadcast %362 : vector<1x1xf32> to vector<16x16xf32>
    %366 = arith.mulf %365, %364 : vector<16x16xf32>
    %367 = arith.addf %361, %366 : vector<16x16xf32>
    %368 = vector.extract_strided_slice %306 {offsets = [0, 10], sizes = [1, 1], strides = [1, 1]} : vector<1x16xf32> to vector<1x1xf32>
    %c10_141 = arith.constant 10 : index
    %c0_142 = arith.constant 0 : index
    %c0_143 = arith.constant 0 : index
    %369 = vector.load %arg11[%c10_141, %c0_142, %c0_143] : memref<16x16x16xf32, #tpu.memory_space<vmem>>, vector<1x16x16xf32>
    %370 = vector.shape_cast %369 : vector<1x16x16xf32> to vector<16x16xf32>
    %371 = vector.broadcast %368 : vector<1x1xf32> to vector<16x16xf32>
    %372 = arith.mulf %371, %370 : vector<16x16xf32>
    %373 = arith.addf %367, %372 : vector<16x16xf32>
    %374 = vector.extract_strided_slice %306 {offsets = [0, 11], sizes = [1, 1], strides = [1, 1]} : vector<1x16xf32> to vector<1x1xf32>
    %c11_144 = arith.constant 11 : index
    %c0_145 = arith.constant 0 : index
    %c0_146 = arith.constant 0 : index
    %375 = vector.load %arg11[%c11_144, %c0_145, %c0_146] : memref<16x16x16xf32, #tpu.memory_space<vmem>>, vector<1x16x16xf32>
    %376 = vector.shape_cast %375 : vector<1x16x16xf32> to vector<16x16xf32>
    %377 = vector.broadcast %374 : vector<1x1xf32> to vector<16x16xf32>
    %378 = arith.mulf %377, %376 : vector<16x16xf32>
    %379 = arith.addf %373, %378 : vector<16x16xf32>
    %380 = vector.extract_strided_slice %306 {offsets = [0, 12], sizes = [1, 1], strides = [1, 1]} : vector<1x16xf32> to vector<1x1xf32>
    %c12_147 = arith.constant 12 : index
    %c0_148 = arith.constant 0 : index
    %c0_149 = arith.constant 0 : index
    %381 = vector.load %arg11[%c12_147, %c0_148, %c0_149] : memref<16x16x16xf32, #tpu.memory_space<vmem>>, vector<1x16x16xf32>
    %382 = vector.shape_cast %381 : vector<1x16x16xf32> to vector<16x16xf32>
    %383 = vector.broadcast %380 : vector<1x1xf32> to vector<16x16xf32>
    %384 = arith.mulf %383, %382 : vector<16x16xf32>
    %385 = arith.addf %379, %384 : vector<16x16xf32>
    %386 = vector.extract_strided_slice %306 {offsets = [0, 13], sizes = [1, 1], strides = [1, 1]} : vector<1x16xf32> to vector<1x1xf32>
    %c13_150 = arith.constant 13 : index
    %c0_151 = arith.constant 0 : index
    %c0_152 = arith.constant 0 : index
    %387 = vector.load %arg11[%c13_150, %c0_151, %c0_152] : memref<16x16x16xf32, #tpu.memory_space<vmem>>, vector<1x16x16xf32>
    %388 = vector.shape_cast %387 : vector<1x16x16xf32> to vector<16x16xf32>
    %389 = vector.broadcast %386 : vector<1x1xf32> to vector<16x16xf32>
    %390 = arith.mulf %389, %388 : vector<16x16xf32>
    %391 = arith.addf %385, %390 : vector<16x16xf32>
    %392 = vector.extract_strided_slice %306 {offsets = [0, 14], sizes = [1, 1], strides = [1, 1]} : vector<1x16xf32> to vector<1x1xf32>
    %c14_153 = arith.constant 14 : index
    %c0_154 = arith.constant 0 : index
    %c0_155 = arith.constant 0 : index
    %393 = vector.load %arg11[%c14_153, %c0_154, %c0_155] : memref<16x16x16xf32, #tpu.memory_space<vmem>>, vector<1x16x16xf32>
    %394 = vector.shape_cast %393 : vector<1x16x16xf32> to vector<16x16xf32>
    %395 = vector.broadcast %392 : vector<1x1xf32> to vector<16x16xf32>
    %396 = arith.mulf %395, %394 : vector<16x16xf32>
    %397 = arith.addf %391, %396 : vector<16x16xf32>
    %398 = vector.extract_strided_slice %306 {offsets = [0, 15], sizes = [1, 1], strides = [1, 1]} : vector<1x16xf32> to vector<1x1xf32>
    %c15_156 = arith.constant 15 : index
    %c0_157 = arith.constant 0 : index
    %c0_158 = arith.constant 0 : index
    %399 = vector.load %arg11[%c15_156, %c0_157, %c0_158] : memref<16x16x16xf32, #tpu.memory_space<vmem>>, vector<1x16x16xf32>
    %400 = vector.shape_cast %399 : vector<1x16x16xf32> to vector<16x16xf32>
    %401 = vector.broadcast %398 : vector<1x1xf32> to vector<16x16xf32>
    %402 = arith.mulf %401, %400 : vector<16x16xf32>
    %403 = arith.addf %397, %402 : vector<16x16xf32>
    %cst_159 = arith.constant dense<0.000000e+00> : vector<16x32xf32>
    %404 = tpu.matmul %403, %37, %cst_159 {dimension_numbers = #tpu.dot_dimension_numbers<[1], [0], [0], [1], [0, 0, 1, 1], [], []>} : vector<16x16xf32>, vector<16x32xf32>, vector<16x32xf32> -> vector<16x32xf32>
    %c0_160 = arith.constant 0 : index
    %c0_161 = arith.constant 0 : index
    %405 = vector.load %arg15[%c0_160, %c0_161] : memref<32x32xf32, #tpu.memory_space<vmem>>, vector<16x32xf32>
    tpu.vector_store %arg15[%c0_160, %c0_161], %404 {strides = array<i32>} : memref<32x32xf32, #tpu.memory_space<vmem>>, vector<16x32xf32>,
    %406 = vector.extract_strided_slice %34 {offsets = [16, 0], sizes = [16, 32], strides = [1, 1]} : vector<32x96xf32> to vector<16x32xf32>
    %407 = vector.extract_strided_slice %34 {offsets = [16, 32], sizes = [16, 32], strides = [1, 1]} : vector<32x96xf32> to vector<16x32xf32>
    %408 = vector.extract_strided_slice %34 {offsets = [16, 64], sizes = [16, 32], strides = [1, 1]} : vector<32x96xf32> to vector<16x32xf32>
    %cst_162 = arith.constant dense<0.000000e+00> : vector<16x16xf32>
    %409 = tpu.matmul %406, %407, %cst_162 {dimension_numbers = #tpu.dot_dimension_numbers<[1], [1], [0], [0], [0, 0, 1, 0], [], []>} : vector<16x32xf32>, vector<16x32xf32>, vector<16x16xf32> -> vector<16x16xf32>
    %cst_163 = arith.constant 0.000000e+00 : f32
    %410 = vector.broadcast %cst_163 : f32 to vector<1x16xf32>
    %c0_164 = arith.constant 0 : index
    %c0_165 = arith.constant 0 : index
    %c0_166 = arith.constant 0 : index
    %411 = vector.load %arg11[%c0_164, %c0_165, %c0_166] : memref<16x16x16xf32, #tpu.memory_space<vmem>>, vector<1x16x16xf32>
    %412 = vector.shape_cast %411 : vector<1x16x16xf32> to vector<16x16xf32>
    %413 = arith.mulf %409, %412 : vector<16x16xf32>
    %cst_167 = arith.constant dense<0.000000e+00> : vector<16xf32>
    %414 = vector.multi_reduction <add>, %413, %cst_167 [0] : vector<16x16xf32> to vector<16xf32>
    %415 = vector.shape_cast %414 : vector<16xf32> to vector<1x16xf32>
    %cst_168 = arith.constant dense<0.000000e+00> : vector<1xf32>
    %416 = vector.multi_reduction <add>, %415, %cst_168 [1] : vector<1x16xf32> to vector<1xf32>
    %417 = vector.shape_cast %416 : vector<1xf32> to vector<1x1xf32>
    %c0_i32_169 = arith.constant 0 : i32
    %418 = vector.broadcast %c0_i32_169 : i32 to vector<1x16xi32>
    %419 = arith.cmpi eq, %27, %418 : vector<1x16xi32>
    %420 = arith.extui %419 : vector<1x16xi1> to vector<1x16xi32>
    %421 = arith.sitofp %420 : vector<1x16xi32> to vector<1x16xf32>
    %422 = vector.broadcast %417 : vector<1x1xf32> to vector<1x16xf32>
    %423 = arith.mulf %422, %421 : vector<1x16xf32>
    %424 = arith.addf %410, %423 : vector<1x16xf32>
    %c15_170 = arith.constant 15 : index
    %c0_171 = arith.constant 0 : index
    %c0_172 = arith.constant 0 : index
    %425 = vector.load %arg11[%c15_170, %c0_171, %c0_172] : memref<16x16x16xf32, #tpu.memory_space<vmem>>, vector<1x16x16xf32>
    %426 = vector.shape_cast %425 : vector<1x16x16xf32> to vector<16x16xf32>
    %427 = arith.mulf %409, %426 : vector<16x16xf32>
    %cst_173 = arith.constant dense<0.000000e+00> : vector<16xf32>
    %428 = vector.multi_reduction <add>, %427, %cst_173 [0] : vector<16x16xf32> to vector<16xf32>
    %429 = vector.shape_cast %428 : vector<16xf32> to vector<1x16xf32>
    %cst_174 = arith.constant dense<0.000000e+00> : vector<1xf32>
    %430 = vector.multi_reduction <add>, %429, %cst_174 [1] : vector<1x16xf32> to vector<1xf32>
    %431 = vector.shape_cast %430 : vector<1xf32> to vector<1x1xf32>
    %c1_i32_175 = arith.constant 1 : i32
    %432 = vector.broadcast %c1_i32_175 : i32 to vector<1x16xi32>
    %433 = arith.cmpi eq, %27, %432 : vector<1x16xi32>
    %434 = arith.extui %433 : vector<1x16xi1> to vector<1x16xi32>
    %435 = arith.sitofp %434 : vector<1x16xi32> to vector<1x16xf32>
    %436 = vector.broadcast %431 : vector<1x1xf32> to vector<1x16xf32>
    %437 = arith.mulf %436, %435 : vector<1x16xf32>
    %438 = arith.addf %424, %437 : vector<1x16xf32>
    %c14_176 = arith.constant 14 : index
    %c0_177 = arith.constant 0 : index
    %c0_178 = arith.constant 0 : index
    %439 = vector.load %arg11[%c14_176, %c0_177, %c0_178] : memref<16x16x16xf32, #tpu.memory_space<vmem>>, vector<1x16x16xf32>
    %440 = vector.shape_cast %439 : vector<1x16x16xf32> to vector<16x16xf32>
    %441 = arith.mulf %409, %440 : vector<16x16xf32>
    %cst_179 = arith.constant dense<0.000000e+00> : vector<16xf32>
    %442 = vector.multi_reduction <add>, %441, %cst_179 [0] : vector<16x16xf32> to vector<16xf32>
    %443 = vector.shape_cast %442 : vector<16xf32> to vector<1x16xf32>
    %cst_180 = arith.constant dense<0.000000e+00> : vector<1xf32>
    %444 = vector.multi_reduction <add>, %443, %cst_180 [1] : vector<1x16xf32> to vector<1xf32>
    %445 = vector.shape_cast %444 : vector<1xf32> to vector<1x1xf32>
    %c2_i32_181 = arith.constant 2 : i32
    %446 = vector.broadcast %c2_i32_181 : i32 to vector<1x16xi32>
    %447 = arith.cmpi eq, %27, %446 : vector<1x16xi32>
    %448 = arith.extui %447 : vector<1x16xi1> to vector<1x16xi32>
    %449 = arith.sitofp %448 : vector<1x16xi32> to vector<1x16xf32>
    %450 = vector.broadcast %445 : vector<1x1xf32> to vector<1x16xf32>
    %451 = arith.mulf %450, %449 : vector<1x16xf32>
    %452 = arith.addf %438, %451 : vector<1x16xf32>
    %c13_182 = arith.constant 13 : index
    %c0_183 = arith.constant 0 : index
    %c0_184 = arith.constant 0 : index
    %453 = vector.load %arg11[%c13_182, %c0_183, %c0_184] : memref<16x16x16xf32, #tpu.memory_space<vmem>>, vector<1x16x16xf32>
    %454 = vector.shape_cast %453 : vector<1x16x16xf32> to vector<16x16xf32>
    %455 = arith.mulf %409, %454 : vector<16x16xf32>
    %cst_185 = arith.constant dense<0.000000e+00> : vector<16xf32>
    %456 = vector.multi_reduction <add>, %455, %cst_185 [0] : vector<16x16xf32> to vector<16xf32>
    %457 = vector.shape_cast %456 : vector<16xf32> to vector<1x16xf32>
    %cst_186 = arith.constant dense<0.000000e+00> : vector<1xf32>
    %458 = vector.multi_reduction <add>, %457, %cst_186 [1] : vector<1x16xf32> to vector<1xf32>
    %459 = vector.shape_cast %458 : vector<1xf32> to vector<1x1xf32>
    %c3_i32_187 = arith.constant 3 : i32
    %460 = vector.broadcast %c3_i32_187 : i32 to vector<1x16xi32>
    %461 = arith.cmpi eq, %27, %460 : vector<1x16xi32>
    %462 = arith.extui %461 : vector<1x16xi1> to vector<1x16xi32>
    %463 = arith.sitofp %462 : vector<1x16xi32> to vector<1x16xf32>
    %464 = vector.broadcast %459 : vector<1x1xf32> to vector<1x16xf32>
    %465 = arith.mulf %464, %463 : vector<1x16xf32>
    %466 = arith.addf %452, %465 : vector<1x16xf32>
    %c12_188 = arith.constant 12 : index
    %c0_189 = arith.constant 0 : index
    %c0_190 = arith.constant 0 : index
    %467 = vector.load %arg11[%c12_188, %c0_189, %c0_190] : memref<16x16x16xf32, #tpu.memory_space<vmem>>, vector<1x16x16xf32>
    %468 = vector.shape_cast %467 : vector<1x16x16xf32> to vector<16x16xf32>
    %469 = arith.mulf %409, %468 : vector<16x16xf32>
    %cst_191 = arith.constant dense<0.000000e+00> : vector<16xf32>
    %470 = vector.multi_reduction <add>, %469, %cst_191 [0] : vector<16x16xf32> to vector<16xf32>
    %471 = vector.shape_cast %470 : vector<16xf32> to vector<1x16xf32>
    %cst_192 = arith.constant dense<0.000000e+00> : vector<1xf32>
    %472 = vector.multi_reduction <add>, %471, %cst_192 [1] : vector<1x16xf32> to vector<1xf32>
    %473 = vector.shape_cast %472 : vector<1xf32> to vector<1x1xf32>
    %c4_i32_193 = arith.constant 4 : i32
    %474 = vector.broadcast %c4_i32_193 : i32 to vector<1x16xi32>
    %475 = arith.cmpi eq, %27, %474 : vector<1x16xi32>
    %476 = arith.extui %475 : vector<1x16xi1> to vector<1x16xi32>
    %477 = arith.sitofp %476 : vector<1x16xi32> to vector<1x16xf32>
    %478 = vector.broadcast %473 : vector<1x1xf32> to vector<1x16xf32>
    %479 = arith.mulf %478, %477 : vector<1x16xf32>
    %480 = arith.addf %466, %479 : vector<1x16xf32>
    %c11_194 = arith.constant 11 : index
    %c0_195 = arith.constant 0 : index
    %c0_196 = arith.constant 0 : index
    %481 = vector.load %arg11[%c11_194, %c0_195, %c0_196] : memref<16x16x16xf32, #tpu.memory_space<vmem>>, vector<1x16x16xf32>
    %482 = vector.shape_cast %481 : vector<1x16x16xf32> to vector<16x16xf32>
    %483 = arith.mulf %409, %482 : vector<16x16xf32>
    %cst_197 = arith.constant dense<0.000000e+00> : vector<16xf32>
    %484 = vector.multi_reduction <add>, %483, %cst_197 [0] : vector<16x16xf32> to vector<16xf32>
    %485 = vector.shape_cast %484 : vector<16xf32> to vector<1x16xf32>
    %cst_198 = arith.constant dense<0.000000e+00> : vector<1xf32>
    %486 = vector.multi_reduction <add>, %485, %cst_198 [1] : vector<1x16xf32> to vector<1xf32>
    %487 = vector.shape_cast %486 : vector<1xf32> to vector<1x1xf32>
    %c5_i32_199 = arith.constant 5 : i32
    %488 = vector.broadcast %c5_i32_199 : i32 to vector<1x16xi32>
    %489 = arith.cmpi eq, %27, %488 : vector<1x16xi32>
    %490 = arith.extui %489 : vector<1x16xi1> to vector<1x16xi32>
    %491 = arith.sitofp %490 : vector<1x16xi32> to vector<1x16xf32>
    %492 = vector.broadcast %487 : vector<1x1xf32> to vector<1x16xf32>
    %493 = arith.mulf %492, %491 : vector<1x16xf32>
    %494 = arith.addf %480, %493 : vector<1x16xf32>
    %c10_200 = arith.constant 10 : index
    %c0_201 = arith.constant 0 : index
    %c0_202 = arith.constant 0 : index
    %495 = vector.load %arg11[%c10_200, %c0_201, %c0_202] : memref<16x16x16xf32, #tpu.memory_space<vmem>>, vector<1x16x16xf32>
    %496 = vector.shape_cast %495 : vector<1x16x16xf32> to vector<16x16xf32>
    %497 = arith.mulf %409, %496 : vector<16x16xf32>
    %cst_203 = arith.constant dense<0.000000e+00> : vector<16xf32>
    %498 = vector.multi_reduction <add>, %497, %cst_203 [0] : vector<16x16xf32> to vector<16xf32>
    %499 = vector.shape_cast %498 : vector<16xf32> to vector<1x16xf32>
    %cst_204 = arith.constant dense<0.000000e+00> : vector<1xf32>
    %500 = vector.multi_reduction <add>, %499, %cst_204 [1] : vector<1x16xf32> to vector<1xf32>
    %501 = vector.shape_cast %500 : vector<1xf32> to vector<1x1xf32>
    %c6_i32_205 = arith.constant 6 : i32
    %502 = vector.broadcast %c6_i32_205 : i32 to vector<1x16xi32>
    %503 = arith.cmpi eq, %27, %502 : vector<1x16xi32>
    %504 = arith.extui %503 : vector<1x16xi1> to vector<1x16xi32>
    %505 = arith.sitofp %504 : vector<1x16xi32> to vector<1x16xf32>
    %506 = vector.broadcast %501 : vector<1x1xf32> to vector<1x16xf32>
    %507 = arith.mulf %506, %505 : vector<1x16xf32>
    %508 = arith.addf %494, %507 : vector<1x16xf32>
    %c9_206 = arith.constant 9 : index
    %c0_207 = arith.constant 0 : index
    %c0_208 = arith.constant 0 : index
    %509 = vector.load %arg11[%c9_206, %c0_207, %c0_208] : memref<16x16x16xf32, #tpu.memory_space<vmem>>, vector<1x16x16xf32>
    %510 = vector.shape_cast %509 : vector<1x16x16xf32> to vector<16x16xf32>
    %511 = arith.mulf %409, %510 : vector<16x16xf32>
    %cst_209 = arith.constant dense<0.000000e+00> : vector<16xf32>
    %512 = vector.multi_reduction <add>, %511, %cst_209 [0] : vector<16x16xf32> to vector<16xf32>
    %513 = vector.shape_cast %512 : vector<16xf32> to vector<1x16xf32>
    %cst_210 = arith.constant dense<0.000000e+00> : vector<1xf32>
    %514 = vector.multi_reduction <add>, %513, %cst_210 [1] : vector<1x16xf32> to vector<1xf32>
    %515 = vector.shape_cast %514 : vector<1xf32> to vector<1x1xf32>
    %c7_i32_211 = arith.constant 7 : i32
    %516 = vector.broadcast %c7_i32_211 : i32 to vector<1x16xi32>
    %517 = arith.cmpi eq, %27, %516 : vector<1x16xi32>
    %518 = arith.extui %517 : vector<1x16xi1> to vector<1x16xi32>
    %519 = arith.sitofp %518 : vector<1x16xi32> to vector<1x16xf32>
    %520 = vector.broadcast %515 : vector<1x1xf32> to vector<1x16xf32>
    %521 = arith.mulf %520, %519 : vector<1x16xf32>
    %522 = arith.addf %508, %521 : vector<1x16xf32>
    %c8_212 = arith.constant 8 : index
    %c0_213 = arith.constant 0 : index
    %c0_214 = arith.constant 0 : index
    %523 = vector.load %arg11[%c8_212, %c0_213, %c0_214] : memref<16x16x16xf32, #tpu.memory_space<vmem>>, vector<1x16x16xf32>
    %524 = vector.shape_cast %523 : vector<1x16x16xf32> to vector<16x16xf32>
    %525 = arith.mulf %409, %524 : vector<16x16xf32>
    %cst_215 = arith.constant dense<0.000000e+00> : vector<16xf32>
    %526 = vector.multi_reduction <add>, %525, %cst_215 [0] : vector<16x16xf32> to vector<16xf32>
    %527 = vector.shape_cast %526 : vector<16xf32> to vector<1x16xf32>
    %cst_216 = arith.constant dense<0.000000e+00> : vector<1xf32>
    %528 = vector.multi_reduction <add>, %527, %cst_216 [1] : vector<1x16xf32> to vector<1xf32>
    %529 = vector.shape_cast %528 : vector<1xf32> to vector<1x1xf32>
    %c8_i32_217 = arith.constant 8 : i32
    %530 = vector.broadcast %c8_i32_217 : i32 to vector<1x16xi32>
    %531 = arith.cmpi eq, %27, %530 : vector<1x16xi32>
    %532 = arith.extui %531 : vector<1x16xi1> to vector<1x16xi32>
    %533 = arith.sitofp %532 : vector<1x16xi32> to vector<1x16xf32>
    %534 = vector.broadcast %529 : vector<1x1xf32> to vector<1x16xf32>
    %535 = arith.mulf %534, %533 : vector<1x16xf32>
    %536 = arith.addf %522, %535 : vector<1x16xf32>
    %c7_218 = arith.constant 7 : index
    %c0_219 = arith.constant 0 : index
    %c0_220 = arith.constant 0 : index
    %537 = vector.load %arg11[%c7_218, %c0_219, %c0_220] : memref<16x16x16xf32, #tpu.memory_space<vmem>>, vector<1x16x16xf32>
    %538 = vector.shape_cast %537 : vector<1x16x16xf32> to vector<16x16xf32>
    %539 = arith.mulf %409, %538 : vector<16x16xf32>
    %cst_221 = arith.constant dense<0.000000e+00> : vector<16xf32>
    %540 = vector.multi_reduction <add>, %539, %cst_221 [0] : vector<16x16xf32> to vector<16xf32>
    %541 = vector.shape_cast %540 : vector<16xf32> to vector<1x16xf32>
    %cst_222 = arith.constant dense<0.000000e+00> : vector<1xf32>
    %542 = vector.multi_reduction <add>, %541, %cst_222 [1] : vector<1x16xf32> to vector<1xf32>
    %543 = vector.shape_cast %542 : vector<1xf32> to vector<1x1xf32>
    %c9_i32_223 = arith.constant 9 : i32
    %544 = vector.broadcast %c9_i32_223 : i32 to vector<1x16xi32>
    %545 = arith.cmpi eq, %27, %544 : vector<1x16xi32>
    %546 = arith.extui %545 : vector<1x16xi1> to vector<1x16xi32>
    %547 = arith.sitofp %546 : vector<1x16xi32> to vector<1x16xf32>
    %548 = vector.broadcast %543 : vector<1x1xf32> to vector<1x16xf32>
    %549 = arith.mulf %548, %547 : vector<1x16xf32>
    %550 = arith.addf %536, %549 : vector<1x16xf32>
    %c6_224 = arith.constant 6 : index
    %c0_225 = arith.constant 0 : index
    %c0_226 = arith.constant 0 : index
    %551 = vector.load %arg11[%c6_224, %c0_225, %c0_226] : memref<16x16x16xf32, #tpu.memory_space<vmem>>, vector<1x16x16xf32>
    %552 = vector.shape_cast %551 : vector<1x16x16xf32> to vector<16x16xf32>
    %553 = arith.mulf %409, %552 : vector<16x16xf32>
    %cst_227 = arith.constant dense<0.000000e+00> : vector<16xf32>
    %554 = vector.multi_reduction <add>, %553, %cst_227 [0] : vector<16x16xf32> to vector<16xf32>
    %555 = vector.shape_cast %554 : vector<16xf32> to vector<1x16xf32>
    %cst_228 = arith.constant dense<0.000000e+00> : vector<1xf32>
    %556 = vector.multi_reduction <add>, %555, %cst_228 [1] : vector<1x16xf32> to vector<1xf32>
    %557 = vector.shape_cast %556 : vector<1xf32> to vector<1x1xf32>
    %c10_i32_229 = arith.constant 10 : i32
    %558 = vector.broadcast %c10_i32_229 : i32 to vector<1x16xi32>
    %559 = arith.cmpi eq, %27, %558 : vector<1x16xi32>
    %560 = arith.extui %559 : vector<1x16xi1> to vector<1x16xi32>
    %561 = arith.sitofp %560 : vector<1x16xi32> to vector<1x16xf32>
    %562 = vector.broadcast %557 : vector<1x1xf32> to vector<1x16xf32>
    %563 = arith.mulf %562, %561 : vector<1x16xf32>
    %564 = arith.addf %550, %563 : vector<1x16xf32>
    %c5_230 = arith.constant 5 : index
    %c0_231 = arith.constant 0 : index
    %c0_232 = arith.constant 0 : index
    %565 = vector.load %arg11[%c5_230, %c0_231, %c0_232] : memref<16x16x16xf32, #tpu.memory_space<vmem>>, vector<1x16x16xf32>
    %566 = vector.shape_cast %565 : vector<1x16x16xf32> to vector<16x16xf32>
    %567 = arith.mulf %409, %566 : vector<16x16xf32>
    %cst_233 = arith.constant dense<0.000000e+00> : vector<16xf32>
    %568 = vector.multi_reduction <add>, %567, %cst_233 [0] : vector<16x16xf32> to vector<16xf32>
    %569 = vector.shape_cast %568 : vector<16xf32> to vector<1x16xf32>
    %cst_234 = arith.constant dense<0.000000e+00> : vector<1xf32>
    %570 = vector.multi_reduction <add>, %569, %cst_234 [1] : vector<1x16xf32> to vector<1xf32>
    %571 = vector.shape_cast %570 : vector<1xf32> to vector<1x1xf32>
    %c11_i32_235 = arith.constant 11 : i32
    %572 = vector.broadcast %c11_i32_235 : i32 to vector<1x16xi32>
    %573 = arith.cmpi eq, %27, %572 : vector<1x16xi32>
    %574 = arith.extui %573 : vector<1x16xi1> to vector<1x16xi32>
    %575 = arith.sitofp %574 : vector<1x16xi32> to vector<1x16xf32>
    %576 = vector.broadcast %571 : vector<1x1xf32> to vector<1x16xf32>
    %577 = arith.mulf %576, %575 : vector<1x16xf32>
    %578 = arith.addf %564, %577 : vector<1x16xf32>
    %c4_236 = arith.constant 4 : index
    %c0_237 = arith.constant 0 : index
    %c0_238 = arith.constant 0 : index
    %579 = vector.load %arg11[%c4_236, %c0_237, %c0_238] : memref<16x16x16xf32, #tpu.memory_space<vmem>>, vector<1x16x16xf32>
    %580 = vector.shape_cast %579 : vector<1x16x16xf32> to vector<16x16xf32>
    %581 = arith.mulf %409, %580 : vector<16x16xf32>
    %cst_239 = arith.constant dense<0.000000e+00> : vector<16xf32>
    %582 = vector.multi_reduction <add>, %581, %cst_239 [0] : vector<16x16xf32> to vector<16xf32>
    %583 = vector.shape_cast %582 : vector<16xf32> to vector<1x16xf32>
    %cst_240 = arith.constant dense<0.000000e+00> : vector<1xf32>
    %584 = vector.multi_reduction <add>, %583, %cst_240 [1] : vector<1x16xf32> to vector<1xf32>
    %585 = vector.shape_cast %584 : vector<1xf32> to vector<1x1xf32>
    %c12_i32_241 = arith.constant 12 : i32
    %586 = vector.broadcast %c12_i32_241 : i32 to vector<1x16xi32>
    %587 = arith.cmpi eq, %27, %586 : vector<1x16xi32>
    %588 = arith.extui %587 : vector<1x16xi1> to vector<1x16xi32>
    %589 = arith.sitofp %588 : vector<1x16xi32> to vector<1x16xf32>
    %590 = vector.broadcast %585 : vector<1x1xf32> to vector<1x16xf32>
    %591 = arith.mulf %590, %589 : vector<1x16xf32>
    %592 = arith.addf %578, %591 : vector<1x16xf32>
    %c3_242 = arith.constant 3 : index
    %c0_243 = arith.constant 0 : index
    %c0_244 = arith.constant 0 : index
    %593 = vector.load %arg11[%c3_242, %c0_243, %c0_244] : memref<16x16x16xf32, #tpu.memory_space<vmem>>, vector<1x16x16xf32>
    %594 = vector.shape_cast %593 : vector<1x16x16xf32> to vector<16x16xf32>
    %595 = arith.mulf %409, %594 : vector<16x16xf32>
    %cst_245 = arith.constant dense<0.000000e+00> : vector<16xf32>
    %596 = vector.multi_reduction <add>, %595, %cst_245 [0] : vector<16x16xf32> to vector<16xf32>
    %597 = vector.shape_cast %596 : vector<16xf32> to vector<1x16xf32>
    %cst_246 = arith.constant dense<0.000000e+00> : vector<1xf32>
    %598 = vector.multi_reduction <add>, %597, %cst_246 [1] : vector<1x16xf32> to vector<1xf32>
    %599 = vector.shape_cast %598 : vector<1xf32> to vector<1x1xf32>
    %c13_i32_247 = arith.constant 13 : i32
    %600 = vector.broadcast %c13_i32_247 : i32 to vector<1x16xi32>
    %601 = arith.cmpi eq, %27, %600 : vector<1x16xi32>
    %602 = arith.extui %601 : vector<1x16xi1> to vector<1x16xi32>
    %603 = arith.sitofp %602 : vector<1x16xi32> to vector<1x16xf32>
    %604 = vector.broadcast %599 : vector<1x1xf32> to vector<1x16xf32>
    %605 = arith.mulf %604, %603 : vector<1x16xf32>
    %606 = arith.addf %592, %605 : vector<1x16xf32>
    %c2_248 = arith.constant 2 : index
    %c0_249 = arith.constant 0 : index
    %c0_250 = arith.constant 0 : index
    %607 = vector.load %arg11[%c2_248, %c0_249, %c0_250] : memref<16x16x16xf32, #tpu.memory_space<vmem>>, vector<1x16x16xf32>
    %608 = vector.shape_cast %607 : vector<1x16x16xf32> to vector<16x16xf32>
    %609 = arith.mulf %409, %608 : vector<16x16xf32>
    %cst_251 = arith.constant dense<0.000000e+00> : vector<16xf32>
    %610 = vector.multi_reduction <add>, %609, %cst_251 [0] : vector<16x16xf32> to vector<16xf32>
    %611 = vector.shape_cast %610 : vector<16xf32> to vector<1x16xf32>
    %cst_252 = arith.constant dense<0.000000e+00> : vector<1xf32>
    %612 = vector.multi_reduction <add>, %611, %cst_252 [1] : vector<1x16xf32> to vector<1xf32>
    %613 = vector.shape_cast %612 : vector<1xf32> to vector<1x1xf32>
    %c14_i32_253 = arith.constant 14 : i32
    %614 = vector.broadcast %c14_i32_253 : i32 to vector<1x16xi32>
    %615 = arith.cmpi eq, %27, %614 : vector<1x16xi32>
    %616 = arith.extui %615 : vector<1x16xi1> to vector<1x16xi32>
    %617 = arith.sitofp %616 : vector<1x16xi32> to vector<1x16xf32>
    %618 = vector.broadcast %613 : vector<1x1xf32> to vector<1x16xf32>
    %619 = arith.mulf %618, %617 : vector<1x16xf32>
    %620 = arith.addf %606, %619 : vector<1x16xf32>
    %c1_254 = arith.constant 1 : index
    %c0_255 = arith.constant 0 : index
    %c0_256 = arith.constant 0 : index
    %621 = vector.load %arg11[%c1_254, %c0_255, %c0_256] : memref<16x16x16xf32, #tpu.memory_space<vmem>>, vector<1x16x16xf32>
    %622 = vector.shape_cast %621 : vector<1x16x16xf32> to vector<16x16xf32>
    %623 = arith.mulf %409, %622 : vector<16x16xf32>
    %cst_257 = arith.constant dense<0.000000e+00> : vector<16xf32>
    %624 = vector.multi_reduction <add>, %623, %cst_257 [0] : vector<16x16xf32> to vector<16xf32>
    %625 = vector.shape_cast %624 : vector<16xf32> to vector<1x16xf32>
    %cst_258 = arith.constant dense<0.000000e+00> : vector<1xf32>
    %626 = vector.multi_reduction <add>, %625, %cst_258 [1] : vector<1x16xf32> to vector<1xf32>
    %627 = vector.shape_cast %626 : vector<1xf32> to vector<1x1xf32>
    %c15_i32_259 = arith.constant 15 : i32
    %628 = vector.broadcast %c15_i32_259 : i32 to vector<1x16xi32>
    %629 = arith.cmpi eq, %27, %628 : vector<1x16xi32>
    %630 = arith.extui %629 : vector<1x16xi1> to vector<1x16xi32>
    %631 = arith.sitofp %630 : vector<1x16xi32> to vector<1x16xf32>
    %632 = vector.broadcast %627 : vector<1x1xf32> to vector<1x16xf32>
    %633 = arith.mulf %632, %631 : vector<1x16xf32>
    %634 = arith.addf %620, %633 : vector<1x16xf32>
    %cst_260 = arith.constant 3.125000e-02 : f32
    %635 = vector.broadcast %cst_260 : f32 to vector<1x16xf32>
    %636 = arith.mulf %634, %635 : vector<1x16xf32>
    %cst_261 = arith.constant 0.000000e+00 : f32
    %637 = vector.broadcast %cst_261 : f32 to vector<1x16xf32>
    %cst_262 = arith.constant dense<0xFF800000> : vector<1xf32>
    %638 = vector.multi_reduction <maximumf>, %636, %cst_262 [1] : vector<1x16xf32> to vector<1xf32>
    %639 = vector.shape_cast %638 : vector<1xf32> to vector<1x1xf32>
    %640 = vector.broadcast %639 : vector<1x1xf32> to vector<1x16xf32>
    %641 = arith.cmpf oeq, %636, %640 : vector<1x16xf32>
    %c16_i32_263 = arith.constant 16 : i32
    %642 = vector.broadcast %c16_i32_263 : i32 to vector<1x16xi32>
    %643 = arith.select %641, %27, %642 : vector<1x16xi1>, vector<1x16xi32>
    %cst_264 = arith.constant dense<2147483647> : vector<1xi32>
    %644 = vector.multi_reduction <minsi>, %643, %cst_264 [1] : vector<1x16xi32> to vector<1xi32>
    %645 = vector.shape_cast %644 : vector<1xi32> to vector<1x1xi32>
    %646 = vector.broadcast %645 : vector<1x1xi32> to vector<1x16xi32>
    %647 = arith.cmpi eq, %27, %646 : vector<1x16xi32>
    %648 = arith.extui %647 : vector<1x16xi1> to vector<1x16xi32>
    %649 = arith.sitofp %648 : vector<1x16xi32> to vector<1x16xf32>
    %650 = arith.addf %637, %649 : vector<1x16xf32>
    %cst_265 = arith.constant 0.000000e+00 : f32
    %651 = vector.broadcast %cst_265 : f32 to vector<1x16xf32>
    %652 = arith.cmpf ogt, %649, %651 : vector<1x16xf32>
    %cst_266 = arith.constant 0xFF800000 : f32
    %653 = vector.broadcast %cst_266 : f32 to vector<1x16xf32>
    %654 = arith.select %652, %653, %636 : vector<1x16xi1>, vector<1x16xf32>
    %cst_267 = arith.constant dense<0xFF800000> : vector<1xf32>
    %655 = vector.multi_reduction <maximumf>, %654, %cst_267 [1] : vector<1x16xf32> to vector<1xf32>
    %656 = vector.shape_cast %655 : vector<1xf32> to vector<1x1xf32>
    %657 = vector.broadcast %656 : vector<1x1xf32> to vector<1x16xf32>
    %658 = arith.cmpf oeq, %654, %657 : vector<1x16xf32>
    %c16_i32_268 = arith.constant 16 : i32
    %659 = vector.broadcast %c16_i32_268 : i32 to vector<1x16xi32>
    %660 = arith.select %658, %27, %659 : vector<1x16xi1>, vector<1x16xi32>
    %cst_269 = arith.constant dense<2147483647> : vector<1xi32>
    %661 = vector.multi_reduction <minsi>, %660, %cst_269 [1] : vector<1x16xi32> to vector<1xi32>
    %662 = vector.shape_cast %661 : vector<1xi32> to vector<1x1xi32>
    %663 = vector.broadcast %662 : vector<1x1xi32> to vector<1x16xi32>
    %664 = arith.cmpi eq, %27, %663 : vector<1x16xi32>
    %665 = arith.extui %664 : vector<1x16xi1> to vector<1x16xi32>
    %666 = arith.sitofp %665 : vector<1x16xi32> to vector<1x16xf32>
    %667 = arith.addf %650, %666 : vector<1x16xf32>
    %cst_270 = arith.constant dense<0xFF800000> : vector<1xf32>
    %668 = vector.multi_reduction <maximumf>, %636, %cst_270 [1] : vector<1x16xf32> to vector<1xf32>
    %669 = vector.shape_cast %668 : vector<1xf32> to vector<1x1xf32>
    %670 = vector.broadcast %669 : vector<1x1xf32> to vector<1x16xf32>
    %671 = arith.subf %636, %670 : vector<1x16xf32>
    %672 = math.exp %671 : vector<1x16xf32>
    %673 = arith.mulf %672, %667 : vector<1x16xf32>
    %cst_271 = arith.constant dense<0.000000e+00> : vector<1xf32>
    %674 = vector.multi_reduction <add>, %673, %cst_271 [1] : vector<1x16xf32> to vector<1xf32>
    %675 = vector.shape_cast %674 : vector<1xf32> to vector<1x1xf32>
    %676 = vector.broadcast %675 : vector<1x1xf32> to vector<1x16xf32>
    %677 = arith.divf %673, %676 : vector<1x16xf32>
    %cst_272 = arith.constant 0.000000e+00 : f32
    %678 = vector.broadcast %cst_272 : f32 to vector<16x16xf32>
    %679 = vector.extract_strided_slice %677 {offsets = [0, 0], sizes = [1, 1], strides = [1, 1]} : vector<1x16xf32> to vector<1x1xf32>
    %c0_273 = arith.constant 0 : index
    %c0_274 = arith.constant 0 : index
    %c0_275 = arith.constant 0 : index
    %680 = vector.load %arg11[%c0_273, %c0_274, %c0_275] : memref<16x16x16xf32, #tpu.memory_space<vmem>>, vector<1x16x16xf32>
    %681 = vector.shape_cast %680 : vector<1x16x16xf32> to vector<16x16xf32>
    %682 = vector.broadcast %679 : vector<1x1xf32> to vector<16x16xf32>
    %683 = arith.mulf %682, %681 : vector<16x16xf32>
    %684 = arith.addf %678, %683 : vector<16x16xf32>
    %685 = vector.extract_strided_slice %677 {offsets = [0, 1], sizes = [1, 1], strides = [1, 1]} : vector<1x16xf32> to vector<1x1xf32>
    %c1_276 = arith.constant 1 : index
    %c0_277 = arith.constant 0 : index
    %c0_278 = arith.constant 0 : index
    %686 = vector.load %arg11[%c1_276, %c0_277, %c0_278] : memref<16x16x16xf32, #tpu.memory_space<vmem>>, vector<1x16x16xf32>
    %687 = vector.shape_cast %686 : vector<1x16x16xf32> to vector<16x16xf32>
    %688 = vector.broadcast %685 : vector<1x1xf32> to vector<16x16xf32>
    %689 = arith.mulf %688, %687 : vector<16x16xf32>
    %690 = arith.addf %684, %689 : vector<16x16xf32>
    %691 = vector.extract_strided_slice %677 {offsets = [0, 2], sizes = [1, 1], strides = [1, 1]} : vector<1x16xf32> to vector<1x1xf32>
    %c2_279 = arith.constant 2 : index
    %c0_280 = arith.constant 0 : index
    %c0_281 = arith.constant 0 : index
    %692 = vector.load %arg11[%c2_279, %c0_280, %c0_281] : memref<16x16x16xf32, #tpu.memory_space<vmem>>, vector<1x16x16xf32>
    %693 = vector.shape_cast %692 : vector<1x16x16xf32> to vector<16x16xf32>
    %694 = vector.broadcast %691 : vector<1x1xf32> to vector<16x16xf32>
    %695 = arith.mulf %694, %693 : vector<16x16xf32>
    %696 = arith.addf %690, %695 : vector<16x16xf32>
    %697 = vector.extract_strided_slice %677 {offsets = [0, 3], sizes = [1, 1], strides = [1, 1]} : vector<1x16xf32> to vector<1x1xf32>
    %c3_282 = arith.constant 3 : index
    %c0_283 = arith.constant 0 : index
    %c0_284 = arith.constant 0 : index
    %698 = vector.load %arg11[%c3_282, %c0_283, %c0_284] : memref<16x16x16xf32, #tpu.memory_space<vmem>>, vector<1x16x16xf32>
    %699 = vector.shape_cast %698 : vector<1x16x16xf32> to vector<16x16xf32>
    %700 = vector.broadcast %697 : vector<1x1xf32> to vector<16x16xf32>
    %701 = arith.mulf %700, %699 : vector<16x16xf32>
    %702 = arith.addf %696, %701 : vector<16x16xf32>
    %703 = vector.extract_strided_slice %677 {offsets = [0, 4], sizes = [1, 1], strides = [1, 1]} : vector<1x16xf32> to vector<1x1xf32>
    %c4_285 = arith.constant 4 : index
    %c0_286 = arith.constant 0 : index
    %c0_287 = arith.constant 0 : index
    %704 = vector.load %arg11[%c4_285, %c0_286, %c0_287] : memref<16x16x16xf32, #tpu.memory_space<vmem>>, vector<1x16x16xf32>
    %705 = vector.shape_cast %704 : vector<1x16x16xf32> to vector<16x16xf32>
    %706 = vector.broadcast %703 : vector<1x1xf32> to vector<16x16xf32>
    %707 = arith.mulf %706, %705 : vector<16x16xf32>
    %708 = arith.addf %702, %707 : vector<16x16xf32>
    %709 = vector.extract_strided_slice %677 {offsets = [0, 5], sizes = [1, 1], strides = [1, 1]} : vector<1x16xf32> to vector<1x1xf32>
    %c5_288 = arith.constant 5 : index
    %c0_289 = arith.constant 0 : index
    %c0_290 = arith.constant 0 : index
    %710 = vector.load %arg11[%c5_288, %c0_289, %c0_290] : memref<16x16x16xf32, #tpu.memory_space<vmem>>, vector<1x16x16xf32>
    %711 = vector.shape_cast %710 : vector<1x16x16xf32> to vector<16x16xf32>
    %712 = vector.broadcast %709 : vector<1x1xf32> to vector<16x16xf32>
    %713 = arith.mulf %712, %711 : vector<16x16xf32>
    %714 = arith.addf %708, %713 : vector<16x16xf32>
    %715 = vector.extract_strided_slice %677 {offsets = [0, 6], sizes = [1, 1], strides = [1, 1]} : vector<1x16xf32> to vector<1x1xf32>
    %c6_291 = arith.constant 6 : index
    %c0_292 = arith.constant 0 : index
    %c0_293 = arith.constant 0 : index
    %716 = vector.load %arg11[%c6_291, %c0_292, %c0_293] : memref<16x16x16xf32, #tpu.memory_space<vmem>>, vector<1x16x16xf32>
    %717 = vector.shape_cast %716 : vector<1x16x16xf32> to vector<16x16xf32>
    %718 = vector.broadcast %715 : vector<1x1xf32> to vector<16x16xf32>
    %719 = arith.mulf %718, %717 : vector<16x16xf32>
    %720 = arith.addf %714, %719 : vector<16x16xf32>
    %721 = vector.extract_strided_slice %677 {offsets = [0, 7], sizes = [1, 1], strides = [1, 1]} : vector<1x16xf32> to vector<1x1xf32>
    %c7_294 = arith.constant 7 : index
    %c0_295 = arith.constant 0 : index
    %c0_296 = arith.constant 0 : index
    %722 = vector.load %arg11[%c7_294, %c0_295, %c0_296] : memref<16x16x16xf32, #tpu.memory_space<vmem>>, vector<1x16x16xf32>
    %723 = vector.shape_cast %722 : vector<1x16x16xf32> to vector<16x16xf32>
    %724 = vector.broadcast %721 : vector<1x1xf32> to vector<16x16xf32>
    %725 = arith.mulf %724, %723 : vector<16x16xf32>
    %726 = arith.addf %720, %725 : vector<16x16xf32>
    %727 = vector.extract_strided_slice %677 {offsets = [0, 8], sizes = [1, 1], strides = [1, 1]} : vector<1x16xf32> to vector<1x1xf32>
    %c8_297 = arith.constant 8 : index
    %c0_298 = arith.constant 0 : index
    %c0_299 = arith.constant 0 : index
    %728 = vector.load %arg11[%c8_297, %c0_298, %c0_299] : memref<16x16x16xf32, #tpu.memory_space<vmem>>, vector<1x16x16xf32>
    %729 = vector.shape_cast %728 : vector<1x16x16xf32> to vector<16x16xf32>
    %730 = vector.broadcast %727 : vector<1x1xf32> to vector<16x16xf32>
    %731 = arith.mulf %730, %729 : vector<16x16xf32>
    %732 = arith.addf %726, %731 : vector<16x16xf32>
    %733 = vector.extract_strided_slice %677 {offsets = [0, 9], sizes = [1, 1], strides = [1, 1]} : vector<1x16xf32> to vector<1x1xf32>
    %c9_300 = arith.constant 9 : index
    %c0_301 = arith.constant 0 : index
    %c0_302 = arith.constant 0 : index
    %734 = vector.load %arg11[%c9_300, %c0_301, %c0_302] : memref<16x16x16xf32, #tpu.memory_space<vmem>>, vector<1x16x16xf32>
    %735 = vector.shape_cast %734 : vector<1x16x16xf32> to vector<16x16xf32>
    %736 = vector.broadcast %733 : vector<1x1xf32> to vector<16x16xf32>
    %737 = arith.mulf %736, %735 : vector<16x16xf32>
    %738 = arith.addf %732, %737 : vector<16x16xf32>
    %739 = vector.extract_strided_slice %677 {offsets = [0, 10], sizes = [1, 1], strides = [1, 1]} : vector<1x16xf32> to vector<1x1xf32>
    %c10_303 = arith.constant 10 : index
    %c0_304 = arith.constant 0 : index
    %c0_305 = arith.constant 0 : index
    %740 = vector.load %arg11[%c10_303, %c0_304, %c0_305] : memref<16x16x16xf32, #tpu.memory_space<vmem>>, vector<1x16x16xf32>
    %741 = vector.shape_cast %740 : vector<1x16x16xf32> to vector<16x16xf32>
    %742 = vector.broadcast %739 : vector<1x1xf32> to vector<16x16xf32>
    %743 = arith.mulf %742, %741 : vector<16x16xf32>
    %744 = arith.addf %738, %743 : vector<16x16xf32>
    %745 = vector.extract_strided_slice %677 {offsets = [0, 11], sizes = [1, 1], strides = [1, 1]} : vector<1x16xf32> to vector<1x1xf32>
    %c11_306 = arith.constant 11 : index
    %c0_307 = arith.constant 0 : index
    %c0_308 = arith.constant 0 : index
    %746 = vector.load %arg11[%c11_306, %c0_307, %c0_308] : memref<16x16x16xf32, #tpu.memory_space<vmem>>, vector<1x16x16xf32>
    %747 = vector.shape_cast %746 : vector<1x16x16xf32> to vector<16x16xf32>
    %748 = vector.broadcast %745 : vector<1x1xf32> to vector<16x16xf32>
    %749 = arith.mulf %748, %747 : vector<16x16xf32>
    %750 = arith.addf %744, %749 : vector<16x16xf32>
    %751 = vector.extract_strided_slice %677 {offsets = [0, 12], sizes = [1, 1], strides = [1, 1]} : vector<1x16xf32> to vector<1x1xf32>
    %c12_309 = arith.constant 12 : index
    %c0_310 = arith.constant 0 : index
    %c0_311 = arith.constant 0 : index
    %752 = vector.load %arg11[%c12_309, %c0_310, %c0_311] : memref<16x16x16xf32, #tpu.memory_space<vmem>>, vector<1x16x16xf32>
    %753 = vector.shape_cast %752 : vector<1x16x16xf32> to vector<16x16xf32>
    %754 = vector.broadcast %751 : vector<1x1xf32> to vector<16x16xf32>
    %755 = arith.mulf %754, %753 : vector<16x16xf32>
    %756 = arith.addf %750, %755 : vector<16x16xf32>
    %757 = vector.extract_strided_slice %677 {offsets = [0, 13], sizes = [1, 1], strides = [1, 1]} : vector<1x16xf32> to vector<1x1xf32>
    %c13_312 = arith.constant 13 : index
    %c0_313 = arith.constant 0 : index
    %c0_314 = arith.constant 0 : index
    %758 = vector.load %arg11[%c13_312, %c0_313, %c0_314] : memref<16x16x16xf32, #tpu.memory_space<vmem>>, vector<1x16x16xf32>
    %759 = vector.shape_cast %758 : vector<1x16x16xf32> to vector<16x16xf32>
    %760 = vector.broadcast %757 : vector<1x1xf32> to vector<16x16xf32>
    %761 = arith.mulf %760, %759 : vector<16x16xf32>
    %762 = arith.addf %756, %761 : vector<16x16xf32>
    %763 = vector.extract_strided_slice %677 {offsets = [0, 14], sizes = [1, 1], strides = [1, 1]} : vector<1x16xf32> to vector<1x1xf32>
    %c14_315 = arith.constant 14 : index
    %c0_316 = arith.constant 0 : index
    %c0_317 = arith.constant 0 : index
    %764 = vector.load %arg11[%c14_315, %c0_316, %c0_317] : memref<16x16x16xf32, #tpu.memory_space<vmem>>, vector<1x16x16xf32>
    %765 = vector.shape_cast %764 : vector<1x16x16xf32> to vector<16x16xf32>
    %766 = vector.broadcast %763 : vector<1x1xf32> to vector<16x16xf32>
    %767 = arith.mulf %766, %765 : vector<16x16xf32>
    %768 = arith.addf %762, %767 : vector<16x16xf32>
    %769 = vector.extract_strided_slice %677 {offsets = [0, 15], sizes = [1, 1], strides = [1, 1]} : vector<1x16xf32> to vector<1x1xf32>
    %c15_318 = arith.constant 15 : index
    %c0_319 = arith.constant 0 : index
    %c0_320 = arith.constant 0 : index
    %770 = vector.load %arg11[%c15_318, %c0_319, %c0_320] : memref<16x16x16xf32, #tpu.memory_space<vmem>>, vector<1x16x16xf32>
    %771 = vector.shape_cast %770 : vector<1x16x16xf32> to vector<16x16xf32>
    %772 = vector.broadcast %769 : vector<1x1xf32> to vector<16x16xf32>
    %773 = arith.mulf %772, %771 : vector<16x16xf32>
    %774 = arith.addf %768, %773 : vector<16x16xf32>
    %cst_321 = arith.constant dense<0.000000e+00> : vector<16x32xf32>
    %775 = tpu.matmul %774, %408, %cst_321 {dimension_numbers = #tpu.dot_dimension_numbers<[1], [0], [0], [1], [0, 0, 1, 1], [], []>} : vector<16x16xf32>, vector<16x32xf32>, vector<16x32xf32> -> vector<16x32xf32>
    %c16 = arith.constant 16 : index
    %c0_322 = arith.constant 0 : index
    %776 = vector.load %arg15[%c16, %c0_322] : memref<32x32xf32, #tpu.memory_space<vmem>>, vector<16x32xf32>
    tpu.vector_store %arg15[%c16, %c0_322], %775 {strides = array<i32>} : memref<32x32xf32, #tpu.memory_space<vmem>>, vector<16x32xf32>,
    %c0_323 = arith.constant 0 : index
    %c0_324 = arith.constant 0 : index
    %777 = vector.load %arg15[%c0_323, %c0_324] : memref<32x32xf32, #tpu.memory_space<vmem>>, vector<32x32xf32>
    %c0_325 = arith.constant 0 : index
    %c0_326 = arith.constant 0 : index
    %c0_327 = arith.constant 0 : index
    %778 = vector.load %arg6[%c0_325, %c0_326, %c0_327] : memref<1x32x32xf32, #tpu.memory_space<vmem>>, vector<1x32x32xf32>
    %779 = vector.shape_cast %778 : vector<1x32x32xf32> to vector<32x32xf32>
    %cst_328 = arith.constant dense<0.000000e+00> : vector<32x32xf32>
    %780 = tpu.matmul %777, %779, %cst_328 {dimension_numbers = #tpu.dot_dimension_numbers<[1], [0], [0], [1], [0, 0, 1, 1], [], []>} : vector<32x32xf32>, vector<32x32xf32>, vector<32x32xf32> -> vector<32x32xf32>
    %c0_329 = arith.constant 0 : index
    %c0_330 = arith.constant 0 : index
    %c0_331 = arith.constant 0 : index
    %781 = vector.load %arg7[%c0_329, %c0_330, %c0_331] : memref<1x1x32xf32, #tpu.memory_space<vmem>>, vector<1x1x32xf32>
    %782 = vector.shape_cast %781 : vector<1x1x32xf32> to vector<1x32xf32>
    %783 = vector.broadcast %782 : vector<1x32xf32> to vector<32x32xf32>
    %784 = arith.addf %780, %783 : vector<32x32xf32>
    %785 = arith.addf %26, %784 : vector<32x32xf32>
    %cst_332 = arith.constant dense<0.000000e+00> : vector<32x32xf32>
    %786 = tpu.matmul %2, %785, %cst_332 {dimension_numbers = #tpu.dot_dimension_numbers<[1], [0], [0], [1], [0, 0, 1, 1], [], []>} : vector<32x32xf32>, vector<32x32xf32>, vector<32x32xf32> -> vector<32x32xf32>
    %787 = arith.subf %785, %786 : vector<32x32xf32>
    %c0_333 = arith.constant 0 : index
    %c0_334 = arith.constant 0 : index
    %c0_335 = arith.constant 0 : index
    %788 = vector.load %arg8[%c0_333, %c0_334, %c0_335] : memref<1x32x64xf32, #tpu.memory_space<vmem>>, vector<1x32x64xf32>
    %789 = vector.shape_cast %788 : vector<1x32x64xf32> to vector<32x64xf32>
    %cst_336 = arith.constant dense<0.000000e+00> : vector<32x64xf32>
    %790 = tpu.matmul %787, %789, %cst_336 {dimension_numbers = #tpu.dot_dimension_numbers<[1], [0], [0], [1], [0, 0, 1, 1], [], []>} : vector<32x32xf32>, vector<32x64xf32>, vector<32x64xf32> -> vector<32x64xf32>
    %cst_337 = arith.constant 0.000000e+00 : f32
    %791 = vector.broadcast %cst_337 : f32 to vector<32x64xf32>
    %792 = arith.maximumf %790, %791 : vector<32x64xf32>
    %c0_338 = arith.constant 0 : index
    %c0_339 = arith.constant 0 : index
    %c0_340 = arith.constant 0 : index
    %793 = vector.load %arg9[%c0_338, %c0_339, %c0_340] : memref<1x64x32xf32, #tpu.memory_space<vmem>>, vector<1x64x32xf32>
    %794 = vector.shape_cast %793 : vector<1x64x32xf32> to vector<64x32xf32>
    %cst_341 = arith.constant dense<0.000000e+00> : vector<32x32xf32>
    %795 = tpu.matmul %792, %794, %cst_341 {dimension_numbers = #tpu.dot_dimension_numbers<[1], [0], [0], [1], [0, 0, 1, 1], [], []>} : vector<32x64xf32>, vector<64x32xf32>, vector<32x32xf32> -> vector<32x32xf32>
    %796 = arith.addf %787, %795 : vector<32x32xf32>
    %cst_342 = arith.constant dense<0.000000e+00> : vector<32x32xf32>
    %797 = tpu.matmul %2, %796, %cst_342 {dimension_numbers = #tpu.dot_dimension_numbers<[1], [0], [0], [1], [0, 0, 1, 1], [], []>} : vector<32x32xf32>, vector<32x32xf32>, vector<32x32xf32> -> vector<32x32xf32>
    %798 = arith.subf %796, %797 : vector<32x32xf32>
    %cst_343 = arith.constant dense<0.000000e+00> : vector<32xf32>
    %799 = vector.multi_reduction <add>, %798, %cst_343 [1] : vector<32x32xf32> to vector<32xf32>
    %800 = vector.shape_cast %799 : vector<32xf32> to vector<32x1xf32>
    %cst_344 = arith.constant 3.200000e+01 : f32
    %801 = vector.broadcast %cst_344 : f32 to vector<32x1xf32>
    %802 = arith.divf %800, %801 : vector<32x1xf32>
    %803 = vector.broadcast %802 : vector<32x1xf32> to vector<32x32xf32>
    %804 = arith.subf %798, %803 : vector<32x32xf32>
    %805 = arith.mulf %804, %804 : vector<32x32xf32>
    %cst_345 = arith.constant dense<0.000000e+00> : vector<32xf32>
    %806 = vector.multi_reduction <add>, %805, %cst_345 [1] : vector<32x32xf32> to vector<32xf32>
    %807 = vector.shape_cast %806 : vector<32xf32> to vector<32x1xf32>
    %cst_346 = arith.constant 3.200000e+01 : f32
    %808 = vector.broadcast %cst_346 : f32 to vector<32x1xf32>
    %809 = arith.divf %807, %808 : vector<32x1xf32>
    %810 = vector.broadcast %802 : vector<32x1xf32> to vector<32x32xf32>
    %811 = arith.subf %798, %810 : vector<32x32xf32>
    %cst_347 = arith.constant 9.99999974E-6 : f32
    %812 = vector.broadcast %cst_347 : f32 to vector<32x1xf32>
    %813 = arith.addf %809, %812 : vector<32x1xf32>
    %814 = math.rsqrt %813 : vector<32x1xf32>
    %815 = vector.broadcast %814 : vector<32x1xf32> to vector<32x32xf32>
    %816 = arith.mulf %811, %815 : vector<32x32xf32>
    %c0_348 = arith.constant 0 : index
    %c0_349 = arith.constant 0 : index
    %817 = vector.load %arg12[%c0_348, %c0_349] : memref<1x32xf32, #tpu.memory_space<vmem>>, vector<1x32xf32>
    %818 = vector.broadcast %817 : vector<1x32xf32> to vector<32x32xf32>
    %819 = arith.mulf %816, %818 : vector<32x32xf32>
    %c0_350 = arith.constant 0 : index
    %c0_351 = arith.constant 0 : index
    %820 = vector.load %arg13[%c0_350, %c0_351] : memref<1x32xf32, #tpu.memory_space<vmem>>, vector<1x32xf32>
    %821 = vector.broadcast %820 : vector<1x32xf32> to vector<32x32xf32>
    %822 = arith.addf %819, %821 : vector<32x32xf32>
    %cst_352 = arith.constant dense<0.000000e+00> : vector<32x32xf32>
    %823 = tpu.matmul %4, %822, %cst_352 {dimension_numbers = #tpu.dot_dimension_numbers<[1], [0], [0], [1], [0, 0, 1, 1], [], []>} : vector<32x32xf32>, vector<32x32xf32>, vector<32x32xf32> -> vector<32x32xf32>
    %c0_353 = arith.constant 0 : index
    %c0_354 = arith.constant 0 : index
    %c0_355 = arith.constant 0 : index
    %824 = vector.load %arg14[%c0_353, %c0_354, %c0_355] : memref<1x32x32xf32, #tpu.memory_space<vmem>>, vector<1x32x32xf32>
    %825 = vector.shape_cast %824 : vector<1x32x32xf32> to vector<32x32xf32>
    %826 = vector.shape_cast %823 : vector<32x32xf32> to vector<1x32x32xf32>
    tpu.vector_store %arg14[%c0_353, %c0_354, %c0_355], %826 {strides = array<i32>} : memref<1x32x32xf32, #tpu.memory_space<vmem>>, vector<1x32x32xf32>,
    return
  }
  func.func @transform_0(%arg0: i32) -> (i32, i32) {
    %c0_i32 = arith.constant 0 : i32
    %c0_i32_0 = arith.constant 0 : i32
    %c0_i32_1 = arith.constant 0 : i32
    return %c0_i32, %c0_i32_0 : i32, i32
  }
  func.func @transform_1(%arg0: i32) -> (i32, i32, i32) {
    %c0_i32 = arith.constant 0 : i32
    %c0_i32_0 = arith.constant 0 : i32
    %c0_i32_1 = arith.constant 0 : i32
    return %arg0, %c0_i32, %c0_i32_0 : i32, i32, i32
  }
  func.func @transform_2(%arg0: i32) -> (i32, i32, i32, i32) {
    %c0_i32 = arith.constant 0 : i32
    %c0_i32_0 = arith.constant 0 : i32
    %c0_i32_1 = arith.constant 0 : i32
    %c0_i32_2 = arith.constant 0 : i32
    return %arg0, %c0_i32, %c0_i32_0, %c0_i32_1 : i32, i32, i32, i32
  }
  func.func @transform_3(%arg0: i32) -> (i32, i32, i32) {
    %c0_i32 = arith.constant 0 : i32
    %c0_i32_0 = arith.constant 0 : i32
    %c0_i32_1 = arith.constant 0 : i32
    %c0_i32_2 = arith.constant 0 : i32
    return %c0_i32, %c0_i32_0, %c0_i32_1 : i32, i32, i32
  }
  func.func @transform_4(%arg0: i32) -> (i32, i32, i32) {
    %c0_i32 = arith.constant 0 : i32
    %c0_i32_0 = arith.constant 0 : i32
    %c0_i32_1 = arith.constant 0 : i32
    %c0_i32_2 = arith.constant 0 : i32
    return %c0_i32, %c0_i32_0, %c0_i32_1 : i32, i32, i32
  }
  func.func @transform_5(%arg0: i32) -> (i32, i32, i32) {
    %c0_i32 = arith.constant 0 : i32
    %c0_i32_0 = arith.constant 0 : i32
    %c0_i32_1 = arith.constant 0 : i32
    %c0_i32_2 = arith.constant 0 : i32
    return %c0_i32, %c0_i32_0, %c0_i32_1 : i32, i32, i32
  }
  func.func @transform_6(%arg0: i32) -> (i32, i32, i32) {
    %c0_i32 = arith.constant 0 : i32
    %c0_i32_0 = arith.constant 0 : i32
    %c0_i32_1 = arith.constant 0 : i32
    %c0_i32_2 = arith.constant 0 : i32
    return %c0_i32, %c0_i32_0, %c0_i32_1 : i32, i32, i32
  }
  func.func @transform_7(%arg0: i32) -> (i32, i32, i32) {
    %c0_i32 = arith.constant 0 : i32
    %c0_i32_0 = arith.constant 0 : i32
    %c0_i32_1 = arith.constant 0 : i32
    %c0_i32_2 = arith.constant 0 : i32
    return %c0_i32, %c0_i32_0, %c0_i32_1 : i32, i32, i32
  }
  func.func @transform_8(%arg0: i32) -> (i32, i32, i32) {
    %c0_i32 = arith.constant 0 : i32
    %c0_i32_0 = arith.constant 0 : i32
    %c0_i32_1 = arith.constant 0 : i32
    %c0_i32_2 = arith.constant 0 : i32
    return %c0_i32, %c0_i32_0, %c0_i32_1 : i32, i32, i32
  }
  func.func @transform_9(%arg0: i32) -> (i32, i32, i32) {
    %c0_i32 = arith.constant 0 : i32
    %c0_i32_0 = arith.constant 0 : i32
    %c0_i32_1 = arith.constant 0 : i32
    %c0_i32_2 = arith.constant 0 : i32
    return %c0_i32, %c0_i32_0, %c0_i32_1 : i32, i32, i32
  }
  func.func @transform_10(%arg0: i32) -> (i32, i32, i32) {
    %c0_i32 = arith.constant 0 : i32
    %c0_i32_0 = arith.constant 0 : i32
    %c0_i32_1 = arith.constant 0 : i32
    %c0_i32_2 = arith.constant 0 : i32
    return %c0_i32, %c0_i32_0, %c0_i32_1 : i32, i32, i32
  }
  func.func @transform_11(%arg0: i32) -> (i32, i32) {
    %c0_i32 = arith.constant 0 : i32
    %c0_i32_0 = arith.constant 0 : i32
    %c0_i32_1 = arith.constant 0 : i32
    return %c0_i32, %c0_i32_0 : i32, i32
  }
  func.func @transform_12(%arg0: i32) -> (i32, i32) {
    %c0_i32 = arith.constant 0 : i32
    %c0_i32_0 = arith.constant 0 : i32
    %c0_i32_1 = arith.constant 0 : i32
    return %c0_i32, %c0_i32_0 : i32, i32
  }
  func.func @transform_13(%arg0: i32) -> (i32, i32, i32) {
    %c0_i32 = arith.constant 0 : i32
    %c0_i32_0 = arith.constant 0 : i32
    %c0_i32_1 = arith.constant 0 : i32
    return %arg0, %c0_i32, %c0_i32_0 : i32, i32, i32
  }
}

</mosaic_0001>

<bundles_post_ra>
// kernel: _lambda_.1
= control target key start
LH: loop header
LB: loop body
LE: loop exit
PB: predicated region body
PF: predicated region fallthrough
CT: control target
= control target key end

     0   :  { %s5580_s0 = inlined_call_operand.vmem [shape: f32[32,4], index: 0, kind: input, shape index: {}]   ;;  %s5581_s1 = inlined_call_operand.hbm [shape: f32[2,32,32], index: 1, kind: input, shape index: {}]   ;;  %s5582_s2 = inlined_call_operand.vmem [shape: f32[2,3,4,32], index: 2, kind: input, shape index: {}]   ;;  %s5583_s3 = inlined_call_operand.hbm [shape: f32[1,32,96], index: 3, kind: input, shape index: {}]   ;;  %s5584_s4 = inlined_call_operand.hbm [shape: f32[1,1,96], index: 4, kind: input, shape index: {}]   ;;  %s5585_s5 = inlined_call_operand.hbm [shape: f32[1,32,32], index: 5, kind: input, shape index: {}]   ;;  %s5586_s6 = inlined_call_operand.vmem [shape: f32[1,1,32], index: 6, kind: input, shape index: {}]   ;;  %s5587_s7 = inlined_call_operand.hbm [shape: f32[1,32,64], index: 7, kind: input, shape index: {}]   ;;  %s5588_s8 = inlined_call_operand.vmem [shape: f32[1,64,32], index: 8, kind: input, shape index: {}]   ;;  %s5589_s9 = inlined_call_operand.hbm [shape: f32[4,32,32], index: 9, kind: input, shape index: {}]   ;;  %s5590_s10 = inlined_call_operand.hbm [shape: f32[16,16,16], index: 10, kind: input, shape index: {}]   ;;  %s5591_s11 = inlined_call_operand.vmem [shape: f32[1,32], index: 11, kind: input, shape index: {}]   ;;  %s5592_s12 = inlined_call_operand.vmem [shape: f32[1,32], index: 12, kind: input, shape index: {}]   ;;  %s5593_s13 = inlined_call_operand.vmem [shape: f32[2,32,32], index: 13, kind: output, shape index: {}]  }
   0x1   :  { %5597 = sst [smem:[#allocation18_spill]] %s5583_s3 }
   0x2   :  { %5598 = sst [smem:[#allocation19_spill]] %s5586_s6 }
   0x3   :  { %5599 = sst [smem:[#allocation20_spill]] %s5588_s8 }
   0x4   :  { %5600 = sst [smem:[#allocation21_spill]] %s5591_s11 }
   0x5   :  { %5601 = sst [smem:[#allocation22_spill]] %s5592_s12 }
   0x6   :  { %5602 = sst [smem:[#allocation23_spill]] %s5593_s13 }
   0x7   :  { %18 = vsyncpa [#allocation4], 0 }
   0x8   :  { %20 = vsyncpa [#allocation4 + $0x1], 0 }
   0x9   :  { %21 = vsyncpa [#allocation6], 0 }
   0xa   :  { %22 = vsyncpa [#allocation9], 0 }
   0xb   :  { %23 = vsyncpa [#allocation12], 0  ;;  %s4626_s25 = smov 0   ;;  %s4628_s26 = smov 0  }
   0xc   :  { %s4630_s27 = smov 0   ;;  %s4632_s28 = smov 0  }
   0xd LB: > { %s4528_s29 = smov [#allocation5]   ;;  %s4647_s14 = sadd.s32 4294967295, %s4526_s28   ;;  %s4526_s28 = sphi %s4632_s28, %s5625_s28   ;;  %s4522_s27 = sphi %s4630_s27, %s5624_s27   ;;  %s4518_s26 = sphi %s4628_s26, %s5623_s26   ;;  %s4514_s25 = sphi %s4626_s25, %s5622_s25  }
   0xe   : > { %s358_s30 = sshll.u32 %s4528_s29, 4  ;;  %p3512_p0 = scmp.ge.s32.totalorder %s4526_s28, 1  ;;  %s4652_s30 = int_to_ptr.vmem [resolvable:$true] %s358_s30 }
   0xf   : > { %p5595_p1 = scmp.eq.s32.totalorder %s4647_s14, 0  ;;  %p343_p2 = scmp.lt.s32.totalorder %s4526_s28, 3 }
  0x10   : > { %s4529_s16 = smov [#allocation8]   ;;  %s4530_s19 = smov [#allocation11]  }
  0x11   : > { %p4654_p3 = pnand %p3512_p0, %p343_p2  ;;  %s382_s17 = sshll.u32 %s4529_s16, 4  ;;  %s4666_s17 = int_to_ptr.vmem [resolvable:$true] %s382_s17 }
  0x12   : > { %s414_s20 = sshll.u32 %s4530_s19, 4  ;;  %s5605_s3 = sld [smem:[#allocation18_spill]]  ;;  %s4668_s20 = int_to_ptr.vmem [resolvable:$true] %s414_s20 }
  0x13   : > { %s5603_s15 = scalar_select %p4654_p3, 1, 0 }
  0x14   : > { %p4087_p4 = pneg %p4654_p3 }
  0x16   : > { %p4662_p5 = pnand %p4087_p4, %p5595_p1 }
  0x18   : > { %s4282_s23 = scalar_lea.hbm %s5605_s3, 512  ;;  %p4678_p7 = pneg %p4662_p5 }
  0x19   : > { %p4283_p6 = scmp.ne.s32.totalorder %s5605_s3, %s4282_s23  ;;  %p4289_p10 = scmp.lt.u32.totalorder %s4282_s23, %s5605_s3 }
  0x1b   : > { %p4285_p8 = pnand %p4678_p7, %p4283_p6 }
  0x1d   : > { %p4286_p9 = pneg %p4285_p8 }
  0x1f   : > { %p4291_p11 = pnand %p4289_p10, %p4286_p9 }
  0x21   : > { %4294 = shalt.err (!%p4291_p11)
}
  0x22   : > { %s4295_s21 = scalar_lea.vmem %s4652_s30, 512  ;;  %p4303_p2 = scmp.lt.s32.totalorder %s4652_s30, %s4652_s30 }
  0x23   : > { %p4296_p12 = scmp.ne.s32.totalorder %s4652_s30, %s4295_s21  ;;  %p4304_p4 = scmp.lt.s32.totalorder %s4295_s21, %s4295_s21 }
  0x25   : > { %p4298_p13 = pnand %p4296_p12, %p4678_p7  ;;  %p4305_p6 = por %p4304_p4, %p4303_p2 }
  0x27   : > { %p4299_p0 = pneg %p4298_p13 }
  0x29   : > { %p4306_p8 = pnand %p4305_p6, %p4299_p0 }
  0x2b   : > { %4309 = shalt.err (!%p4306_p8)
}
  0x2c   : > { %s4531_s22 = smov 128   ;;  %s4532_s13 = smov 8  }
  0x2d   : > { %4090 = dma.hbm_to_vmem [thread:$0]  (!%p4662_p5), %s5605_s3, 512, %s4652_s30, [#allocation6], %s4531_s22, %s4531_s22, %s4532_s13  }
  0x2e   : > { %s4310_s21 = scalar_lea.hbm %s5585_s5, 512 }
  0x2f   : > { %p4311_p9 = scmp.ne.s32.totalorder %s5585_s5, %s4310_s21  ;;  %p4317_p12 = scmp.lt.u32.totalorder %s4310_s21, %s5585_s5 }
  0x31   : > { %p4313_p10 = pnand %p4311_p9, %p4678_p7 }
  0x33   : > { %p4314_p11 = pneg %p4313_p10 }
  0x35   : > { %p4319_p13 = pnand %p4317_p12, %p4314_p11 }
  0x37   : > { %4322 = shalt.err (!%p4319_p13)
}
  0x38   : > { %s4323_s30 = scalar_lea.vmem %s4666_s17, 512  ;;  %p4331_p6 = scmp.lt.s32.totalorder %s4666_s17, %s4666_s17 }
  0x39   : > { %p4324_p0 = scmp.ne.s32.totalorder %s4666_s17, %s4323_s30  ;;  %p4332_p8 = scmp.lt.s32.totalorder %s4323_s30, %s4323_s30 }
  0x3b   : > { %p4326_p2 = pnand %p4324_p0, %p4678_p7  ;;  %p4333_p9 = por %p4332_p8, %p4331_p6 }
  0x3d   : > { %p4327_p4 = pneg %p4326_p2 }
  0x3f   : > { %p4334_p10 = pnand %p4333_p9, %p4327_p4 }
  0x41   : > { %4337 = shalt.err (!%p4334_p10)
}
  0x42   : > { %4096 = dma.hbm_to_vmem [thread:$0]  (!%p4662_p5), %s5585_s5, 512, %s4666_s17, [#allocation9], %s4531_s22, %s4531_s22, %s4532_s13  }
  0x43   : > { %s4338_s23 = scalar_lea.hbm %s5589_s9, 2048 }
  0x44   : > { %p4339_p11 = scmp.ne.s32.totalorder %s5589_s9, %s4338_s23  ;;  %p4345_p0 = scmp.lt.u32.totalorder %s4338_s23, %s5589_s9 }
  0x46   : > { %p4341_p12 = pnand %p4339_p11, %p4678_p7 }
  0x48   : > { %p4342_p13 = pneg %p4341_p12 }
  0x4a   : > { %p4347_p2 = pnand %p4345_p0, %p4342_p13 }
  0x4c   : > { %4350 = shalt.err (!%p4347_p2)
}
  0x4d   : > { %s4351_s17 = scalar_lea.vmem %s4668_s20, 2048  ;;  %p4359_p9 = scmp.lt.s32.totalorder %s4668_s20, %s4668_s20 }
  0x4e   : > { %p4352_p4 = scmp.ne.s32.totalorder %s4668_s20, %s4351_s17  ;;  %p4360_p10 = scmp.lt.s32.totalorder %s4351_s17, %s4351_s17 }
  0x50   : > { %p4354_p6 = pnand %p4352_p4, %p4678_p7  ;;  %p4361_p11 = por %p4360_p10, %p4359_p9 }
  0x52   : > { %p4355_p8 = pneg %p4354_p6 }
  0x54   : > { %p4362_p12 = pnand %p4361_p11, %p4355_p8 }
  0x56   : > { %4365 = shalt.err (!%p4362_p12)
}
  0x57   : > { %4102 = dma.hbm_to_vmem [thread:$0]  (!%p4662_p5), %s5589_s9, 2048, %s4668_s20, [#allocation12], %s4531_s22, %s4531_s22, %s4532_s13  }
  0x58   : > { %s4533_s8 = smov [#allocation7]   ;;  %s4534_s12 = smov [#allocation10]  }
  0x59   : > { %s372_s11 = sshll.u32 %s4533_s8, 4  ;;  %s398_s23 = sshll.u32 %s4534_s12, 4  ;;  %s373_s11 = int_to_ptr.vmem [resolvable:$true] %s372_s11  ;;  %s399_s23 = int_to_ptr.vmem [resolvable:$true] %s398_s23 }
  0x5a   : > { %s4366_s19 = scalar_lea.hbm %s5584_s4, 16 }
  0x5b   : > { %p4367_p13 = scmp.ne.s32.totalorder %s5584_s4, %s4366_s19  ;;  %p4373_p4 = scmp.lt.u32.totalorder %s4366_s19, %s5584_s4 }
  0x5d   : > { %p4369_p0 = pnand %p4367_p13, %p4678_p7 }
  0x5f   : > { %p4370_p2 = pneg %p4369_p0 }
  0x61   : > { %p4375_p6 = pnand %p4373_p4, %p4370_p2 }
  0x63   : > { %4378 = shalt.err (!%p4375_p6)
}
  0x64   : > { %s4379_s20 = scalar_lea.vmem %s373_s11, 16  ;;  %s4386_s6 = scalar_lea.vmem %s373_s11, 32 }
  0x65   : > { %p4380_p8 = scmp.ne.s32.totalorder %s373_s11, %s4379_s20  ;;  %p4387_p11 = scmp.lt.s32.totalorder %s373_s11, %s373_s11 }
  0x66   : > { %p4388_p12 = scmp.lt.s32.totalorder %s4386_s6, %s4379_s20 }
  0x67   : > { %p4382_p9 = pnand %p4380_p8, %p4678_p7 }
  0x68   : > { %p4389_p1 = por %p4388_p12, %p4387_p11 }
  0x69   : > { %p4383_p10 = pneg %p4382_p9 }
  0x6b   : > { %p4390_p3 = pnand %p4389_p1, %p4383_p10 }
  0x6d   : > { %4393 = shalt.err (!%p4390_p3)
}
  0x6e   : > { %4093 = dma.hbm_to_vmem [thread:$0]  (!%p4662_p5), %s5584_s4, 16, %s373_s11, [#allocation6]  }
  0x6f   : > { %s4394_s29 = scalar_lea.hbm %s5587_s7, 512 }
  0x70   : > { %p4395_p13 = scmp.ne.s32.totalorder %s5587_s7, %s4394_s29  ;;  %p4401_p3 = scmp.lt.u32.totalorder %s4394_s29, %s5587_s7 }
  0x72   : > { %p4397_p0 = pnand %p4395_p13, %p4678_p7 }
  0x74   : > { %p4398_p1 = pneg %p4397_p0 }
  0x76   : > { %p4403_p2 = pnand %p4401_p3, %p4398_p1 }
  0x78   : > { %4406 = shalt.err (!%p4403_p2)
}
  0x79   : > { %s4407_s20 = scalar_lea.vmem %s399_s23, 512  ;;  %p4415_p9 = scmp.lt.s32.totalorder %s399_s23, %s399_s23 }
  0x7a   : > { %p4408_p4 = scmp.ne.s32.totalorder %s399_s23, %s4407_s20  ;;  %p4416_p10 = scmp.lt.s32.totalorder %s4407_s20, %s4407_s20 }
  0x7c   : > { %p4410_p6 = pnand %p4408_p4, %p4678_p7  ;;  %p4417_p11 = por %p4416_p10, %p4415_p9 }
  0x7e   : > { %p4411_p8 = pneg %p4410_p6 }
  0x80   : > { %p4418_p12 = pnand %p4417_p11, %p4411_p8 }
  0x82   : > { %4421 = shalt.err (!%p4418_p12)
}
  0x83   : > { %4099 = dma.hbm_to_vmem [thread:$0]  (!%p4662_p5), %s5587_s7, 512, %s399_s23, [#allocation9], %s4531_s22, %s4531_s22, %s4532_s13  }
  0x84   : > { %s4535_s8 = smov [#allocation13]   ;;  %s4422_s29 = scalar_lea.hbm %s5590_s10, 4096 }
  0x85   : > { %s427_s12 = sshll.u32 %s4535_s8, 4  ;;  %p4423_p13 = scmp.ne.s32.totalorder %s5590_s10, %s4422_s29  ;;  %s428_s12 = int_to_ptr.vmem [resolvable:$true] %s427_s12 }
  0x86   : > { %p4429_p3 = scmp.lt.u32.totalorder %s4422_s29, %s5590_s10 }
  0x87   : > { %p4425_p0 = pnand %p4423_p13, %p4678_p7 }
  0x89   : > { %p4426_p1 = pneg %p4425_p0 }
  0x8b   : > { %p4431_p2 = pnand %p4429_p3, %p4426_p1 }
  0x8d   : > { %4434 = shalt.err (!%p4431_p2)
}
  0x8e   : > { %s4435_s23 = scalar_lea.vmem %s428_s12, 4096  ;;  %p4443_p9 = scmp.lt.s32.totalorder %s428_s12, %s428_s12 }
  0x8f   : > { %p4436_p4 = scmp.ne.s32.totalorder %s428_s12, %s4435_s23  ;;  %p4444_p10 = scmp.lt.s32.totalorder %s4435_s23, %s4435_s23 }
  0x91   : > { %p4438_p6 = pnand %p4436_p4, %p4678_p7  ;;  %p4445_p11 = por %p4444_p10, %p4443_p9 }
  0x93   : > { %p4439_p8 = pneg %p4438_p6 }
  0x95   : > { %p4446_p12 = pnand %p4445_p11, %p4439_p8 }
  0x97   : > { %4449 = shalt.err (!%p4446_p12)
}
  0x98   : > { %4105 = dma.hbm_to_vmem [thread:$0]  (!%p4662_p5), %s5590_s10, 4096, %s428_s12, [#allocation12], %s4531_s22, %s4531_s22, %s4532_s13  }
  0x99   : > { %s4815_s18 = sadd.s32 1, %s4526_s28   ;;  %s57_s16 = sadd.s32 1, %s4522_s27 }
  0x9a   : > { %s54_s6 = ssub.s32 %s4526_s28, %s4815_s18  ;;  %p64_p7 = scmp.ne.s32.totalorder %s4522_s27, %s4518_s26 }
  0x9b   : > { %p55_p13 = scmp.eq.s32.totalorder %s54_s6, 0  ;;  %p65_p0 = scmp.eq.s32.totalorder %s4526_s28, 0 }
  0x9c   : > { %p70_p1 = scmp.ne.s32.totalorder %s4518_s26, %s4514_s25  ;;  %p4116_p3 = scmp.lt.s32.totalorder %s4526_s28, 2 }
  0x9d   : > { %s4827_s8 = scalar_select %p55_p13, %s4522_s27, %s57_s16  }
  0x9e   : > { %p66_p2 = por %p65_p0, %p64_p7  ;;  %p5607_p4 = scmp.eq.s32.totalorder %s4647_s14, 0 }
  0x9f   : > { %s447_s24 = sand.u32 1, %s4522_s27   ;;  %s3627_s12 = sshll.u32 %s4526_s28, 9 }
  0xa0   : > { %p4831_p6 = por %p5607_p4, %p70_p1  ;;  %s3520_s29 = sshll.u32 %s447_s24, 5 }
  0xa1   : > { %s4840_s17 = scalar_lea.hbm %s5581_s1, %s3627_s12  ;;  %s451_s25 = scalar_lea.vmem [#allocation3], %s3520_s29 }
  0xa2   : > { %s458_s30 = sshll.u32 %s451_s25, 4  ;;  %p4842_p5 = pnand %p4116_p3, %p66_p2  ;;  %s4846_s30 = int_to_ptr.vmem [resolvable:$true] %s458_s30 }
  0xa3   : > { %s4848_s28 = scalar_lea.sflag [#allocation4], %s447_s24  ;;  %s4450_s20 = scalar_lea.hbm %s4840_s17, 512 }
  0xa4   : > { %p4451_p8 = scmp.ne.s32.totalorder %s4840_s17, %s4450_s20  ;;  %p4452_p9 = pneg %p4842_p5 }
  0xa5   : > { %s4455_s6 = scalar_lea.hbm %s5581_s1, 1024  ;;  %p4456_p12 = scmp.lt.u32.totalorder %s4840_s17, %s5581_s1 }
  0xa6   : > { %p4453_p10 = pnand %p4452_p9, %p4451_p8  ;;  %p4457_p7 = scmp.lt.u32.totalorder %s4455_s6, %s4450_s20 }
  0xa7   : > { %p4459_p0 = scmp.lt.u32.totalorder %s4450_s20, %s4840_s17 }
  0xa8   : > { %p4454_p11 = pneg %p4453_p10  ;;  %p4458_p13 = por %p4457_p7, %p4456_p12 }
  0xaa   : > { %p4460_p1 = por %p4459_p0, %p4458_p13 }
  0xac   : > { %p4461_p3 = pnand %p4460_p1, %p4454_p11 }
  0xae   : > { %4464 = shalt.err (!%p4461_p3)
}
  0xaf   : > { %s4465_s24 = scalar_lea.vmem %s4846_s30, 512  ;;  %s4536_s19 = smov [#allocation3]  }
  0xb0   : > { %p4466_p2 = scmp.ne.s32.totalorder %s4846_s30, %s4465_s24  ;;  %s4470_s21 = sshll.u32 %s4536_s19, 4  ;;  %s4471_s21 = int_to_ptr.vmem [resolvable:$false] %s4470_s21 }
  0xb1   : > { %s4472_s25 = scalar_lea.vmem %s4471_s21, 1024  ;;  %p4473_p10 = scmp.lt.s32.totalorder %s4846_s30, %s4471_s21 }
  0xb2   : > { %p4468_p4 = pnand %p4466_p2, %p4452_p9  ;;  %p4474_p12 = scmp.lt.s32.totalorder %s4472_s25, %s4465_s24 }
  0xb4   : > { %p4469_p8 = pneg %p4468_p4  ;;  %p4475_p7 = por %p4474_p12, %p4473_p10 }
  0xb6   : > { %p4476_p13 = pnand %p4475_p7, %p4469_p8 }
  0xb8   : > { %4479 = shalt.err (!%p4476_p13)
}
  0xb9   : > { %4109 = dma.hbm_to_vmem [thread:$0]  (!%p4842_p5), %s4840_s17, 512, %s4846_s30, %s4848_s28, %s4531_s22, %s4531_s22, %s4532_s13  }
  0xba   : > { %p5610_p9 = scmp.ne.s32.totalorder %s5603_s15, 0 }
  0xbb   : > { %s480_s20 = sand.u32 (!%p5610_p9), 1, %s4518_s26  }
  0xbc   : > { %478 = sbr.rel (%p5610_p9) target bundleno = 4849 (0x12f1), region = 72  ;;  %s3524_s11 = sshll.u32 (!%p5610_p9), %s480_s20, 5 }
  0xbd   : > { %s481_s16 = scalar_lea.sflag (!%p5610_p9), [#allocation4], %s480_s20  ;;  %s484_s6 = scalar_lea.vmem (!%p5610_p9), [#allocation3], %s3524_s11 }
  0xc3   : > { %4497 = dma.done.wait (%p4831_p6), %s481_s16, 512  }
  0xc4   : > { %4499 = vsyncadd (%p4831_p6), %s481_s16, 4294966784  ;;  %p5611_p11 = scmp.eq.s32.totalorder %s4647_s14, 0 }
  0xc6   : > { %4501 = dma.done.wait (%p5611_p11), [#allocation6], 528   ;;  %p5612_p0 = pmov %p5611_p11 }
  0xc8   : > { %4503 = vsyncadd (%p5612_p0), [#allocation6], 4294966768  ;;  %p5613_p5 = pmov %p5612_p0 }
  0xc9   : > { %p5614_p1 = pmov %p5612_p0 }
  0xca   : > { %4505 = dma.done.wait (%p5613_p5), [#allocation9], 1024  }
  0xcb   : > { %4507 = vsyncadd (%p5614_p1), [#allocation9], 4294966272  ;;  %p5615_p3 = pmov %p5612_p0 }
  0xcc   : > { %p5616_p2 = pmov %p5612_p0 }
  0xcd   : > { %4509 = dma.done.wait (%p5615_p3), [#allocation12], 6144  }
  0xce   : > { %4511 = vsyncadd (%p5616_p2), [#allocation12], 4294961152  ;;  %vm593_vm0 = vcmask 261120   ;;  %v566_v0 = vld [vmem:[%s5580_s0] sm:$0xff]  ;;  %v567_v1 = vld [vmem:[%s5580_s0 + $0x8] sm:$0xff]  ;;  %p556_p6 = scmp.lt.s32.totalorder %s4647_s14, 1 }
  0xcf   : > { %v568_v2 = vld [vmem:[%s5580_s0 + $0x10] sm:$0xff]  ;;  %v3944_v3 = vpack.c.bf16 %v567_v1, %v566_v0  ;;  %v569_v4 = vld [vmem:[%s5580_s0 + $0x18] sm:$0xff]  ;;  %v590_v7 = vld [vmem:[%s484_s6 + $0x8] sm:$0xff]  ;;  %vm901_vm1 = vcmask 1043456   ;;  %vm888_vm2 = vcmask 31744   ;;  %s4537_s21 = smov 96  }
  0xd0   : > { %v589_v5 = vld [vmem:[%s484_s6] sm:$0xff]  ;;  %v3948_v6 = vpack.c.bf16 %v569_v4, %v568_v2  ;;  %v591_v8 = vld [vmem:[%s484_s6 + $0x10] sm:$0xff]  ;;  %v592_v9 = vld [vmem:[%s484_s6 + $0x18] sm:$0xff]  ;;  %s5627_s14 = smov (!%p556_p6, %s4647_s14), 1  ;;  %vm1397_vm4 = vcmask 130048   ;;  %s4553_s25 = smov 64  }
  0xd1   : > { %3752 = vmatprep.mubr.msk.f32.mxu0 %vm593_vm0, %v589_v5  ;;  %3945 = vmatprep.subr.bf16.mxu0 %v3944_v3  ;;  %v580_v10 = vld [vmem:[#allocation11 + $0x40] sm:$0xff]  ;;  %s4060_s12 = smul.u32 12, %s5627_s14  ;;  %v581_v19 = vld [vmem:[#allocation11 + $0x48] sm:$0xff]  ;;  %v582_v21 = vld [vmem:[#allocation11 + $0x50] sm:$0xff]  ;;  %s5617_s16 = sld [smem:[#allocation19_spill]] }
  0xd2   : > { %3947 = vmatpush3.bf16.msra.mxu0 %v3944_v3  ;;  %3766 = vmatprep.mubr.msk.f32.mxu1 %vm593_vm0, %v580_v10  ;;  %v585_v11 = vld [vmem:[#allocation11 + $0x60] sm:$0xff]  ;;  %v586_v20 = vld [vmem:[#allocation11 + $0x68] sm:$0xff]  ;;  %v587_v22 = vld [vmem:[#allocation11 + $0x70] sm:$0xff]  ;;  %s5618_s22 = sld [smem:[#allocation20_spill]]  ;;  %s5619_s15 = sld [smem:[#allocation21_spill]] }
  0xd3   : > { %3949 = vmatprep.subr.bf16.mxu0 %v3948_v6  ;;  %s4924_s19 = scalar_lea.vmem %s5582_s2, %s4060_s12  ;;  %v583_v24 = vld [vmem:[#allocation11 + $0x58] sm:$0xff]  ;;  %v1197_v28 = vld [vmem:[#allocation5 + $0x8] sm:$0xff]  ;;  %v1198_v29 = vld [vmem:[#allocation5 + $0x10] sm:$0xff]  ;;  %s5620_s17 = sld [smem:[#allocation22_spill]] }
  0xd4   : > { %v886_v18 = vld [vmem:[%s4924_s19 + $0x4] sm:$0xf]  ;;  %v885_v23 = vld [vmem:[%s4924_s19] sm:$0xf]  ;;  %v588_v25 = vld [vmem:[#allocation11 + $0x78] sm:$0xff]  ;;  %s3628_s30 = sshll.u32 %s5627_s14, 5 }
  0xd5   : > { %v887_v26 = vld [vmem:[%s4924_s19 + $0x8] sm:$0xf]  ;;  %v1196_v27 = vld [vmem:[#allocation5] sm:$0xff]  ;;  %v1199_v31 = vld [vmem:[#allocation5 + $0x18] sm:$0xff]  ;;  %s5621_s12 = sld [smem:[#allocation23_spill]] }
  0xd6   : > { %3951 = vmatpush3.bf16.msra.mxu0 %v3948_v6  ;;  %v3968_v30 = vpack.c.bf16 %v1197_v28, %v1196_v27  ;;  %v3972_v32 = vpack.c.bf16 %v1199_v31, %v1198_v29  ;;  %v3561_v45 = vld [vmem:[#allocation7] ss:$0 sm:$0xff]  ;;  %vm3977_vm3 = vmpackc.low %vm593_vm0, %vm593_vm0  ;;  %v4981_v0 = vld [vmem:[#allocation13 + $0x8] sm:$0xff] }
  0xd7   : > { %v4983_v1 = vld [vmem:[#allocation13 + $0xe8] sm:$0xff]  ;;  %v4985_v2 = vld [vmem:[#allocation13] sm:$0xff]  ;;  %v4987_v3 = vld [vmem:[#allocation13 + $0xf8] sm:$0xff] }
  0xd8   : > { %v4989_v4 = vld [vmem:[#allocation13 + $0xd8] sm:$0xff]  ;;  %v4991_v5 = vld [vmem:[#allocation13 + $0xe0] sm:$0xff]  ;;  %v4993_v6 = vld [vmem:[#allocation13 + $0xf0] sm:$0xff] }
  0xd9   : > { %3753 = vmatmul.mubr.msk.f32.vlgmr.msra.gmra.mrb[0].mxu0 %vm593_vm0, %v590_v7  ;;  %v4995_v7 = vld [vmem:[#allocation13 + $0xd0] sm:$0xff] }
  0xda   : > { %3755 = vmatprep.mubr.msk.f32.mxu0 %vm593_vm0, %v591_v8 }
  0xdb   : > { %s565_s29 = scalar_lea.vmem %s5621_s12, %s3628_s30 }
  0xdd   : > { %3756 = vmatmul.mubr.msk.f32.gmra.mrb[2].mxu0 %vm593_vm0, %v592_v9 }
  0xde   : > { %3780 = vmatprep.mubr.msk.f32.mxu0 %vm593_vm0, %v585_v11 }
 0x1ac   : > { %v3754_v12 = vpop.f32.mrb[0].mxu0 }
 0x1ad   : > { %v672_v13 = vpop.f32.mrb[1].mxu0 }
 0x1ae   : > { %v3952_v14 = vpack.c.bf16 %v3754_v12, %v672_v13 }
 0x1b0   : > { %v3757_v15 = vpop.f32.mrb[2].mxu0  ;;  %3953 = vmatprep.subr.bf16.mxu1 %v3952_v14  ;;  %3961 = vmatprep.subr.bf16.mxu0 %v3952_v14 }
 0x1b1   : > { %v682_v16 = vpop.f32.mrb[3].mxu0  ;;  %3955 = vmatpush3.bf16.msra.mxu1 %v3952_v14  ;;  %3963 = vmatpush3.bf16.msra.mxu0 %v3952_v14 }
 0x1b2   : > { %v3956_v17 = vpack.c.bf16 %v3757_v15, %v682_v16 }
 0x1b4   : > { %3957 = vmatprep.subr.bf16.mxu1 %v3956_v17  ;;  %3965 = vmatprep.subr.bf16.mxu0 %v3956_v17 }
 0x1b5   : > { %3959 = vmatpush3.bf16.msra.mxu1 %v3956_v17  ;;  %3967 = vmatpush3.bf16.msra.mxu0 %v3956_v17 }
 0x1b6   : > { %3786 = vmatprep.subr.msk.mxu1 %vm901_vm1, %v886_v18  ;;  %3969 = vmatprep.subr.bf16.mxu0 %v3968_v30 }
 0x1b8   : > { %3767 = vmatmul.mubr.msk.f32.vlgmr.msra.gmra.mrb[0].mxu1 %vm593_vm0, %v581_v19  ;;  %3781 = vmatmul.mubr.msk.f32.vlgmr.msra.gmra.mrb[4].mxu0 %vm593_vm0, %v586_v20 }
 0x1b9   : > { %3769 = vmatprep.mubr.msk.f32.mxu1 %vm593_vm0, %v582_v21  ;;  %3787 = vmatpush3.msk.msra.mxu1 %vm901_vm1, %v886_v18 }
 0x1ba   : > { %3783 = vmatprep.mubr.msk.f32.mxu0 %vm593_vm0, %v587_v22  ;;  %3794 = vmatprep.subr.msk.mxu1 %vm901_vm1, %v885_v23 }
 0x1bb   : > { %3971 = vmatpush3.bf16.msra.mxu0 %v3968_v30 }
 0x1bc   : > { %3770 = vmatmul.mubr.msk.f32.gmra.mrb[2].mxu1 %vm593_vm0, %v583_v24  ;;  %3784 = vmatmul.mubr.msk.f32.gmra.mrb[6].mxu0 %vm593_vm0, %v588_v25 }
 0x1bd   : > { %3788 = vmatprep.mubr.msk.f32.mxu1 %vm888_vm2, %v672_v13  ;;  %3973 = vmatprep.subr.bf16.mxu0 %v3972_v32 }
 0x1bf   : > { %3975 = vmatpush3.bf16.msra.mxu0 %v3972_v32  ;;  %v2184_v32 = vld [vmem:[#allocation13 + $0xc0] sm:$0xff] }
 0x1c0   : > { %3789 = vmatmul.mubr.msk.f32.vlgmr.msra.gmra.mrb[4].mxu1 %vm888_vm2, %v3754_v12 }
 0x1c1   : > { %3791 = vmatprep.mubr.msk.f32.mxu1 %vm888_vm2, %v682_v16  ;;  %3795 = vmatpush3.msk.msra.mxu1 %vm901_vm1, %v885_v23 }
 0x1c2   : > { %3802 = vmatprep.subr.msk.mxu1 %vm901_vm1, %v887_v26 }
 0x1c4   : > { %3792 = vmatmul.mubr.msk.f32.gmra.mrb[6].mxu1 %vm888_vm2, %v3757_v15 }
 0x28b   : > { %v3768_v33 = vpop.f32.mrb[0].mxu1  ;;  %v3782_v34 = vpop.f32.mrb[4].mxu0 }
 0x28c   : > { %v769_v35 = vpop.f32.mrb[1].mxu1  ;;  %v866_v36 = vpop.f32.mrb[5].mxu0 }
 0x28d   : > { %3796 = vmatprep.mubr.msk.f32.mxu1 %vm888_vm2, %v769_v35  ;;  %v5032_v35 = vld [vmem:[#allocation13 + $0xb8] sm:$0xff] }
 0x28e   : > { %3797 = vmatmul.mubr.msk.f32.vlgmr.msra.gmra.mrb[4].mxu1 %vm888_vm2, %v3768_v33 }
 0x28f   : > { %v3771_v37 = vpop.f32.mrb[2].mxu1  ;;  %3803 = vmatpush3.msk.msra.mxu1 %vm901_vm1, %v887_v26  ;;  %v3785_v38 = vpop.f32.mrb[6].mxu0  ;;  %v2185_v26 = vld [vmem:[#allocation13 + $0xc8] sm:$0xff] }
 0x290   : > { %v779_v39 = vpop.f32.mrb[3].mxu1  ;;  %v876_v40 = vpop.f32.mrb[7].mxu0 }
 0x291   : > { %3799 = vmatprep.mubr.msk.f32.mxu1 %vm888_vm2, %v779_v39 }
 0x292   : > { %3800 = vmatmul.mubr.msk.f32.gmra.mrb[6].mxu1 %vm888_vm2, %v3771_v37 }
 0x293   : > { %3804 = vmatprep.mubr.msk.f32.mxu1 %vm888_vm2, %v866_v36 }
 0x296   : > { %3805 = vmatmul.mubr.msk.f32.vlgmr.msra.gmra.mrb[4].mxu1 %vm888_vm2, %v3782_v34  ;;  %v5030_v34 = vld [vmem:[#allocation13 + $0xb0] sm:$0xff] }
 0x297   : > { %3807 = vmatprep.mubr.msk.f32.mxu1 %vm888_vm2, %v876_v40 }
 0x29a   : > { %3808 = vmatmul.mubr.msk.f32.gmra.mrb[6].mxu1 %vm888_vm2, %v3785_v38 }
 0x369   : > { %v4953_v41 = vpop.f32.mrb[4].mxu1 }
 0x36a   : > { %v4955_v42 = vpop.f32.mrb[5].mxu1 }
 0x36b   : > { %3818 = vmatprep.mubr.msk.f32.mxu0 %vm593_vm0, %v4955_v42 }
 0x36c   : > { %3819 = vmatmul.mubr.msk.f32.vlgmr.msra.gmra.mrb[8].mxu0 %vm593_vm0, %v4953_v41 }
 0x36d   : > { %v4961_v43 = vpop.f32.mrb[6].mxu1 }
 0x36e   : > { %v4963_v44 = vpop.f32.mrb[7].mxu1 }
 0x36f   : > { %3821 = vmatprep.mubr.msk.f32.mxu0 %vm593_vm0, %v4963_v44 }
 0x370   : > { %3822 = vmatmul.mubr.msk.f32.gmra.mrb[10].mxu0 %vm593_vm0, %v4961_v43 }
 0x43f   : > { %v3820_v46 = vpop.f32.mrb[8].mxu0 }
 0x440   : > { %v1291_v47 = vadd.f32 %v3820_v46, %v3561_v45  ;;  %v1285_v48 = vpop.f32.mrb[9].mxu0 }
 0x441   : > { %v1286_v49 = vadd.f32 %v3561_v45, %v1285_v48 }
 0x443   : > { %v3823_v50 = vpop.f32.mrb[10].mxu0  ;;  %3828 = vmatprep.mubr.msk.f32.mxu0 %vm593_vm0, %v1286_v49  ;;  %v4970_v51 = vpack.i.bf16 %v1291_v47, %v1286_v49 }
 0x444   : > { %v1301_v52 = vadd.f32 %v3823_v50, %v3561_v45  ;;  %v1295_v53 = vpop.f32.mrb[11].mxu0 }
 0x445   : > { %v1296_v54 = vadd.f32 %v3561_v45, %v1295_v53  ;;  %4183 = vrot.lane.b32.xlu0 %v4970_v51, %s4537_s21 }
 0x447   : > { %3842 = vmatprep.mubr.msk.f32.mxu1 %vm593_vm0, %v1296_v54  ;;  %v4974_v55 = vpack.i.bf16 %v1301_v52, %v1296_v54 }
 0x449   : > { %4188 = vrot.lane.b32.xlu0 %v4974_v55, %s4537_s21 }
 0x4b7   : > { %v4184_v56 = vpop.permute.xlu0 %4183 }
 0x4b8   : > { %v4186_v57 = vunpack.i.h.bf16 %v4184_v56  ;;  %v4185_v58 = vunpack.i.l.bf16 %v4184_v56 }
 0x4ba   : > { %v3976_v59 = vpack.c.bf16 %v4186_v57, %v4185_v58 }
 0x4bb   : > { %v4189_v60 = vpop.permute.xlu0 %4188 }
 0x4bc   : > { %v4191_v61 = vunpack.i.h.bf16 %v4189_v60  ;;  %v4190_v62 = vunpack.i.l.bf16 %v4189_v60  ;;  %3978 = vmatprep.subr.msk.bf16.mxu0 %vm3977_vm3, %v3976_v59 }
 0x4bd   : > { %3981 = vmatpush3.bf16.xpose.msk.msra.mxu0 %vm3977_vm3, %v3976_v59 }
 0x4be   : > { %v3986_v63 = vpack.c.bf16 %v4191_v61, %v4190_v62 }
 0x4c0   : > { %3988 = vmatprep.subr.msk.bf16.mxu1 %vm3977_vm3, %v3986_v63 }
 0x4c1   : > { %3991 = vmatpush3.bf16.xpose.msk.msra.mxu1 %vm3977_vm3, %v3986_v63 }
 0x4c4   : > { %3829 = vmatmul.mubr.msk.f32.vlgmr.msra.gmra.mrb[12].mxu0 %vm593_vm0, %v1291_v47 }
 0x4c8   : > { %3843 = vmatmul.mubr.msk.f32.vlgmr.msra.gmra.mrb[8].mxu1 %vm593_vm0, %v1301_v52 }
 0x597   : > { %v4997_v8 = vpop.f32.mrb[12].mxu0 }
 0x598   : > { %v4999_v9 = vpop.f32.mrb[13].mxu0  ;;  %v1396_v10 = vmul.f32 %v4997_v8, %v4981_v0  ;;  %v1441_v11 = vmul.f32 %v4997_v8, %v4983_v1  ;;  %v1419_v12 = vmul.f32 %v4997_v8, %v4987_v3  ;;  %v1463_v13 = vmul.f32 %v4997_v8, %v4989_v4 }
 0x599   : > { %v1395_v14 = vmul.f32 %v4985_v2, %v4999_v9  ;;  %v1440_v15 = vmul.f32 %v4991_v5, %v4999_v9  ;;  %v1418_v16 = vmul.f32 %v4993_v6, %v4999_v9  ;;  %v1462_v17 = vmul.f32 %v4995_v7, %v4999_v9 }
 0x59a   : > { %v1399_v18 = vsel %vm1397_vm4, %v1396_v10, 0.0  ;;  %v1443_v19 = vsel %vm1397_vm4, %v1441_v11, 0.0  ;;  %v1421_v20 = vsel %vm1397_vm4, %v1419_v12, 0.0  ;;  %v1465_v21 = vsel %vm1397_vm4, %v1463_v13, 0.0 }
 0x59b   : > { %v5021_v22 = vpop.f32.mrb[8].mxu1  ;;  %v1398_v23 = vsel %vm1397_vm4, %v1395_v14, 0.0  ;;  %v1442_v24 = vsel %vm1397_vm4, %v1440_v15, 0.0  ;;  %v1420_v25 = vsel %vm1397_vm4, %v1418_v16, 0.0  ;;  %v1464_v27 = vsel %vm1397_vm4, %v1462_v17, 0.0 }
 0x59c   : > { %v5027_v28 = vpop.f32.mrb[9].mxu1  ;;  %v1400_v29 = vadd.f32 %v1399_v18, %v1398_v23  ;;  %v1444_v30 = vadd.f32 %v1443_v19, %v1442_v24  ;;  %v1422_v31 = vadd.f32 %v1421_v20, %v1420_v25  ;;  %v2187_v33 = vmul.f32 %v5021_v22, %v2185_v26  ;;  %v2220_v20 = vld [vmem:[#allocation13 + $0xa0] sm:$0xff] }
 0x59d   : > { %v2186_v36 = vmul.f32 %v2184_v32, %v5027_v28  ;;  %v1466_v37 = vadd.f32 %v1465_v21, %v1464_v27  ;;  %v2204_v38 = vmul.f32 %v5030_v34, %v5027_v28  ;;  %v2205_v39 = vmul.f32 %v5021_v22, %v5032_v35 }
 0x59e   : > { %v1401_v40 = vrot.slane %v1400_v29, 4  ;;  %v1445_v45 = vrot.slane %v1444_v30, 4  ;;  %v1423_v46 = vrot.slane %v1422_v31, 4  ;;  %v2189_v47 = vsel %vm1397_vm4, %v2187_v33, 0.0 }
 0x59f   : > { %v2188_v48 = vsel %vm1397_vm4, %v2186_v36, 0.0  ;;  %v1467_v49 = vrot.slane %v1466_v37, 4  ;;  %v2206_v50 = vsel %vm1397_vm4, %v2204_v38, 0.0  ;;  %v2207_v52 = vsel %vm1397_vm4, %v2205_v39, 0.0 }
 0x5a0   : > { %v1402_v53 = vadd.f32 %v1401_v40, %v1400_v29  ;;  %v1446_v54 = vadd.f32 %v1445_v45, %v1444_v30  ;;  %v1424_v56 = vadd.f32 %v1423_v46, %v1422_v31  ;;  %v2190_v57 = vadd.f32 %v2189_v47, %v2188_v48  ;;  %v2221_v31 = vld [vmem:[#allocation13 + $0xa8] sm:$0xff] }
 0x5a1   : > { %v1468_v58 = vadd.f32 %v1467_v49, %v1466_v37  ;;  %v2208_v59 = vadd.f32 %v2207_v52, %v2206_v50  ;;  %v1484_v60 = vmul.f32 %v2184_v32, %v4999_v9  ;;  %v1485_v61 = vmul.f32 %v4997_v8, %v2185_v26 }
 0x5a2   : > { %v1403_v62 = vrot.slane %v1402_v53, 2  ;;  %v1447_v63 = vrot.slane %v1446_v54, 2  ;;  %v1425_v10 = vrot.slane %v1424_v56, 2  ;;  %v2191_v11 = vrot.slane %v2190_v57, 4 }
 0x5a3   : > { %v1469_v12 = vrot.slane %v1468_v58, 2  ;;  %v2209_v13 = vrot.slane %v2208_v59, 4  ;;  %v1486_v14 = vsel %vm1397_vm4, %v1484_v60, 0.0  ;;  %v1487_v15 = vsel %vm1397_vm4, %v1485_v61, 0.0 }
 0x5a4   : > { %v1404_v16 = vadd.f32 %v1403_v62, %v1402_v53  ;;  %v1448_v17 = vadd.f32 %v1447_v63, %v1446_v54  ;;  %v1426_v18 = vadd.f32 %v1425_v10, %v1424_v56  ;;  %v2192_v19 = vadd.f32 %v2191_v11, %v2190_v57  ;;  %v2238_v10 = vld [vmem:[#allocation13 + $0x90] sm:$0xff]  ;;  %v2239_v11 = vld [vmem:[#allocation13 + $0x98] sm:$0xff] }
 0x5a5   : > { %v1470_v21 = vadd.f32 %v1469_v12, %v1468_v58  ;;  %v2210_v23 = vadd.f32 %v2209_v13, %v2208_v59  ;;  %v1488_v24 = vadd.f32 %v1487_v15, %v1486_v14  ;;  %v2222_v25 = vmul.f32 %v2220_v20, %v5027_v28 }
 0x5a6   : > { %v1405_v26 = vrot.slane %v1404_v16, 1  ;;  %v1449_v27 = vrot.slane %v1448_v17, 1  ;;  %v1427_v29 = vrot.slane %v1426_v18, 1  ;;  %v2193_v30 = vrot.slane %v2192_v19, 2 }
 0x5a7   : > { %v1471_v32 = vrot.slane %v1470_v21, 1  ;;  %v2211_v33 = vrot.slane %v2210_v23, 2  ;;  %v1489_v36 = vrot.slane %v1488_v24, 4  ;;  %v2223_v37 = vmul.f32 %v5021_v22, %v2221_v31 }
 0x5a8   : > { %v1406_v38 = vadd.f32 %v1405_v26, %v1404_v16  ;;  %v1450_v39 = vadd.f32 %v1449_v27, %v1448_v17  ;;  %v1428_v40 = vadd.f32 %v1427_v29, %v1426_v18  ;;  %v2194_v45 = vadd.f32 %v2193_v30, %v2192_v19  ;;  %v2256_v29 = vld [vmem:[#allocation13 + $0x80] sm:$0xff] }
 0x5a9   : > { %v1472_v46 = vadd.f32 %v1471_v32, %v1470_v21  ;;  %v2212_v47 = vadd.f32 %v2211_v33, %v2210_v23  ;;  %v1490_v48 = vadd.f32 %v1489_v36, %v1488_v24  ;;  %v2224_v49 = vsel %vm1397_vm4, %v2222_v25, 0.0  ;;  %v2257_v36 = vld [vmem:[#allocation13 + $0x88] sm:$0xff] }
 0x5aa   : > { %v1407_v50 = vsel %vm1397_vm4, %v1406_v38, 0.0  ;;  %v1451_v52 = vsel %vm1397_vm4, %v1450_v39, 0.0  ;;  %v1429_v53 = vsel %vm1397_vm4, %v1428_v40, 0.0  ;;  %v2195_v54 = vrot.slane %v2194_v45, 1 }
 0x5ab   : > { %1408 = vadd.xlane.f32.xlu1 %v1407_v50  ;;  %1452 = vadd.xlane.f32.xlu0 %v1451_v52  ;;  %v1473_v56 = vsel %vm1397_vm4, %v1472_v46, 0.0  ;;  %v2213_v57 = vrot.slane %v2212_v47, 1  ;;  %v1491_v58 = vrot.slane %v1490_v48, 2  ;;  %v2225_v59 = vsel %vm1397_vm4, %v2223_v37, 0.0 }
 0x5ac   : > { %v2196_v60 = vadd.f32 %v2195_v54, %v2194_v45  ;;  %v2226_v61 = vadd.f32 %v2225_v59, %v2224_v49  ;;  %v1506_v62 = vmul.f32 %v5030_v34, %v4999_v9  ;;  %v1507_v63 = vmul.f32 %v4997_v8, %v5032_v35  ;;  %v2274_v59 = vld [vmem:[#allocation13 + $0x70] sm:$0xff] }
 0x5ad   : > { %v2214_v12 = vadd.f32 %v2213_v57, %v2212_v47  ;;  %v1492_v13 = vadd.f32 %v1491_v58, %v1490_v48  ;;  %v2240_v14 = vmul.f32 %v2238_v10, %v5027_v28  ;;  %v2241_v15 = vmul.f32 %v5021_v22, %v2239_v11 }
 0x5ae   : > { %v2197_v16 = vsel %vm1397_vm4, %v2196_v60, 0.0  ;;  %v2227_v17 = vrot.slane %v2226_v61, 4  ;;  %v1508_v18 = vsel %vm1397_vm4, %v1506_v62, 0.0  ;;  %v1509_v19 = vsel %vm1397_vm4, %v1507_v63, 0.0 }
 0x5af   : > { %1430 = vadd.xlane.f32.xlu1 %v1429_v53  ;;  %2198 = vadd.xlane.f32.xlu0 %v2197_v16  ;;  %v2215_v34 = vsel %vm1397_vm4, %v2214_v12, 0.0  ;;  %v1493_v35 = vrot.slane %v1492_v13, 1  ;;  %v1510_v21 = vadd.f32 %v1509_v19, %v1508_v18  ;;  %v2242_v23 = vsel %vm1397_vm4, %v2240_v14, 0.0 }
 0x5b0   : > { %v2228_v24 = vadd.f32 %v2227_v17, %v2226_v61  ;;  %v2243_v25 = vsel %vm1397_vm4, %v2241_v15, 0.0  ;;  %v1528_v26 = vmul.f32 %v2220_v20, %v4999_v9  ;;  %v1529_v27 = vmul.f32 %v4997_v8, %v2221_v31  ;;  %v2275_v15 = vld [vmem:[#allocation13 + $0x78] sm:$0xff] }
 0x5b1   : > { %v1494_v30 = vadd.f32 %v1493_v35, %v1492_v13  ;;  %v1511_v32 = vrot.slane %v1510_v21, 4  ;;  %v2244_v33 = vadd.f32 %v2243_v25, %v2242_v23  ;;  %v2258_v37 = vmul.f32 %v2256_v29, %v5027_v28 }
 0x5b2   : > { %v2229_v38 = vrot.slane %v2228_v24, 2  ;;  %v1530_v39 = vsel %vm1397_vm4, %v1528_v26, 0.0  ;;  %v1531_v40 = vsel %vm1397_vm4, %v1529_v27, 0.0  ;;  %v2259_v45 = vmul.f32 %v5021_v22, %v2257_v36 }
 0x5b3   : > { %1474 = vadd.xlane.f32.xlu1 %v1473_v56  ;;  %2216 = vadd.xlane.f32.xlu0 %v2215_v34  ;;  %v1495_v20 = vsel %vm1397_vm4, %v1494_v30, 0.0  ;;  %v1512_v46 = vadd.f32 %v1511_v32, %v1510_v21  ;;  %v2245_v31 = vrot.slane %v2244_v33, 4  ;;  %v1532_v47 = vadd.f32 %v1531_v40, %v1530_v39 }
 0x5b4   : > { %v2230_v48 = vadd.f32 %v2229_v38, %v2228_v24  ;;  %v2260_v49 = vsel %vm1397_vm4, %v2258_v37, 0.0  ;;  %v2261_v50 = vsel %vm1397_vm4, %v2259_v45, 0.0  ;;  %v1550_v52 = vmul.f32 %v2238_v10, %v4999_v9 }
 0x5b5   : > { %v1513_v53 = vrot.slane %v1512_v46, 2  ;;  %v2246_v54 = vadd.f32 %v2245_v31, %v2244_v33  ;;  %v1533_v57 = vrot.slane %v1532_v47, 4  ;;  %v2262_v58 = vadd.f32 %v2261_v50, %v2260_v49  ;;  %v2292_v31 = vld [vmem:[#allocation13 + $0x60] sm:$0xff] }
 0x5b6   : > { %v2231_v60 = vrot.slane %v2230_v48, 1  ;;  %v1551_v56 = vmul.f32 %v4997_v8, %v2239_v11  ;;  %v1552_v61 = vsel %vm1397_vm4, %v1550_v52, 0.0  ;;  %v2276_v62 = vmul.f32 %v2274_v59, %v5027_v28 }
 0x5b7   : > { %1496 = vadd.xlane.f32.xlu1 %v1495_v20  ;;  %v1514_v63 = vadd.f32 %v1513_v53, %v1512_v46  ;;  %v2247_v12 = vrot.slane %v2246_v54, 2  ;;  %v1534_v13 = vadd.f32 %v1533_v57, %v1532_v47  ;;  %v2263_v14 = vrot.slane %v2262_v58, 4 }
 0x5b8   : > { %v2232_v16 = vadd.f32 %v2231_v60, %v2230_v48  ;;  %v1553_v10 = vsel %vm1397_vm4, %v1551_v56, 0.0  ;;  %v2277_v17 = vmul.f32 %v5021_v22, %v2275_v15  ;;  %v2278_v18 = vsel %vm1397_vm4, %v2276_v62, 0.0 }
 0x5b9   : > { %v1515_v19 = vrot.slane %v1514_v63, 1  ;;  %v2248_v34 = vadd.f32 %v2247_v12, %v2246_v54  ;;  %v1535_v11 = vrot.slane %v1534_v13, 2  ;;  %v2264_v35 = vadd.f32 %v2263_v14, %v2262_v58  ;;  %v2293_v54 = vld [vmem:[#allocation13 + $0x68] sm:$0xff] }
 0x5ba   : > { %v2233_v21 = vsel %vm1397_vm4, %v2232_v16, 0.0  ;;  %v1554_v23 = vadd.f32 %v1553_v10, %v1552_v61  ;;  %v2279_v24 = vsel %vm1397_vm4, %v2277_v17, 0.0  ;;  %v1572_v25 = vmul.f32 %v2256_v29, %v4999_v9 }
 0x5bb   : > { %2234 = vadd.xlane.f32.xlu0 %v2233_v21  ;;  %v1516_v26 = vadd.f32 %v1515_v19, %v1514_v63  ;;  %v2249_v27 = vrot.slane %v2248_v34, 1  ;;  %v1536_v30 = vadd.f32 %v1535_v11, %v1534_v13  ;;  %v2265_v32 = vrot.slane %v2264_v35, 2  ;;  %v5100_v11 = vld [vmem:[#allocation13 + $0x50] sm:$0xff] }
 0x5bc   : > { %v1555_v33 = vrot.slane %v1554_v23, 4  ;;  %v2280_v37 = vadd.f32 %v2279_v24, %v2278_v18  ;;  %v1573_v38 = vmul.f32 %v4997_v8, %v2257_v36  ;;  %v1574_v39 = vsel %vm1397_vm4, %v1572_v25, 0.0 }
 0x5bd   : > { %v1517_v40 = vsel %vm1397_vm4, %v1516_v26, 0.0  ;;  %v2250_v45 = vadd.f32 %v2249_v27, %v2248_v34  ;;  %v1537_v20 = vrot.slane %v1536_v30, 1  ;;  %v2266_v46 = vadd.f32 %v2265_v32, %v2264_v35 }
 0x5be   : > { %1518 = vadd.xlane.f32.xlu1 %v1517_v40  ;;  %v1556_v47 = vadd.f32 %v1555_v33, %v1554_v23  ;;  %v2281_v29 = vrot.slane %v2280_v37, 4  ;;  %v1575_v48 = vsel %vm1397_vm4, %v1573_v38, 0.0  ;;  %v2294_v49 = vmul.f32 %v2292_v31, %v5027_v28  ;;  %v5103_v23 = vld [vmem:[#allocation13 + $0x58] sm:$0xff] }
 0x5bf   : > { %v2251_v50 = vsel %vm1397_vm4, %v2250_v45, 0.0  ;;  %v1538_v52 = vadd.f32 %v1537_v20, %v1536_v30  ;;  %v2267_v53 = vrot.slane %v2266_v46, 1  ;;  %v1576_v36 = vadd.f32 %v1575_v48, %v1574_v39 }
 0x5c0   : > { %2252 = vadd.xlane.f32.xlu0 %v2251_v50  ;;  %v1557_v57 = vrot.slane %v1556_v47, 2  ;;  %v2282_v58 = vadd.f32 %v2281_v29, %v2280_v37  ;;  %v2295_v60 = vmul.f32 %v5021_v22, %v2293_v54  ;;  %v2296_v56 = vsel %vm1397_vm4, %v2294_v49, 0.0 }
 0x5c1   : > { %v1539_v61 = vsel %vm1397_vm4, %v1538_v52, 0.0  ;;  %v2268_v62 = vadd.f32 %v2267_v53, %v2266_v46  ;;  %v1577_v63 = vrot.slane %v1576_v36, 4  ;;  %v1594_v12 = vmul.f32 %v2274_v59, %v4999_v9  ;;  %v5115_v53 = vld [vmem:[#allocation13 + $0x40] sm:$0xff] }
 0x5c2   : > { %1540 = vadd.xlane.f32.xlu1 %v1539_v61  ;;  %v1558_v13 = vadd.f32 %v1557_v57, %v1556_v47  ;;  %v2283_v14 = vrot.slane %v2282_v58, 2  ;;  %v2297_v16 = vsel %vm1397_vm4, %v2295_v60, 0.0  ;;  %v1595_v10 = vmul.f32 %v4997_v8, %v2275_v15 }
 0x5c3   : > { %v2269_v17 = vsel %vm1397_vm4, %v2268_v62, 0.0  ;;  %v1578_v18 = vadd.f32 %v1577_v63, %v1576_v36  ;;  %v2298_v19 = vadd.f32 %v2297_v16, %v2296_v56  ;;  %v1596_v34 = vsel %vm1397_vm4, %v1594_v12, 0.0  ;;  %v5121_v62 = vld [vmem:[#allocation13 + $0x48] sm:$0xff]  ;;  %v5123_v63 = vld [vmem:[#allocation13 + $0x30] sm:$0xff] }
 0x5c4   : > { %2270 = vadd.xlane.f32.xlu0 %v2269_v17  ;;  %v1559_v35 = vrot.slane %v1558_v13, 1  ;;  %v2284_v21 = vadd.f32 %v2283_v14, %v2282_v58  ;;  %v1597_v59 = vsel %vm1397_vm4, %v1595_v10, 0.0  ;;  %v2312_v24 = vmul.f32 %v5100_v11, %v5027_v28 }
 0x5c5   : > { %v1579_v25 = vrot.slane %v1578_v18, 2  ;;  %v2299_v15 = vrot.slane %v2298_v19, 4  ;;  %v1598_v26 = vadd.f32 %v1597_v59, %v1596_v34  ;;  %v2313_v27 = vmul.f32 %v5021_v22, %v5103_v23  ;;  %v5131_v34 = vld [vmem:[#allocation13 + $0x38] sm:$0xff] }
 0x5c6   : > { %v1560_v30 = vadd.f32 %v1559_v35, %v1558_v13  ;;  %v2285_v32 = vrot.slane %v2284_v21, 1  ;;  %v2314_v33 = vsel %vm1397_vm4, %v2312_v24, 0.0  ;;  %v1616_v37 = vmul.f32 %v2292_v31, %v4999_v9 }
 0x5c7   : > { %v1580_v38 = vadd.f32 %v1579_v25, %v1578_v18  ;;  %v2300_v39 = vadd.f32 %v2299_v15, %v2298_v19  ;;  %v1599_v40 = vrot.slane %v1598_v26, 4  ;;  %v2315_v45 = vsel %vm1397_vm4, %v2313_v27, 0.0 }
 0x5c8   : > { %v1561_v20 = vsel %vm1397_vm4, %v1560_v30, 0.0  ;;  %v2286_v46 = vadd.f32 %v2285_v32, %v2284_v21  ;;  %v2316_v47 = vadd.f32 %v2315_v45, %v2314_v33  ;;  %v1617_v29 = vmul.f32 %v4997_v8, %v2293_v54 }
 0x5c9   : > { %1562 = vadd.xlane.f32.xlu1 %v1561_v20  ;;  %v1581_v48 = vrot.slane %v1580_v38, 1  ;;  %v2301_v49 = vrot.slane %v2300_v39, 2  ;;  %v1600_v50 = vadd.f32 %v1599_v40, %v1598_v26  ;;  %v1618_v52 = vsel %vm1397_vm4, %v1616_v37, 0.0 }
 0x5ca   : > { %v2287_v31 = vsel %vm1397_vm4, %v2286_v46, 0.0  ;;  %v2317_v36 = vrot.slane %v2316_v47, 4  ;;  %v1619_v57 = vsel %vm1397_vm4, %v1617_v29, 0.0  ;;  %v2330_v58 = vmul.f32 %v5115_v53, %v5027_v28 }
 0x5cb   : > { %2288 = vadd.xlane.f32.xlu0 %v2287_v31  ;;  %v1582_v60 = vadd.f32 %v1581_v48, %v1580_v38  ;;  %v2302_v56 = vadd.f32 %v2301_v49, %v2300_v39  ;;  %v1601_v54 = vrot.slane %v1600_v50, 2  ;;  %v1620_v61 = vadd.f32 %v1619_v57, %v1618_v52  ;;  %v5146_v52 = vld [vmem:[#allocation13 + $0x10] sm:$0xff] }
 0x5cc   : > { %v2318_v12 = vadd.f32 %v2317_v36, %v2316_v47  ;;  %v2331_v13 = vmul.f32 %v5021_v22, %v5121_v62  ;;  %v2332_v14 = vsel %vm1397_vm4, %v2330_v58, 0.0  ;;  %v2348_v16 = vmul.f32 %v5123_v63, %v5027_v28 }
 0x5cd   : > { %v1583_v10 = vsel %vm1397_vm4, %v1582_v60, 0.0  ;;  %v2303_v17 = vrot.slane %v2302_v56, 1  ;;  %v1602_v18 = vadd.f32 %v1601_v54, %v1600_v50  ;;  %v1621_v19 = vrot.slane %v1620_v61, 4 }
 0x5ce   : > { %1584 = vadd.xlane.f32.xlu1 %v1583_v10  ;;  %v2319_v35 = vrot.slane %v2318_v12, 2  ;;  %v2333_v21 = vsel %vm1397_vm4, %v2331_v13, 0.0  ;;  %v2349_v59 = vmul.f32 %v5021_v22, %v5131_v34  ;;  %v2350_v24 = vsel %vm1397_vm4, %v2348_v16, 0.0 }
 0x5cf   : > { %v2304_v25 = vadd.f32 %v2303_v17, %v2302_v56  ;;  %v1603_v15 = vrot.slane %v1602_v18, 1  ;;  %v1622_v26 = vadd.f32 %v1621_v19, %v1620_v61  ;;  %v2334_v27 = vadd.f32 %v2333_v21, %v2332_v14 }
 0x5d0   : > { %v2320_v30 = vadd.f32 %v2319_v35, %v2318_v12  ;;  %v2351_v32 = vsel %vm1397_vm4, %v2349_v59, 0.0  ;;  %v2114_v33 = vmul.f32 %v5027_v28, %v4985_v2  ;;  %v2115_v37 = vmul.f32 %v5021_v22, %v4981_v0  ;;  %v5148_v0 = vld [vmem:[#allocation13 + $0x18] sm:$0xff] }
 0x5d1   : > { %v2305_v38 = vsel %vm1397_vm4, %v2304_v25, 0.0  ;;  %v1604_v39 = vadd.f32 %v1603_v15, %v1602_v18  ;;  %v1623_v40 = vrot.slane %v1622_v26, 2  ;;  %v2335_v45 = vrot.slane %v2334_v27, 4 }
 0x5d2   : > { %2306 = vadd.xlane.f32.xlu0 %v2305_v38  ;;  %v2321_v20 = vrot.slane %v2320_v30, 1  ;;  %v2352_v46 = vadd.f32 %v2351_v32, %v2350_v24  ;;  %v2116_v47 = vsel %vm1397_vm4, %v2114_v33, 0.0  ;;  %v2117_v29 = vsel %vm1397_vm4, %v2115_v37, 0.0 }
 0x5d3   : > { %v1605_v48 = vsel %vm1397_vm4, %v1604_v39, 0.0  ;;  %v1624_v49 = vadd.f32 %v1623_v40, %v1622_v26  ;;  %v2336_v50 = vadd.f32 %v2335_v45, %v2334_v27  ;;  %v2118_v2 = vadd.f32 %v2117_v29, %v2116_v47 }
 0x5d4   : > { %1606 = vadd.xlane.f32.xlu1 %v1605_v48  ;;  %v2322_v31 = vadd.f32 %v2321_v20, %v2320_v30  ;;  %v2353_v36 = vrot.slane %v2352_v46, 4  ;;  %v2384_v57 = vmul.f32 %v5146_v52, %v5027_v28  ;;  %v2385_v58 = vmul.f32 %v5021_v22, %v5148_v0 }
 0x5d5   : > { %v1625_v60 = vrot.slane %v1624_v49, 1  ;;  %v2337_v56 = vrot.slane %v2336_v50, 2  ;;  %v2119_v54 = vrot.slane %v2118_v2, 4  ;;  %v2132_v61 = vmul.f32 %v5027_v28, %v4993_v6 }
 0x5d6   : > { %v2323_v12 = vsel %vm1397_vm4, %v2322_v31, 0.0  ;;  %v2354_v13 = vadd.f32 %v2353_v36, %v2352_v46  ;;  %v2386_v14 = vsel %vm1397_vm4, %v2384_v57, 0.0  ;;  %v2387_v16 = vsel %vm1397_vm4, %v2385_v58, 0.0 }
 0x5d7   : > { %2324 = vadd.xlane.f32.xlu0 %v2323_v12  ;;  %v1626_v10 = vadd.f32 %v1625_v60, %v1624_v49  ;;  %v2338_v17 = vadd.f32 %v2337_v56, %v2336_v50  ;;  %v2120_v18 = vadd.f32 %v2119_v54, %v2118_v2  ;;  %v2388_v19 = vadd.f32 %v2387_v16, %v2386_v14 }
 0x5d8   : > { %v2355_v35 = vrot.slane %v2354_v13, 2  ;;  %v2133_v21 = vmul.f32 %v5021_v22, %v4987_v3  ;;  %v2134_v59 = vsel %vm1397_vm4, %v2132_v61, 0.0  ;;  %v2150_v6 = vmul.f32 %v5027_v28, %v4991_v5 }
 0x5d9   : > { %v1627_v24 = vsel %vm1397_vm4, %v1626_v10, 0.0  ;;  %v2339_v25 = vrot.slane %v2338_v17, 1  ;;  %v2121_v15 = vrot.slane %v2120_v18, 2  ;;  %v2389_v26 = vrot.slane %v2388_v19, 4 }
 0x5da   : > { %1628 = vadd.xlane.f32.xlu1 %v1627_v24  ;;  %v2356_v27 = vadd.f32 %v2355_v35, %v2354_v13  ;;  %v2135_v30 = vsel %vm1397_vm4, %v2133_v21, 0.0  ;;  %v2151_v32 = vmul.f32 %v5021_v22, %v4983_v1  ;;  %v2152_v33 = vsel %vm1397_vm4, %v2150_v6, 0.0 }
 0x5db   : > { %v2340_v3 = vadd.f32 %v2339_v25, %v2338_v17  ;;  %v2122_v37 = vadd.f32 %v2121_v15, %v2120_v18  ;;  %v2390_v38 = vadd.f32 %v2389_v26, %v2388_v19  ;;  %v2136_v39 = vadd.f32 %v2135_v30, %v2134_v59 }
 0x5dc   : > { %v2357_v40 = vrot.slane %v2356_v27, 1  ;;  %v2153_v5 = vsel %vm1397_vm4, %v2151_v32, 0.0  ;;  %v2168_v45 = vmul.f32 %v5027_v28, %v4995_v7  ;;  %v2169_v20 = vmul.f32 %v5021_v22, %v4989_v4 }
 0x5dd   : > { %v2341_v46 = vsel %vm1397_vm4, %v2340_v3, 0.0  ;;  %v2123_v47 = vrot.slane %v2122_v37, 1  ;;  %v2391_v29 = vrot.slane %v2390_v38, 2  ;;  %v2137_v1 = vrot.slane %v2136_v39, 4 }
 0x5de   : > { %2342 = vadd.xlane.f32.xlu0 %v2341_v46  ;;  %v2358_v48 = vadd.f32 %v2357_v40, %v2356_v27  ;;  %v2154_v49 = vadd.f32 %v2153_v5, %v2152_v33  ;;  %v2170_v50 = vsel %vm1397_vm4, %v2168_v45, 0.0  ;;  %v2171_v2 = vsel %vm1397_vm4, %v2169_v20, 0.0  ;;  %v5193_v27 = vld [vmem:[#allocation13 + $0x20] sm:$0xff] }
 0x5df   : > { %v2124_v31 = vadd.f32 %v2123_v47, %v2122_v37  ;;  %v2392_v36 = vadd.f32 %v2391_v29, %v2390_v38  ;;  %v2138_v57 = vadd.f32 %v2137_v1, %v2136_v39  ;;  %v2172_v58 = vadd.f32 %v2171_v2, %v2170_v50 }
 0x5e0   : > { %v2359_v7 = vsel %vm1397_vm4, %v2358_v48, 0.0  ;;  %v2155_v60 = vrot.slane %v2154_v49, 4  ;;  %v1638_v4 = vmul.f32 %v5100_v11, %v4999_v9  ;;  %v1639_v56 = vmul.f32 %v4997_v8, %v5103_v23 }
 0x5e1   : > { %v2125_v54 = vsel %vm1397_vm4, %v2124_v31, 0.0  ;;  %v2393_v61 = vrot.slane %v2392_v36, 1  ;;  %v2139_v12 = vrot.slane %v2138_v57, 2  ;;  %v2173_v13 = vrot.slane %v2172_v58, 4 }
 0x5e2   : > { %2360 = vadd.xlane.f32.xlu0 %v2359_v7  ;;  %2126 = vadd.xlane.f32.xlu1 %v2125_v54  ;;  %v2156_v14 = vadd.f32 %v2155_v60, %v2154_v49  ;;  %v1640_v16 = vsel %vm1397_vm4, %v1638_v4, 0.0  ;;  %v1641_v10 = vsel %vm1397_vm4, %v1639_v56, 0.0  ;;  %v1660_v17 = vmul.f32 %v5115_v53, %v4999_v9  ;;  %v5195_v53 = vld [vmem:[#allocation13 + $0x28] sm:$0xff] }
 0x5e3   : > { %v2394_v18 = vadd.f32 %v2393_v61, %v2392_v36  ;;  %v2140_v11 = vadd.f32 %v2139_v12, %v2138_v57  ;;  %v2174_v19 = vadd.f32 %v2173_v13, %v2172_v58  ;;  %v1642_v35 = vadd.f32 %v1641_v10, %v1640_v16 }
 0x5e4   : > { %v2157_v23 = vrot.slane %v2156_v14, 2  ;;  %v1661_v21 = vmul.f32 %v4997_v8, %v5121_v62  ;;  %v1662_v59 = vsel %vm1397_vm4, %v1660_v17, 0.0  ;;  %v1682_v6 = vmul.f32 %v5123_v63, %v4999_v9 }
 0x5e5   : > { %v2395_v24 = vsel %vm1397_vm4, %v2394_v18, 0.0  ;;  %v2141_v25 = vrot.slane %v2140_v11, 1  ;;  %v2175_v15 = vrot.slane %v2174_v19, 2  ;;  %v1643_v26 = vrot.slane %v1642_v35, 4 }
 0x5e6   : > { %2396 = vadd.xlane.f32.xlu0 %v2395_v24  ;;  %v2158_v30 = vadd.f32 %v2157_v23, %v2156_v14  ;;  %v1663_v32 = vsel %vm1397_vm4, %v1661_v21, 0.0  ;;  %v1683_v62 = vmul.f32 %v4997_v8, %v5131_v34  ;;  %v1684_v33 = vsel %vm1397_vm4, %v1682_v6, 0.0 }
 0x5e7   : > { %v2142_v3 = vadd.f32 %v2141_v25, %v2140_v11  ;;  %v2176_v63 = vadd.f32 %v2175_v15, %v2174_v19  ;;  %v1644_v37 = vadd.f32 %v1643_v26, %v1642_v35  ;;  %v1664_v38 = vadd.f32 %v1663_v32, %v1662_v59 }
 0x5e8   : > { %v2159_v39 = vrot.slane %v2158_v30, 1  ;;  %v1685_v40 = vsel %vm1397_vm4, %v1683_v62, 0.0  ;;  %v1704_v5 = vmul.f32 %v5193_v27, %v4999_v9  ;;  %v1705_v45 = vmul.f32 %v4997_v8, %v5195_v53 }
 0x5e9   : > { %v2143_v20 = vsel %vm1397_vm4, %v2142_v3, 0.0  ;;  %v2177_v46 = vrot.slane %v2176_v63, 1  ;;  %v1645_v47 = vrot.slane %v1644_v37, 2  ;;  %v1665_v34 = vrot.slane %v1664_v38, 4 }
 0x5ea   : > { %2144 = vadd.xlane.f32.xlu1 %v2143_v20  ;;  %v2160_v29 = vadd.f32 %v2159_v39, %v2158_v30  ;;  %v1686_v1 = vadd.f32 %v1685_v40, %v1684_v33  ;;  %v1706_v48 = vsel %vm1397_vm4, %v1704_v5, 0.0  ;;  %v1707_v49 = vsel %vm1397_vm4, %v1705_v45, 0.0 }
 0x5eb   : > { %v1646_v50 = vadd.f32 %v1645_v47, %v1644_v37  ;;  %v1666_v2 = vadd.f32 %v1665_v34, %v1664_v38  ;;  %v1708_v31 = vadd.f32 %v1707_v49, %v1706_v48  ;;  %v2178_v36 = vadd.f32 %v2177_v46, %v2176_v63 }
 0x5ec   : > { %v1687_v57 = vrot.slane %v1686_v1, 4  ;;  %v1726_v58 = vmul.f32 %v5146_v52, %v4999_v9  ;;  %v1727_v7 = vmul.f32 %v4997_v8, %v5148_v0  ;;  %v2161_v60 = vsel %vm1397_vm4, %v2160_v29, 0.0 }
 0x5ed   : > { %v1647_v4 = vrot.slane %v1646_v50, 1  ;;  %v1667_v56 = vrot.slane %v1666_v2, 2  ;;  %v1709_v54 = vrot.slane %v1708_v31, 4  ;;  %v2366_v14 = vmul.f32 %v5027_v28, %v5193_v27 }
 0x5ee   : > { %2162 = vadd.xlane.f32.xlu1 %v2161_v60  ;;  %v1688_v61 = vadd.f32 %v1687_v57, %v1686_v1  ;;  %v1728_v12 = vsel %vm1397_vm4, %v1726_v58, 0.0  ;;  %v1729_v13 = vsel %vm1397_vm4, %v1727_v7, 0.0  ;;  %v2367_v8 = vmul.f32 %v5021_v22, %v5195_v53 }
 0x5ef   : > { %v1668_v16 = vadd.f32 %v1667_v56, %v1666_v2  ;;  %v1710_v10 = vadd.f32 %v1709_v54, %v1708_v31  ;;  %v1730_v9 = vadd.f32 %v1729_v13, %v1728_v12  ;;  %v1648_v17 = vadd.f32 %v1647_v4, %v1646_v50 }
 0x5f0   : > { %v1689_v18 = vrot.slane %v1688_v61, 2  ;;  %v2368_v11 = vsel %vm1397_vm4, %v2366_v14, 0.0  ;;  %v2179_v19 = vsel %vm1397_vm4, %v2178_v36, 0.0  ;;  %v2369_v6 = vsel %vm1397_vm4, %v2367_v8, 0.0 }
 0x5f1   : > { %v1669_v35 = vrot.slane %v1668_v16, 1  ;;  %v1711_v23 = vrot.slane %v1710_v10, 2  ;;  %v1731_v21 = vrot.slane %v1730_v9, 4  ;;  %v2370_v24 = vadd.f32 %v2369_v6, %v2368_v11 }
 0x5f2   : > { %2180 = vadd.xlane.f32.xlu1 %v2179_v19  ;;  %v1690_v59 = vadd.f32 %v1689_v18, %v1688_v61  ;;  %v1649_v25 = vsel %vm1397_vm4, %v1648_v17, 0.0  ;;  %v1194_v54 = vlaneseq }
 0x5f3   : > { %v1732_v28 = vadd.f32 %v1731_v21, %v1730_v9  ;;  %v1670_v15 = vadd.f32 %v1669_v35, %v1668_v16  ;;  %v1712_v30 = vadd.f32 %v1711_v23, %v1710_v10  ;;  %v2371_v22 = vrot.slane %v2370_v24, 4 }
 0x5f4   : > { %v1691_v26 = vrot.slane %v1690_v59, 1  ;;  %v5231_v12 = vand.u32 127, %v1194_v54  ;;  %v4538_v16 = vmov 0.0  }
 0x5f5   : > { %v1733_v32 = vrot.slane %v1732_v28, 2  ;;  %v2372_v62 = vadd.f32 %v2371_v22, %v2370_v24  ;;  %v1671_v33 = vsel %vm1397_vm4, %v1670_v15, 0.0  ;;  %v1713_v63 = vrot.slane %v1712_v30, 1 }
 0x5f6   : > { %1650 = vadd.xlane.f32.xlu1 %v1649_v25  ;;  %v1692_v3 = vadd.f32 %v1691_v26, %v1690_v59  ;;  %vm1432_vm5 = vcmp.eq.s32.totalorder %v5231_v12, 1  ;;  %vm1410_vm6 = vcmp.eq.s32.totalorder %v5231_v12, 0  ;;  %vm1454_vm7 = vcmp.eq.s32.totalorder %v5231_v12, 2 }
 0x5f7   : > { %v1734_v37 = vadd.f32 %v1733_v32, %v1732_v28  ;;  %v2373_v38 = vrot.slane %v2372_v62, 2  ;;  %v1714_v40 = vadd.f32 %v1713_v63, %v1712_v30  ;;  %v3571_v10 = vsel %vm1432_vm5, 1.0, %v4538_v16 }
 0x5f8   : > { %v1693_v39 = vsel %vm1397_vm4, %v1692_v3, 0.0  ;;  %v3570_v9 = vsel %vm1410_vm6, 1.0, %v4538_v16  ;;  %vm1476_vm8 = vcmp.eq.s32.totalorder %v5231_v12, 3  ;;  %v3572_v19 = vsel %vm1454_vm7, 1.0, %v4538_v16 }
 0x5f9   : > { %v1735_v5 = vrot.slane %v1734_v37, 1  ;;  %v2374_v45 = vadd.f32 %v2373_v38, %v2372_v62  ;;  %v1715_v20 = vsel %vm1397_vm4, %v1714_v40, 0.0  ;;  %v3573_v21 = vsel %vm1476_vm8, 1.0, %v4538_v16 }
 0x5fa   : > { %1672 = vadd.xlane.f32.xlu1 %v1671_v33  ;;  %vm1498_vm9 = vcmp.eq.s32.totalorder %v5231_v12, 4  ;;  %vm1520_vm10 = vcmp.eq.s32.totalorder %v5231_v12, 5  ;;  %vm1542_vm11 = vcmp.eq.s32.totalorder %v5231_v12, 6  ;;  %vm1564_vm12 = vcmp.eq.s32.totalorder %v5231_v12, 7 }
 0x5fb   : > { %v1736_v46 = vadd.f32 %v1735_v5, %v1734_v37  ;;  %v2375_v47 = vrot.slane %v2374_v45, 1  ;;  %v3574_v15 = vsel %vm1498_vm9, 1.0, %v4538_v16  ;;  %v3575_v62 = vsel %vm1520_vm10, 1.0, %v4538_v16 }
 0x5fc   : > { %v3576_v37 = vsel %vm1542_vm11, 1.0, %v4538_v16  ;;  %vm1586_vm13 = vcmp.eq.s32.totalorder %v5231_v12, 8  ;;  %vm1608_vm14 = vcmp.eq.s32.totalorder %v5231_v12, 9  ;;  %vm1630_vm15 = vcmp.eq.s32.totalorder %v5231_v12, 10 }
 0x5fd   : > { %v1737_v34 = vsel %vm1397_vm4, %v1736_v46, 0.0  ;;  %v2376_v29 = vadd.f32 %v2375_v47, %v2374_v45  ;;  %v3577_v46 = vsel %vm1564_vm12, 1.0, %v4538_v16  ;;  %vm1652_vm1 = vcmp.eq.s32.totalorder %v5231_v12, 11 }
 0x5fe   : > { %1694 = vadd.xlane.f32.xlu1 %v1693_v39  ;;  %vm1674_vm2 = vcmp.eq.s32.totalorder %v5231_v12, 12  ;;  %vm1696_vm3 = vcmp.eq.s32.totalorder %v5231_v12, 13  ;;  %vm1718_vm5 = vcmp.eq.s32.totalorder %v5231_v12, 14  ;;  %vm1740_vm6 = vcmp.eq.s32.totalorder %v5231_v12, 15 }
 0x5ff   : > { %v2377_v1 = vsel %vm1397_vm4, %v2376_v29, 0.0 }
 0x602   : > { %1716 = vadd.xlane.f32.xlu1 %v1715_v20 }
 0x606   : > { %1738 = vadd.xlane.f32.xlu1 %v1737_v34 }
 0x60a   : > { %2378 = vadd.xlane.f32.xlu1 %v2377_v1 }
 0x638   : > { %v1409_v48 = vpop.xlane.xlu1 %1408  ;;  %v1453_v57 = vpop.xlane.xlu0 %1452 }
 0x639   : > { %v1413_v11 = vmul.f32 %v3570_v9, %v1409_v48  ;;  %v1457_v59 = vmul.f32 %v3572_v19, %v1453_v57  ;;  %v3578_v48 = vsel %vm1586_vm13, 1.0, %v4538_v16  ;;  %v3579_v57 = vsel %vm1608_vm14, 1.0, %v4538_v16 }
 0x63c   : > { %v1431_v49 = vpop.xlane.xlu1 %1430  ;;  %v2199_v7 = vpop.xlane.xlu0 %2198 }
 0x63d   : > { %v1435_v18 = vmul.f32 %v3571_v10, %v1431_v49  ;;  %v2200_v47 = vmul.f32 %v3574_v15, %v2199_v7 }
 0x63f   : > { %v1436_v35 = vadd.f32 %v1435_v18, %v1413_v11 }
 0x640   : > { %v1475_v50 = vpop.xlane.xlu1 %1474  ;;  %v2217_v4 = vpop.xlane.xlu0 %2216 }
 0x641   : > { %v1458_v24 = vadd.f32 %v1457_v59, %v1436_v35  ;;  %v1479_v25 = vmul.f32 %v3573_v21, %v1475_v50  ;;  %v2218_v50 = vmul.f32 %v3575_v62, %v2217_v4  ;;  %v3581_v35 = vsel %vm1652_vm1, 1.0, %v4538_v16 }
 0x642   : > { %v3582_v59 = vsel %vm1674_vm2, 1.0, %v4538_v16 }
 0x643   : > { %v1480_v63 = vadd.f32 %v1479_v25, %v1458_v24 }
 0x644   : > { %v1497_v2 = vpop.xlane.xlu1 %1496 }
 0x645   : > { %v1501_v30 = vmul.f32 %v3574_v15, %v1497_v2 }
 0x647   : > { %v1502_v45 = vadd.f32 %v1501_v30, %v1480_v63  ;;  %v3584_v30 = vsel %vm1718_vm5, 1.0, %v4538_v16 }
 0x648   : > { %v2235_v61 = vpop.xlane.xlu0 %2234 }
 0x64b   : > { %v1519_v31 = vpop.xlane.xlu1 %1518 }
 0x64c   : > { %v1523_v33 = vmul.f32 %v3575_v62, %v1519_v31 }
 0x64d   : > { %v5236_v14 = vpop.xlane.xlu0 %2252 }
 0x64e   : > { %v1524_v29 = vadd.f32 %v1523_v33, %v1502_v45  ;;  %v2254_v4 = vmul.f32 %v3577_v46, %v5236_v14 }
 0x64f   : > { %v1541_v36 = vpop.xlane.xlu1 %1540 }
 0x650   : > { %v1545_v40 = vmul.f32 %v3576_v37, %v1541_v36 }
 0x651   : > { %v5242_v8 = vpop.xlane.xlu0 %2270 }
 0x652   : > { %v1546_v31 = vadd.f32 %v1545_v40, %v1524_v29 }
 0x656   : > { %v1563_v58 = vpop.xlane.xlu1 %1562 }
 0x657   : > { %v1567_v34 = vmul.f32 %v3577_v46, %v1563_v58 }
 0x658   : > { %v2289_v6 = vpop.xlane.xlu0 %2288 }
 0x659   : > { %v2290_v14 = vmul.f32 %v3579_v57, %v2289_v6 }
 0x65b   : > { %v1585_v60 = vpop.xlane.xlu1 %1584 }
 0x65c   : > { %v1589_v2 = vmul.f32 %v3578_v48, %v1585_v60 }
 0x65f   : > { %v2307_v38 = vpop.xlane.xlu0 %2306 }
 0x661   : > { %v5229_v56 = vpop.xlane.xlu1 %1606 }
 0x662   : > { %v1611_v7 = vmul.f32 %v3579_v57, %v5229_v56  ;;  %v2272_v56 = vmul.f32 %v3578_v48, %v5242_v8 }
 0x664   : > { %v2325_v54 = vpop.xlane.xlu0 %2324 }
 0x667   : > { %v5233_v13 = vpop.xlane.xlu1 %1628 }
 0x66f   : > { %v2127_v17 = vpop.xlane.xlu1 %2126 }
 0x670   : > { %v2128_v32 = vmul.f32 %v3570_v9, %v2127_v17  ;;  %v1568_v9 = vadd.f32 %v1567_v34, %v1546_v31  ;;  %v3580_v17 = vsel %vm1630_vm15, 1.0, %v4538_v16 }
 0x671   : > { %v1633_v60 = vmul.f32 %v3580_v17, %v5233_v13 }
 0x677   : > { %v2145_v23 = vpop.xlane.xlu1 %2144 }
 0x678   : > { %v2146_v28 = vmul.f32 %v3571_v10, %v2145_v23  ;;  %v2236_v10 = vmul.f32 %v3576_v37, %v2235_v61 }
 0x67a   : > { %v2147_v3 = vadd.f32 %v2146_v28, %v2128_v32  ;;  %v2343_v28 = vpop.xlane.xlu0 %2342  ;;  %v2308_v32 = vmul.f32 %v3580_v17, %v2307_v38 }
 0x67b   : > { %v2163_v26 = vpop.xlane.xlu1 %2162  ;;  %v2344_v6 = vmul.f32 %v3582_v59, %v2343_v28 }
 0x67c   : > { %v2164_v22 = vmul.f32 %v3572_v19, %v2163_v26  ;;  %v1590_v19 = vadd.f32 %v1589_v2, %v1568_v9  ;;  %v3583_v26 = vsel %vm1696_vm3, 1.0, %v4538_v16 }
 0x67e   : > { %v2165_v5 = vadd.f32 %v2164_v22, %v2147_v3  ;;  %v1612_v23 = vadd.f32 %v1611_v7, %v1590_v19  ;;  %v2326_v3 = vmul.f32 %v3581_v35, %v2325_v54  ;;  %v2361_v40 = vpop.xlane.xlu0 %2360 }
 0x67f   : > { %v2181_v39 = vpop.xlane.xlu1 %2180  ;;  %v2362_v29 = vmul.f32 %v3583_v26, %v2361_v40 }
 0x680   : > { %v2182_v20 = vmul.f32 %v3573_v21, %v2181_v39  ;;  %v1634_v13 = vadd.f32 %v1633_v60, %v1612_v23 }
 0x682   : > { %v2183_v1 = vadd.f32 %v2182_v20, %v2165_v5  ;;  %v3585_v20 = vsel %vm1740_vm6, 1.0, %v4538_v16  ;;  %v2397_v48 = vpop.xlane.xlu0 %2396 }
 0x683   : > { %v1651_v49 = vpop.xlane.xlu1 %1650 }
 0x684   : > { %v2201_v36 = vadd.f32 %v2200_v47, %v2183_v1  ;;  %v1655_v21 = vmul.f32 %v3581_v35, %v1651_v49 }
 0x686   : > { %v2219_v58 = vadd.f32 %v2218_v50, %v2201_v36  ;;  %v1656_v22 = vadd.f32 %v1655_v21, %v1634_v13  ;;  %v2398_v36 = vmul.f32 %v3585_v20, %v2397_v48 }
 0x687   : > { %v1673_v18 = vpop.xlane.xlu1 %1672 }
 0x688   : > { %v2237_v11 = vadd.f32 %v2236_v10, %v2219_v58  ;;  %v1677_v15 = vmul.f32 %v3582_v59, %v1673_v18 }
 0x68a   : > { %v2255_v61 = vadd.f32 %v2254_v4, %v2237_v11  ;;  %v1678_v63 = vadd.f32 %v1677_v15, %v1656_v22 }
 0x68b   : > { %v1695_v24 = vpop.xlane.xlu1 %1694 }
 0x68c   : > { %v2273_v25 = vadd.f32 %v2272_v56, %v2255_v61  ;;  %v1699_v62 = vmul.f32 %v3583_v26, %v1695_v24 }
 0x68e   : > { %v2291_v33 = vadd.f32 %v2290_v14, %v2273_v25  ;;  %v1700_v5 = vadd.f32 %v1699_v62, %v1678_v63 }
 0x68f   : > { %v1717_v8 = vpop.xlane.xlu1 %1716 }
 0x690   : > { %v1721_v37 = vmul.f32 %v3584_v30, %v1717_v8  ;;  %v2309_v39 = vadd.f32 %v2308_v32, %v2291_v33 }
 0x692   : > { %v2327_v45 = vadd.f32 %v2326_v3, %v2309_v39  ;;  %v1722_v47 = vadd.f32 %v1721_v37, %v1700_v5 }
 0x693   : > { %v1739_v46 = vpop.xlane.xlu1 %1738 }
 0x694   : > { %v1743_v34 = vmul.f32 %v3585_v20, %v1739_v46  ;;  %v2345_v38 = vadd.f32 %v2344_v6, %v2327_v45 }
 0x696   : > { %v1744_v1 = vadd.f32 %v1743_v34, %v1722_v47  ;;  %v2363_v2 = vadd.f32 %v2362_v29, %v2345_v38 }
 0x697   : > { %v2379_v49 = vpop.xlane.xlu1 %2378 }
 0x698   : > { %v5275_v50 = vmul.f32 0.03125, %v1744_v1  ;;  %v2380_v31 = vmul.f32 %v3584_v30, %v2379_v49 }
 0x69a   : > { %v2381_v57 = vadd.f32 %v2380_v31, %v2363_v2  ;;  %v1746_v54 = vsel %vm1397_vm4, %v5275_v50, -inf }
 0x69b   : > { %1747 = vmax.xlane.f32.xlu1 %v1746_v54 }
 0x69c   : > { %v2399_v10 = vadd.f32 %v2398_v36, %v2381_v57 }
 0x69e   : > { %v5279_v7 = vmul.f32 0.03125, %v2399_v10 }
 0x6a0   : > { %v2401_v58 = vsel %vm1397_vm4, %v5279_v7, -inf }
 0x6a1   : > { %2402 = vmax.xlane.f32.xlu0 %v2401_v58 }
 0x728   : > { %v5283_v9 = vpop.xlane.xlu1 %1747 }
 0x729   : > { %vm1749_vm7 = vcmp.eq.f32.partialorder %v5275_v50, %v5283_v9 }
 0x72a   : > { %v1750_v17 = vsel %vm1749_vm7, %v5231_v12, 16 }
 0x72b   : > { %v1751_v18 = vsel %vm1397_vm4, %v1750_v17, 2147483647 }
 0x72c   : > { %v1753_v4 = vshra.s32 %v1751_v18, 16  ;;  %v1752_v23 = vand.u32 65535, %v1751_v18 }
 0x72e   : > { %v5289_v60 = vpop.xlane.xlu0 %2402  ;;  %v1755_v11 = vcvt.s32.f32 %v1753_v4  ;;  %v1754_v59 = vcvt.s32.f32 %v1752_v23  ;;  %v1796_v4 = vsub.f32 %v5275_v50, %v5283_v9 }
 0x72f   : > { %vm2404_vm8 = vcmp.eq.f32.partialorder %v5279_v7, %v5289_v60 }
 0x730   : > { %v2405_v19 = vsel %vm2404_vm8, %v5231_v12, 16  ;;  %1756 = vmin.xlane.f32.xlu1 %v1755_v11 }
 0x731   : > { %v2406_v35 = vsel %vm1397_vm4, %v2405_v19, 2147483647  ;;  %v2451_v19 = vsub.f32 %v5279_v7, %v5289_v60 }
 0x732   : > { %v2408_v56 = vshra.s32 %v2406_v35, 16  ;;  %v2407_v24 = vand.u32 65535, %v2406_v35 }
 0x734   : > { %v2410_v61 = vcvt.s32.f32 %v2408_v56  ;;  %v2409_v25 = vcvt.s32.f32 %v2407_v24  ;;  %v2452_v56 = vmul.f32 1.442695, %v2451_v19 }
 0x736   : > { %2411 = vmin.xlane.f32.xlu0 %v2410_v61 }
 0x7bd   : > { %v1757_v21 = vpop.xlane.xlu1 %1756 }
 0x7be   : > { %vm1758_vm9 = vcmp.eq.f32.partialorder %v1755_v11, %v1757_v21  ;;  %v1763_v15 = vcvt.f32.s32 %v1757_v21  ;;  %v1797_v11 = vmul.f32 1.442695, %v1796_v4 }
 0x7bf   : > { %v1759_v28 = vsel %vm1758_vm9, %v1754_v59, inf }
 0x7c0   : > { %1760 = vmin.xlane.f32.xlu1 %v1759_v28  ;;  %v1764_v30 = vshll.u32 %v1763_v15, 16  ;;  %4234 = vpow2.f32 %v1797_v11 }
 0x7c1   : > { %4236 = vpow2.f32 %v2452_v56  ;;  %v5333_v56 = vld [vmem:[#allocation13] sm:$0xff] }
 0x7c3   : > { %v2412_v14 = vpop.xlane.xlu0 %2411 }
 0x7c4   : > { %vm2413_vm10 = vcmp.eq.f32.partialorder %v2410_v61, %v2412_v14  ;;  %v2418_v22 = vcvt.f32.s32 %v2412_v14 }
 0x7c5   : > { %v2414_v13 = vsel %vm2413_vm10, %v2409_v25, inf }
 0x7c6   : > { %2415 = vmin.xlane.f32.xlu0 %v2414_v13  ;;  %v2419_v3 = vshll.u32 %v2418_v22, 16 }
 0x7ca   : > { %v4235_v13 = vpop.eup %4234 }
 0x84d   : > { %v1761_v26 = vpop.xlane.xlu1 %1760 }
 0x84e   : > { %v1762_v32 = vcvt.f32.s32 %v1761_v26 }
 0x850   : > { %v1765_v62 = vadd.s32 %v1764_v30, %v1762_v32  ;;  %v4237_v32 = vpop.eup %4236 }
 0x852   : > { %vm1766_vm11 = vcmp.eq.s32.totalorder %v5231_v12, %v1765_v62 }
 0x853   : > { %v2416_v33 = vpop.xlane.xlu0 %2415  ;;  %v3586_v8 = vsel %vm1766_vm11, 1.0, %v4538_v16 }
 0x854   : > { %v2417_v63 = vcvt.f32.s32 %v2416_v33  ;;  %vm1770_vm12 = vcmp.gt.f32.partialorder %v3586_v8, 0.0  ;;  %v4539_v33 = vmov 1  }
 0x855   : > { %v1771_v37 = vsel %vm1770_vm12, -inf, %v5275_v50  ;;  %4193 = vset.pattern.permute.xlu0 %v4539_v33 }
 0x856   : > { %v2420_v39 = vadd.s32 %v2419_v3, %v2417_v63  ;;  %v1772_v40 = vsel %vm1397_vm4, %v1771_v37, -inf }
 0x857   : > { %1773 = vmax.xlane.f32.xlu1 %v1772_v40  ;;  %v4543_v40 = vmov 9  }
 0x858   : > { %vm2421_vm13 = vcmp.eq.s32.totalorder %v5231_v12, %v2420_v39 }
 0x859   : > { %v3594_v6 = vsel %vm2421_vm13, 1.0, %v4538_v16 }
 0x85a   : > { %vm2425_vm14 = vcmp.gt.f32.partialorder %v3594_v6, 0.0 }
 0x85b   : > { %v2426_v5 = vsel %vm2425_vm14, -inf, %v5279_v7 }
 0x85c   : > { %v2427_v45 = vsel %vm1397_vm4, %v2426_v5, -inf }
 0x85d   : > { %2428 = vmax.xlane.f32.xlu0 %v2427_v45  ;;  %v4546_v45 = vmov 4  }
 0x8e4   : > { %v1774_v20 = vpop.xlane.xlu1 %1773 }
 0x8e5   : > { %vm1775_vm15 = vcmp.eq.f32.partialorder %v1771_v37, %v1774_v20  ;;  %v4541_v37 = vmov 6   ;;  %v4547_v20 = vmov 15  }
 0x8e6   : > { %v1776_v46 = vsel %vm1775_vm15, %v5231_v12, 16 }
 0x8e7   : > { %v1777_v47 = vsel %vm1397_vm4, %v1776_v46, 2147483647  ;;  %v4548_v46 = vmov 5  }
 0x8e8   : > { %v1779_v34 = vshra.s32 %v1777_v47, 16  ;;  %v1778_v31 = vand.u32 65535, %v1777_v47 }
 0x8ea   : > { %v2429_v38 = vpop.xlane.xlu0 %2428  ;;  %v1781_v29 = vcvt.s32.f32 %v1779_v34  ;;  %v1780_v57 = vcvt.s32.f32 %v1778_v31 }
 0x8eb   : > { %vm2430_vm1 = vcmp.eq.f32.partialorder %v2426_v5, %v2429_v38  ;;  %v4545_v5 = vmov 12   ;;  %v4549_v38 = vmov 7  }
 0x8ec   : > { %v2431_v1 = vsel %vm2430_vm1, %v5231_v12, 16  ;;  %1782 = vmin.xlane.f32.xlu1 %v1781_v29 }
 0x8ed   : > { %v2432_v48 = vsel %vm1397_vm4, %v2431_v1, 2147483647  ;;  %v4551_v1 = vmov 11  }
 0x8ee   : > { %v2434_v49 = vshra.s32 %v2432_v48, 16  ;;  %v2433_v10 = vand.u32 65535, %v2432_v48  ;;  %v4552_v48 = vmov 10  }
 0x8f0   : > { %v2436_v2 = vcvt.s32.f32 %v2434_v49  ;;  %v2435_v17 = vcvt.s32.f32 %v2433_v10  ;;  %v4554_v49 = vmov 13  }
 0x8f2   : > { %2437 = vmin.xlane.f32.xlu0 %v2436_v2 }
 0x979   : > { %v1783_v36 = vpop.xlane.xlu1 %1782 }
 0x97a   : > { %vm1784_vm2 = vcmp.eq.f32.partialorder %v1781_v29, %v1783_v36  ;;  %v1789_v35 = vcvt.f32.s32 %v1783_v36  ;;  %v4550_v29 = vmov 8  }
 0x97b   : > { %v1785_v54 = vsel %vm1784_vm2, %v1780_v57, inf  ;;  %v5328_v57 = vld [vmem:[#allocation13 + $0x8] sm:$0xff] }
 0x97c   : > { %1786 = vmin.xlane.f32.xlu1 %v1785_v54  ;;  %v1790_v23 = vshll.u32 %v1789_v35, 16 }
 0x97f   : > { %v2438_v58 = vpop.xlane.xlu0 %2437 }
 0x980   : > { %vm2439_vm3 = vcmp.eq.f32.partialorder %v2436_v2, %v2438_v58  ;;  %v2444_v59 = vcvt.f32.s32 %v2438_v58  ;;  %v4555_v2 = vmov 14  }
 0x981   : > { %v2440_v18 = vsel %vm2439_vm3, %v2435_v17, inf }
 0x982   : > { %2441 = vmin.xlane.f32.xlu0 %v2440_v18  ;;  %v2445_v25 = vshll.u32 %v2444_v59, 16 }
 0xa09   : > { %v1787_v61 = vpop.xlane.xlu1 %1786 }
 0xa0a   : > { %v1788_v21 = vcvt.f32.s32 %v1787_v61  ;;  %v5336_v61 = vld [vmem:[#allocation13 + $0x38] sm:$0xff] }
 0xa0c   : > { %v1791_v28 = vadd.s32 %v1790_v23, %v1788_v21 }
 0xa0e   : > { %vm1792_vm5 = vcmp.eq.s32.totalorder %v5231_v12, %v1791_v28  ;;  %v5340_v28 = vld [vmem:[#allocation13 + $0x30] sm:$0xff] }
 0xa0f   : > { %v2442_v24 = vpop.xlane.xlu0 %2441  ;;  %v3587_v14 = vsel %vm1792_vm5, 1.0, %v4538_v16 }
 0xa10   : > { %v2443_v50 = vcvt.f32.s32 %v2442_v24  ;;  %v1795_v9 = vadd.f32 %v3587_v14, %v3586_v8  ;;  %v4540_v8 = vmov 0  }
 0xa11   : > { %4192 = vset.pattern.permute.xlu1 %v4540_v8 }
 0xa12   : > { %v2446_v15 = vadd.s32 %v2445_v25, %v2443_v50  ;;  %v1799_v7 = vmul.f32 %v4235_v13, %v1795_v9  ;;  %v5348_v9 = vld [vmem:[#allocation13 + $0x40] sm:$0xff] }
 0xa14   : > { %vm2447_vm6 = vcmp.eq.s32.totalorder %v5231_v12, %v2446_v15  ;;  %v1800_v60 = vsel %vm1397_vm4, %v1799_v7, 0.0 }
 0xa15   : > { %1801 = vadd.xlane.f32.xlu1 %v1800_v60  ;;  %v3595_v26 = vsel %vm2447_vm6, 1.0, %v4538_v16  ;;  %v4542_v16 = vmov 2  }
 0xa16   : > { %v2450_v30 = vadd.f32 %v3595_v26, %v3594_v6  ;;  %v4544_v6 = vmov 3  }
 0xa18   : > { %v2454_v22 = vmul.f32 %v4237_v32, %v2450_v30  ;;  %v5353_v30 = vld [vmem:[#allocation13 + $0x50] sm:$0xff] }
 0xa1a   : > { %v2455_v62 = vsel %vm1397_vm4, %v2454_v22, 0.0 }
 0xa1b   : > { %2456 = vadd.xlane.f32.xlu0 %v2455_v62 }
 0xaa2   : > { %v1802_v3 = vpop.xlane.xlu1 %1801 }
 0xaa3   : > { %4238 = vrcp.f32 %v1802_v3 }
 0xaa8   : > { %v2457_v39 = vpop.xlane.xlu0 %2456 }
 0xaa9   : > { %4240 = vrcp.f32 %v2457_v39 }
 0xaad   : > { %v4239_v12 = vpop.eup %4238 }
 0xaae   : > { %v1804_v63 = vmul.f32 %v4239_v12, %v1799_v7 }
 0xab0   : > { %1815 = vperm.xlu0 %4193, %v1804_v63   ;;  %1807 = vperm.xlu1 %4192, %v1804_v63  }
 0xab3   : > { %v4241_v47 = vpop.eup %4240 }
 0xab4   : > { %4198 = vset.pattern.permute.xlu0 %v4541_v37  ;;  %4194 = vset.pattern.permute.xlu1 %v4542_v16  ;;  %v2459_v34 = vmul.f32 %v4241_v47, %v2454_v22  ;;  %v5356_v22 = vld [vmem:[#allocation13 + $0x58] sm:$0xff] }
 0xab5   : > { %1855 = vperm.xlu0 %4198, %v1804_v63   ;;  %1823 = vperm.xlu1 %4194, %v1804_v63  }
 0xab9   : > { %4201 = vset.pattern.permute.xlu0 %v4543_v40  ;;  %4195 = vset.pattern.permute.xlu1 %v4544_v6 }
 0xaba   : > { %1879 = vperm.xlu0 %4201, %v1804_v63   ;;  %1831 = vperm.xlu1 %4195, %v1804_v63  }
 0xabe   : > { %4204 = vset.pattern.permute.xlu0 %v4545_v5  ;;  %4196 = vset.pattern.permute.xlu1 %v4546_v45 }
 0xabf   : > { %1903 = vperm.xlu0 %4204, %v1804_v63   ;;  %1839 = vperm.xlu1 %4196, %v1804_v63  }
 0xac3   : > { %4207 = vset.pattern.permute.xlu0 %v4547_v20  ;;  %4197 = vset.pattern.permute.xlu1 %v4548_v46 }
 0xac4   : > { %1927 = vperm.xlu0 %4207, %v1804_v63   ;;  %1847 = vperm.xlu1 %4197, %v1804_v63  }
 0xac8   : > { %4213 = vset.pattern.permute.xlu0 %v4548_v46  ;;  %4199 = vset.pattern.permute.xlu1 %v4549_v38 }
 0xac9   : > { %2502 = vperm.xlu0 %4213, %v2459_v34   ;;  %1863 = vperm.xlu1 %4199, %v1804_v63  }
 0xacd   : > { %4216 = vset.pattern.permute.xlu0 %v4550_v29  ;;  %4200 = vset.pattern.permute.xlu1 %v4550_v29 }
 0xace   : > { %2526 = vperm.xlu0 %4216, %v2459_v34   ;;  %1871 = vperm.xlu1 %4200, %v1804_v63  }
 0xad2   : > { %4219 = vset.pattern.permute.xlu0 %v4551_v1  ;;  %4202 = vset.pattern.permute.xlu1 %v4552_v48 }
 0xad3   : > { %2550 = vperm.xlu0 %4219, %v2459_v34   ;;  %1887 = vperm.xlu1 %4202, %v1804_v63  }
 0xad7   : > { %4228 = vset.pattern.permute.xlu0 %v4547_v20  ;;  %4203 = vset.pattern.permute.xlu1 %v4551_v1  ;;  %v5370_v20 = vld [vmem:[#allocation13 + $0x70] sm:$0xff]  ;;  %v5375_v1 = vld [vmem:[#allocation13 + $0x80] sm:$0xff] }
 0xad8   : > { %2582 = vperm.xlu0 %4228, %v2459_v34   ;;  %1895 = vperm.xlu1 %4203, %v1804_v63  }
 0xadc   : > { %4230 = vrot.lane.b32.xlu0 %v4974_v55, %s4553_s25  ;;  %4205 = vset.pattern.permute.xlu1 %v4554_v49 }
 0xadd   : > { %1911 = vperm.xlu1 %4205, %v1804_v63  }
 0xae1   : > { %4206 = vset.pattern.permute.xlu1 %v4555_v2 }
 0xae2   : > { %1919 = vperm.xlu1 %4206, %v1804_v63   ;;  %v5362_v63 = vld [vmem:[#allocation13 + $0x60] sm:$0xff] }
 0xae6   : > { %4208 = vset.pattern.permute.xlu1 %v4540_v8 }
 0xae7   : > { %2462 = vperm.xlu1 %4208, %v2459_v34  }
 0xaeb   : > { %4209 = vset.pattern.permute.xlu1 %v4539_v33  ;;  %v5359_v33 = vld [vmem:[#allocation13 + $0x68] sm:$0xff] }
 0xaec   : > { %2470 = vperm.xlu1 %4209, %v2459_v34  }
 0xaf0   : > { %4210 = vset.pattern.permute.xlu1 %v4542_v16 }
 0xaf1   : > { %2478 = vperm.xlu1 %4210, %v2459_v34  }
 0xaf5   : > { %4211 = vset.pattern.permute.xlu1 %v4544_v6  ;;  %v5367_v6 = vld [vmem:[#allocation13 + $0x78] sm:$0xff] }
 0xaf6   : > { %2486 = vperm.xlu1 %4211, %v2459_v34  }
 0xafa   : > { %4212 = vset.pattern.permute.xlu1 %v4546_v45 }
 0xafb   : > { %2494 = vperm.xlu1 %4212, %v2459_v34  }
 0xaff   : > { %4214 = vset.pattern.permute.xlu1 %v4541_v37 }
 0xb00   : > { %2510 = vperm.xlu1 %4214, %v2459_v34  }
 0xb04   : > { %4215 = vset.pattern.permute.xlu1 %v4549_v38 }
 0xb05   : > { %2518 = vperm.xlu1 %4215, %v2459_v34  }
 0xb09   : > { %4217 = vset.pattern.permute.xlu1 %v4543_v40 }
 0xb0a   : > { %2534 = vperm.xlu1 %4217, %v2459_v34  }
 0xb0e   : > { %4218 = vset.pattern.permute.xlu1 %v4552_v48 }
 0xb0f   : > { %2542 = vperm.xlu1 %4218, %v2459_v34  }
 0xb13   : > { %4220 = vset.pattern.permute.xlu1 %v4545_v5 }
 0xb14   : > { %2558 = vperm.xlu1 %4220, %v2459_v34  }
 0xb18   : > { %4221 = vset.pattern.permute.xlu1 %v4554_v49  ;;  %v5378_v49 = vld [vmem:[#allocation13 + $0x88] sm:$0xff] }
 0xb19   : > { %2566 = vperm.xlu1 %4221, %v2459_v34  }
 0xb1d   : > { %4222 = vset.pattern.permute.xlu1 %v4555_v2 }
 0xb1e   : > { %2574 = vperm.xlu1 %4222, %v2459_v34  }
 0xb22   : > { %4224 = vrot.lane.b32.xlu1 %v4970_v51, %s4553_s25 }
 0xb2f   : > { %v1816_v55 = vpop.permute.xlu0 %1815  ;;  %v1808_v31 = vpop.permute.xlu1 %1807 }
 0xb30   : > { %v1819_v36 = vmul.f32 %v5148_v0, %v1816_v55  ;;  %v1811_v54 = vmul.f32 %v5328_v57, %v1808_v31  ;;  %v1818_v35 = vmul.f32 %v5146_v52, %v1816_v55  ;;  %v1810_v51 = vmul.f32 %v5333_v56, %v1808_v31  ;;  %v5345_v52 = vld [vmem:[#allocation13 + $0x48] sm:$0xff]  ;;  %v5381_v55 = vld [vmem:[#allocation13 + $0x98] sm:$0xff] }
 0xb32   : > { %v1821_v10 = vadd.f32 %v1819_v36, %v1811_v54  ;;  %v1820_v59 = vadd.f32 %v1818_v35, %v1810_v51 }
 0xb34   : > { %v1856_v58 = vpop.permute.xlu0 %1855  ;;  %v1824_v17 = vpop.permute.xlu1 %1823 }
 0xb35   : > { %v1827_v18 = vmul.f32 %v1824_v17, %v5195_v53  ;;  %v1826_v23 = vmul.f32 %v1824_v17, %v5193_v27  ;;  %v1859_v8 = vmul.f32 %v5359_v33, %v1856_v58  ;;  %v1858_v37 = vmul.f32 %v5362_v63, %v1856_v58 }
 0xb37   : > { %v1829_v4 = vadd.f32 %v1827_v18, %v1821_v10  ;;  %v1828_v50 = vadd.f32 %v1826_v23, %v1820_v59  ;;  %v5384_v10 = vld [vmem:[#allocation13 + $0x90] sm:$0xff] }
 0xb39   : > { %v1880_v11 = vpop.permute.xlu0 %1879  ;;  %v1832_v19 = vpop.permute.xlu1 %1831 }
 0xb3a   : > { %v1835_v0 = vmul.f32 %v5336_v61, %v1832_v19  ;;  %v1834_v53 = vmul.f32 %v5340_v28, %v1832_v19  ;;  %v1883_v31 = vmul.f32 %v5381_v55, %v1880_v11  ;;  %v1882_v58 = vmul.f32 %v5384_v10, %v1880_v11  ;;  %v5389_v19 = vld [vmem:[#allocation13 + $0xa8] sm:$0xff] }
 0xb3c   : > { %v1837_v21 = vadd.f32 %v1835_v0, %v1829_v4  ;;  %v1836_v27 = vadd.f32 %v1834_v53, %v1828_v50  ;;  %v5392_v0 = vld [vmem:[#allocation13 + $0xa0] sm:$0xff]  ;;  %v5400_v50 = vld [vmem:[#allocation13 + $0xb8] sm:$0xff] }
 0xb3e   : > { %v5343_v24 = vpop.permute.xlu0 %1903  ;;  %v1840_v14 = vpop.permute.xlu1 %1839 }
 0xb3f   : > { %v1843_v25 = vmul.f32 %v5345_v52, %v1840_v14  ;;  %v1842_v13 = vmul.f32 %v5348_v9, %v1840_v14 }
 0xb41   : > { %v1845_v15 = vadd.f32 %v1843_v25, %v1837_v21  ;;  %v1844_v26 = vadd.f32 %v1842_v13, %v1836_v27  ;;  %v5397_v25 = vld [vmem:[#allocation13 + $0xb0] sm:$0xff] }
 0xb43   : > { %v5351_v7 = vpop.permute.xlu0 %1927  ;;  %v1848_v60 = vpop.permute.xlu1 %1847 }
 0xb44   : > { %v1850_v32 = vmul.f32 %v5353_v30, %v1848_v60  ;;  %v1851_v62 = vmul.f32 %v5356_v22, %v1848_v60 }
 0xb46   : > { %v1852_v3 = vadd.f32 %v1850_v32, %v1844_v26  ;;  %v1853_v12 = vadd.f32 %v1851_v62, %v1845_v15  ;;  %v5403_v15 = vld [vmem:[#allocation13 + $0xc8] sm:$0xff]  ;;  %v5407_v62 = vld [vmem:[#allocation13 + $0xc0] sm:$0xff] }
 0xb47   : > { %v1907_v27 = vmul.f32 %v5403_v15, %v5343_v24 }
 0xb48   : > { %v5365_v16 = vpop.permute.xlu0 %2502  ;;  %v1861_v39 = vadd.f32 %v1859_v8, %v1853_v12  ;;  %v1864_v40 = vpop.permute.xlu1 %1863  ;;  %v1860_v45 = vadd.f32 %v1858_v37, %v1852_v3  ;;  %v1906_v8 = vmul.f32 %v5407_v62, %v5343_v24  ;;  %v5417_v24 = vld [vmem:[#allocation13 + $0xe0] sm:$0xff] }
 0xb49   : > { %v1867_v5 = vmul.f32 %v5367_v6, %v1864_v40  ;;  %v1866_v46 = vmul.f32 %v5370_v20, %v1864_v40  ;;  %v5411_v40 = vld [vmem:[#allocation13 + $0xd8] sm:$0xff] }
 0xb4b   : > { %v1869_v47 = vadd.f32 %v1867_v5, %v1861_v39  ;;  %v1868_v29 = vadd.f32 %v1866_v46, %v1860_v45 }
 0xb4d   : > { %v5373_v34 = vpop.permute.xlu0 %2526  ;;  %v1872_v38 = vpop.permute.xlu1 %1871 }
 0xb4e   : > { %v1874_v48 = vmul.f32 %v5375_v1, %v1872_v38  ;;  %v1875_v2 = vmul.f32 %v5378_v49, %v1872_v38 }
 0xb50   : > { %v1876_v36 = vadd.f32 %v1874_v48, %v1868_v29  ;;  %v1877_v54 = vadd.f32 %v1875_v2, %v1869_v47  ;;  %v5414_v47 = vld [vmem:[#allocation13 + $0xd0] sm:$0xff] }
 0xb52   : > { %v5387_v17 = vpop.permute.xlu0 %2550  ;;  %v1885_v18 = vadd.f32 %v1883_v31, %v1877_v54  ;;  %v1888_v4 = vpop.permute.xlu1 %1887  ;;  %v1884_v51 = vadd.f32 %v1882_v58, %v1876_v36  ;;  %v5420_v36 = vld [vmem:[#allocation13 + $0xe8] sm:$0xff]  ;;  %v5423_v58 = vld [vmem:[#allocation13 + $0xf0] sm:$0xff] }
 0xb53   : > { %v1891_v35 = vmul.f32 %v5389_v19, %v1888_v4  ;;  %v1890_v23 = vmul.f32 %v5392_v0, %v1888_v4  ;;  %v5427_v4 = vld [vmem:[#allocation13 + $0xf8] sm:$0xff] }
 0xb55   : > { %v1893_v21 = vadd.f32 %v1891_v35, %v1885_v18  ;;  %v1892_v14 = vadd.f32 %v1890_v23, %v1884_v51  ;;  %v1930_v18 = vmul.f32 %v5423_v58, %v5351_v7  ;;  %v1931_v35 = vmul.f32 %v5427_v4, %v5351_v7 }
 0xb57   : > { %v5395_v59 = vpop.permute.xlu0 %2582  ;;  %v1896_v53 = vpop.permute.xlu1 %1895 }
 0xb58   : > { %v1898_v11 = vmul.f32 %v5397_v25, %v1896_v53  ;;  %v1899_v13 = vmul.f32 %v5400_v50, %v1896_v53 }
 0xb5a   : > { %v1900_v60 = vadd.f32 %v1898_v11, %v1892_v14  ;;  %v1901_v26 = vadd.f32 %v1899_v13, %v1893_v21 }
 0xb5b   : > { %v4231_v32 = vpop.permute.xlu0 %4230 }
 0xb5c   : > { %v4233_v3 = vunpack.i.h.bf16 %v4231_v32  ;;  %v4232_v12 = vunpack.i.l.bf16 %v4231_v32  ;;  %v1909_v37 = vadd.f32 %v1907_v27, %v1901_v26  ;;  %v1912_v39 = vpop.permute.xlu1 %1911  ;;  %v1908_v46 = vadd.f32 %v1906_v8, %v1900_v60  ;;  %v4278_v27 = vld [vmem:[#allocation13 + $0x10] sm:$0xff]  ;;  %v4279_v26 = vld [vmem:[#allocation13 + $0x18] sm:$0xff] }
 0xb5d   : > { %v1915_v5 = vmul.f32 %v5411_v40, %v1912_v39  ;;  %v1914_v38 = vmul.f32 %v5414_v47, %v1912_v39 }
 0xb5e   : > { %v3992_v45 = vpack.c.bf16 %v4233_v3, %v4232_v12  ;;  %v4280_v12 = vld [vmem:[#allocation13 + $0x20] sm:$0xff] }
 0xb5f   : > { %v1917_v29 = vadd.f32 %v1915_v5, %v1909_v37  ;;  %v1916_v2 = vadd.f32 %v1914_v38, %v1908_v46  ;;  %v4281_v37 = vld [vmem:[#allocation13 + $0x28] sm:$0xff] }
 0xb60   : > { %3993 = vmatprep.subr.bf16.mxu1 %v3992_v45 }
 0xb61   : > { %3995 = vmatpush3.bf16.msra.mxu1 %v3992_v45  ;;  %v1920_v48 = vpop.permute.xlu1 %1919 }
 0xb62   : > { %v1922_v31 = vmul.f32 %v5417_v24, %v1920_v48  ;;  %v1923_v54 = vmul.f32 %v5420_v36, %v1920_v48 }
 0xb64   : > { %v1924_v51 = vadd.f32 %v1922_v31, %v1916_v2  ;;  %v1925_v23 = vadd.f32 %v1923_v54, %v1917_v29 }
 0xb66   : > { %v1932_v21 = vadd.f32 %v1930_v18, %v1924_v51  ;;  %v5431_v53 = vadd.f32 %v1931_v35, %v1925_v23  ;;  %v2463_v14 = vpop.permute.xlu1 %2462  ;;  %v2505_v23 = vmul.f32 %v5353_v30, %v5365_v16  ;;  %v2529_v30 = vmul.f32 %v5375_v1, %v5373_v34 }
 0xb67   : > { %v2465_v8 = vmul.f32 %v5333_v56, %v2463_v14  ;;  %v2466_v3 = vmul.f32 %v5328_v57, %v2463_v14  ;;  %v2553_v1 = vmul.f32 %v5397_v25, %v5387_v17 }
 0xb68   : > { %3835 = vmatprep.mubr.msk.f32.mxu0 %vm1397_vm4, %v1932_v21  ;;  %v2506_v21 = vmul.f32 %v5356_v22, %v5365_v16  ;;  %v2530_v22 = vmul.f32 %v5378_v49, %v5373_v34  ;;  %v2554_v34 = vmul.f32 %v5400_v50, %v5387_v17 }
 0xb6b   : > { %v2471_v11 = vpop.permute.xlu1 %2470 }
 0xb6c   : > { %v2473_v60 = vmul.f32 %v4278_v27, %v2471_v11  ;;  %v2474_v32 = vmul.f32 %v4279_v26, %v2471_v11 }
 0xb6e   : > { %v2475_v45 = vadd.f32 %v2473_v60, %v2465_v8  ;;  %v2476_v46 = vadd.f32 %v2474_v32, %v2466_v3 }
 0xb70   : > { %v2479_v13 = vpop.permute.xlu1 %2478 }
 0xb71   : > { %v2481_v7 = vmul.f32 %v4280_v12, %v2479_v13  ;;  %v2482_v39 = vmul.f32 %v4281_v37, %v2479_v13 }
 0xb73   : > { %v2483_v48 = vadd.f32 %v2481_v7, %v2475_v45  ;;  %v2484_v2 = vadd.f32 %v2482_v39, %v2476_v46 }
 0xb75   : > { %v2487_v5 = vpop.permute.xlu1 %2486 }
 0xb76   : > { %v2489_v38 = vmul.f32 %v5340_v28, %v2487_v5  ;;  %v2490_v29 = vmul.f32 %v5336_v61, %v2487_v5 }
 0xb78   : > { %v2491_v54 = vadd.f32 %v2489_v38, %v2483_v48  ;;  %v2492_v18 = vadd.f32 %v2490_v29, %v2484_v2 }
 0xb7a   : > { %v2495_v31 = vpop.permute.xlu1 %2494 }
 0xb7b   : > { %v2497_v56 = vmul.f32 %v5348_v9, %v2495_v31  ;;  %v2498_v57 = vmul.f32 %v5345_v52, %v2495_v31 }
 0xb7d   : > { %v2499_v35 = vadd.f32 %v2497_v56, %v2491_v54  ;;  %v2500_v51 = vadd.f32 %v2498_v57, %v2492_v18  ;;  %v2585_v18 = vmul.f32 %v5423_v58, %v5395_v59 }
 0xb7f   : > { %v2511_v28 = vpop.permute.xlu1 %2510  ;;  %v2507_v14 = vadd.f32 %v2505_v23, %v2499_v35  ;;  %v2508_v61 = vadd.f32 %v2506_v21, %v2500_v51 }
 0xb80   : > { %v2513_v11 = vmul.f32 %v5362_v63, %v2511_v28  ;;  %v2514_v13 = vmul.f32 %v5359_v33, %v2511_v28 }
 0xb82   : > { %v2515_v60 = vadd.f32 %v2513_v11, %v2507_v14  ;;  %v2516_v9 = vadd.f32 %v2514_v13, %v2508_v61 }
 0xb84   : > { %v2519_v27 = vpop.permute.xlu1 %2518 }
 0xb85   : > { %v2521_v52 = vmul.f32 %v5370_v20, %v2519_v27  ;;  %v2522_v26 = vmul.f32 %v5367_v6, %v2519_v27 }
 0xb87   : > { %v2523_v16 = vadd.f32 %v2521_v52, %v2515_v60  ;;  %v2524_v32 = vadd.f32 %v2522_v26, %v2516_v9  ;;  %v5482_v9 = vld [vmem:[#allocation11] sm:$0xff]  ;;  %v2896_v26 = vld [vmem:[#allocation10 + $0x8] sm:$0xff] }
 0xb88   : > { %v2895_v52 = vld [vmem:[#allocation10] sm:$0xff] }
 0xb89   : > { %v2531_v8 = vadd.f32 %v2529_v30, %v2523_v16  ;;  %v2532_v3 = vadd.f32 %v2530_v22, %v2524_v32  ;;  %v2535_v63 = vpop.permute.xlu1 %2534  ;;  %v4012_v30 = vpack.c.bf16 %v2896_v26, %v2895_v52  ;;  %v3598_v22 = vld [vmem:[%s5617_s16] ss:$0 sm:$0xff] }
 0xb8a   : > { %v2537_v33 = vmul.f32 %v5384_v10, %v2535_v63  ;;  %v2538_v12 = vmul.f32 %v5381_v55, %v2535_v63 }
 0xb8c   : > { %v2539_v37 = vadd.f32 %v2537_v33, %v2531_v8  ;;  %v2540_v20 = vadd.f32 %v2538_v12, %v2532_v3 }
 0xb8e   : > { %v2543_v7 = vpop.permute.xlu1 %2542 }
 0xb8f   : > { %v2545_v6 = vmul.f32 %v5392_v0, %v2543_v7  ;;  %v2546_v39 = vmul.f32 %v5389_v19, %v2543_v7 }
 0xb91   : > { %v2547_v49 = vadd.f32 %v2545_v6, %v2539_v37  ;;  %v2548_v5 = vadd.f32 %v2546_v39, %v2540_v20 }
 0xb93   : > { %v2555_v45 = vadd.f32 %v2553_v1, %v2547_v49  ;;  %v2556_v46 = vadd.f32 %v2554_v34, %v2548_v5  ;;  %v2559_v10 = vpop.permute.xlu1 %2558  ;;  %v5493_v49 = vld [vmem:[#allocation11 + $0x8] sm:$0xff]  ;;  %v5495_v5 = vld [vmem:[#allocation11 + $0x10] sm:$0xff] }
 0xb94   : > { %v2561_v55 = vmul.f32 %v5407_v62, %v2559_v10  ;;  %v2562_v38 = vmul.f32 %v5403_v15, %v2559_v10  ;;  %v2586_v15 = vmul.f32 %v5427_v4, %v5395_v59  ;;  %v2684_v59 = vld [vmem:[#allocation8 + $0x10] sm:$0xff]  ;;  %v2685_v4 = vld [vmem:[#allocation8 + $0x18] sm:$0xff] }
 0xb95   : > { %v4000_v21 = vpack.c.bf16 %v2685_v4, %v2684_v59  ;;  %v3002_v10 = vld [vmem:[%s5618_s22 + $0x10] sm:$0xff] }
 0xb96   : > { %v2563_v48 = vadd.f32 %v2561_v55, %v2555_v45  ;;  %v2564_v2 = vadd.f32 %v2562_v38, %v2556_v46  ;;  %v3000_v45 = vld [vmem:[%s5618_s22] sm:$0xff]  ;;  %v3001_v46 = vld [vmem:[%s5618_s22 + $0x8] sm:$0xff]  ;;  %v3003_v38 = vld [vmem:[%s5618_s22 + $0x18] sm:$0xff] }
 0xb97   : > { %v4020_v55 = vpack.c.bf16 %v3001_v46, %v3000_v45 }
 0xb98   : > { %v2567_v29 = vpop.permute.xlu1 %2566 }
 0xb99   : > { %v2569_v0 = vmul.f32 %v5414_v47, %v2567_v29  ;;  %v2570_v19 = vmul.f32 %v5411_v40, %v2567_v29  ;;  %v4024_v29 = vpack.c.bf16 %v3003_v38, %v3002_v10 }
 0xb9b   : > { %v2571_v31 = vadd.f32 %v2569_v0, %v2563_v48  ;;  %v2572_v54 = vadd.f32 %v2570_v19, %v2564_v2  ;;  %v3004_v0 = vld [vmem:[%s5618_s22 + $0x20] sm:$0xff]  ;;  %v3005_v19 = vld [vmem:[%s5618_s22 + $0x28] sm:$0xff] }
 0xb9c   : > { %v4028_v48 = vpack.c.bf16 %v3005_v19, %v3004_v0  ;;  %v575_v0 = vld [vmem:[#allocation11 + $0x20] sm:$0xff] }
 0xb9d   : > { %v2575_v25 = vpop.permute.xlu1 %2574 }
 0xb9e   : > { %v2577_v17 = vmul.f32 %v5417_v24, %v2575_v25  ;;  %v2578_v50 = vmul.f32 %v5420_v36, %v2575_v25  ;;  %v2682_v24 = vld [vmem:[#allocation8] sm:$0xff]  ;;  %v2683_v36 = vld [vmem:[#allocation8 + $0x8] sm:$0xff] }
 0xb9f   : > { %v3996_v58 = vpack.c.bf16 %v2683_v36, %v2682_v24 }
 0xba0   : > { %v2579_v62 = vadd.f32 %v2577_v17, %v2571_v31  ;;  %v2580_v56 = vadd.f32 %v2578_v50, %v2572_v54 }
 0xba1   : > { %v4225_v47 = vpop.permute.xlu1 %4224 }
 0xba2   : > { %v2587_v57 = vadd.f32 %v2585_v18, %v2579_v62  ;;  %v2588_v40 = vadd.f32 %v2586_v15, %v2580_v56  ;;  %v4227_v35 = vunpack.i.h.bf16 %v4225_v47  ;;  %v4226_v51 = vunpack.i.l.bf16 %v4225_v47  ;;  %v3006_v62 = vld [vmem:[%s5618_s22 + $0x30] sm:$0xff]  ;;  %v3007_v56 = vld [vmem:[%s5618_s22 + $0x38] sm:$0xff] }
 0xba3   : > { %v4032_v47 = vpack.c.bf16 %v3007_v56, %v3006_v62 }
 0xba4   : > { %v3982_v23 = vpack.c.bf16 %v4227_v35, %v4226_v51  ;;  %3849 = vmatprep.mubr.msk.f32.mxu1 %vm1397_vm4, %v2587_v57 }
 0xba5   : > { %3850 = vmatmul.mubr.msk.f32.vlgmr.msra.gmra.mrb[10].mxu1 %vm1397_vm4, %v2588_v40 }
 0xba6   : > { %3983 = vmatprep.subr.bf16.mxu0 %v3982_v23  ;;  %3874 = vmatprep.mubr.msk.f32.mxu1 %vm593_vm0, %v5482_v9 }
 0xba7   : > { %3985 = vmatpush3.bf16.msra.mxu0 %v3982_v23 }
 0xba8   : > { %3997 = vmatprep.subr.bf16.mxu0 %v3996_v58 }
 0xbaa   : > { %3836 = vmatmul.mubr.msk.f32.vlgmr.msra.gmra.mrb[14].mxu0 %vm1397_vm4, %v5431_v53  ;;  %vm3008_vm4 = vcmask 523264  }
 0xbab   : > { %3999 = vmatpush3.bf16.msra.mxu0 %v3996_v58 }
 0xbac   : > { %4001 = vmatprep.subr.bf16.mxu0 %v4000_v21 }
 0xbaf   : > { %4003 = vmatpush3.bf16.msra.mxu0 %v4000_v21 }
 0xbb0   : > { %4013 = vmatprep.subr.bf16.mxu0 %v4012_v30 }
 0xc78   : > { %v3851_v28 = vpop.f32.mrb[10].mxu1 }
 0xc79   : > { %2677 = vst.msk [vmem:[#allocation2 + $0x18] sm:$0xff] %vm593_vm0, %v3851_v28  ;;  %v2667_v14 = vpop.f32.mrb[11].mxu1 }
 0xc7a   : > { %2676 = vst.msk [vmem:[#allocation2 + $0x10] sm:$0xff] %vm593_vm0, %v2667_v14 }
 0xc7d   : > { %v3837_v61 = vpop.f32.mrb[14].mxu0 }
 0xc7e   : > { %2022 = vst.msk [vmem:[#allocation2 + $0x8] sm:$0xff] %vm593_vm0, %v3837_v61  ;;  %v2012_v53 = vpop.f32.mrb[15].mxu0 }
 0xc7f   : > { %2021 = vst.msk [vmem:[#allocation2] sm:$0xff] %vm593_vm0, %v2012_v53 }
 0xc80   : > { %v2681_v60 = vld [vmem:[#allocation2 + $0x18] sm:$0xff] }
 0xc81   : > { %v2680_v27 = vld [vmem:[#allocation2 + $0x10] sm:$0xff] }
 0xc85   : > { %v2679_v13 = vld [vmem:[#allocation2 + $0x8] sm:$0xff] }
 0xc86   : > { %v2678_v11 = vld [vmem:[#allocation2] sm:$0xff] }
 0xc87   : > { %3860 = vmatprep.mubr.msk.f32.mxu0 %vm593_vm0, %v2678_v11 }
 0xc88   : > { %3861 = vmatmul.mubr.msk.f32.vlgmr.msra.gmra.mrb[16].mxu0 %vm593_vm0, %v2679_v13 }
 0xc89   : > { %3863 = vmatprep.mubr.msk.f32.mxu0 %vm593_vm0, %v2680_v27  ;;  %4015 = vmatpush3.bf16.msra.mxu0 %v4012_v30 }
 0xc8c   : > { %3864 = vmatmul.mubr.msk.f32.gmra.mrb[18].mxu0 %vm593_vm0, %v2681_v60 }
 0xd5b   : > { %v3862_v16 = vpop.f32.mrb[16].mxu0 }
 0xd5c   : > { %v2777_v32 = vadd.f32 %v3862_v16, %v3598_v22  ;;  %v2771_v8 = vpop.f32.mrb[17].mxu0 }
 0xd5d   : > { %v2772_v3 = vadd.f32 %v3598_v22, %v2771_v8 }
 0xd5e   : > { %v2791_v63 = vadd.f32 %v4953_v41, %v2777_v32  ;;  %v5501_v41 = vld [vmem:[#allocation11 + $0x18] sm:$0xff] }
 0xd5f   : > { %v2790_v33 = vadd.f32 %v2772_v3, %v4955_v42  ;;  %v3865_v12 = vpop.f32.mrb[18].mxu0  ;;  %v2897_v42 = vld [vmem:[#allocation10 + $0x10] sm:$0xff] }
 0xd60   : > { %v2787_v7 = vadd.f32 %v3865_v12, %v3598_v22  ;;  %v2781_v37 = vpop.f32.mrb[19].mxu0 }
 0xd61   : > { %v2782_v20 = vadd.f32 %v3598_v22, %v2781_v37  ;;  %v4004_v6 = vpack.c.bf16 %v2791_v63, %v2790_v33 }
 0xd62   : > { %v2793_v39 = vadd.f32 %v4961_v43, %v2787_v7  ;;  %v2898_v43 = vld [vmem:[#allocation10 + $0x18] sm:$0xff] }
 0xd63   : > { %v2792_v1 = vadd.f32 %v2782_v20, %v4963_v44  ;;  %4005 = vmatprep.subr.bf16.mxu1 %v4004_v6  ;;  %v4016_v44 = vpack.c.bf16 %v2898_v43, %v2897_v42 }
 0xd64   : > { %4007 = vmatpush3.bf16.msra.mxu1 %v4004_v6 }
 0xd65   : > { %v4008_v34 = vpack.c.bf16 %v2793_v39, %v2792_v1  ;;  %4017 = vmatprep.subr.bf16.mxu0 %v4016_v44 }
 0xd66   : > { %4019 = vmatpush3.bf16.msra.mxu0 %v4016_v44 }
 0xd67   : > { %4009 = vmatprep.subr.bf16.mxu1 %v4008_v34 }
 0xd68   : > { %4011 = vmatpush3.bf16.msra.mxu1 %v4008_v34 }
 0xd69   : > { %4021 = vmatprep.subr.bf16.mxu1 %v4020_v55 }
 0xd6b   : > { %3875 = vmatmul.mubr.msk.f32.vlgmr.msra.gmra.mrb[12].mxu1 %vm593_vm0, %v5493_v49 }
 0xd6c   : > { %3877 = vmatprep.mubr.msk.f32.mxu1 %vm593_vm0, %v5495_v5  ;;  %4023 = vmatpush3.bf16.msra.mxu1 %v4020_v55 }
 0xd6d   : > { %4025 = vmatprep.subr.bf16.mxu1 %v4024_v29 }
 0xd6f   : > { %3878 = vmatmul.mubr.msk.f32.gmra.mrb[14].mxu1 %vm593_vm0, %v5501_v41 }
 0xd70   : > { %4027 = vmatpush3.bf16.msra.mxu1 %v4024_v29 }
 0xd71   : > { %4029 = vmatprep.subr.bf16.mxu1 %v4028_v48 }
 0xd74   : > { %4031 = vmatpush3.bf16.msra.mxu1 %v4028_v48 }
 0xd75   : > { %4033 = vmatprep.subr.bf16.mxu1 %v4032_v47 }
 0xd78   : > { %4035 = vmatpush3.bf16.msra.mxu1 %v4032_v47 }
 0xe3e   : > { %v3876_v2 = vpop.f32.mrb[12].mxu1 }
 0xe3f   : > { %v2872_v25 = vpop.f32.mrb[13].mxu1  ;;  %v2892_v54 = vsub.f32 %v2791_v63, %v3876_v2 }
 0xe40   : > { %v2891_v31 = vsub.f32 %v2790_v33, %v2872_v25 }
 0xe42   : > { %v3879_v17 = vpop.f32.mrb[14].mxu1  ;;  %3888 = vmatprep.mubr.msk.f32.mxu0 %vm593_vm0, %v2891_v31 }
 0xe43   : > { %v2882_v50 = vpop.f32.mrb[15].mxu1  ;;  %3889 = vmatmul.mubr.msk.f32.vlgmr.msra.gmra.mrb[20].mxu0 %vm593_vm0, %v2892_v54  ;;  %v2894_v15 = vsub.f32 %v2793_v39, %v3879_v17 }
 0xe44   : > { %v2893_v18 = vsub.f32 %v2792_v1, %v2882_v50 }
 0xe46   : > { %3891 = vmatprep.mubr.msk.f32.mxu0 %vm593_vm0, %v2893_v18 }
 0xe47   : > { %3892 = vmatmul.mubr.msk.f32.gmra.mrb[22].mxu0 %vm593_vm0, %v2894_v15 }
 0xe48   : > { %3924 = vmatprep.mubr.msk.f32.mxu0 %vm593_vm0, %v5482_v9 }
 0xf16   : > { %v3890_v57 = vpop.f32.mrb[20].mxu0 }
 0xf17   : > { %v2977_v40 = vpop.f32.mrb[21].mxu0  ;;  %v2997_v51 = vmax.f32 %v3890_v57, 0.0  ;;  %v3619_v57 = vld [vmem:[%s5619_s15] ss:$0 sm:$0xff] }
 0xf18   : > { %v2996_v35 = vmax.f32 %v2977_v40, 0.0 }
 0xf1a   : > { %v3893_v23 = vpop.f32.mrb[22].mxu0  ;;  %3910 = vmatprep.mubr.msk.f32.mxu1 %vm3008_vm4, %v2996_v35 }
 0xf1b   : > { %v2987_v24 = vpop.f32.mrb[23].mxu0  ;;  %3911 = vmatmul.mubr.msk.f32.vlgmr.msra.gmra.mrb[16].mxu1 %vm3008_vm4, %v2997_v51  ;;  %v2999_v59 = vmax.f32 %v3893_v23, 0.0  ;;  %v3620_v23 = vld [vmem:[%s5620_s17] ss:$0 sm:$0xff] }
 0xf1c   : > { %v2998_v36 = vmax.f32 %v2987_v24, 0.0 }
 0xf1e   : > { %3913 = vmatprep.mubr.msk.f32.mxu1 %vm3008_vm4, %v2998_v36 }
 0xf1f   : > { %3914 = vmatmul.mubr.msk.f32.gmra.mrb[18].mxu1 %vm3008_vm4, %v2999_v59 }
 0xfee   : > { %v3912_v58 = vpop.f32.mrb[16].mxu1 }
 0xfef   : > { %v3107_v4 = vadd.f32 %v3912_v58, %v2892_v54  ;;  %v3087_v21 = vpop.f32.mrb[17].mxu1 }
 0xff0   : > { %v3106_v28 = vadd.f32 %v3087_v21, %v2891_v31 }
 0xff2   : > { %v4036_v14 = vpack.c.bf16 %v3107_v4, %v3106_v28  ;;  %v3915_v61 = vpop.f32.mrb[18].mxu1 }
 0xff3   : > { %v3109_v53 = vadd.f32 %v3915_v61, %v2894_v15  ;;  %v3097_v11 = vpop.f32.mrb[19].mxu1 }
 0xff4   : > { %v3108_v13 = vadd.f32 %v3097_v11, %v2893_v18  ;;  %4037 = vmatprep.subr.bf16.mxu0 %v4036_v14 }
 0xff5   : > { %4039 = vmatpush3.bf16.msra.mxu0 %v4036_v14 }
 0xff6   : > { %v4040_v27 = vpack.c.bf16 %v3109_v53, %v3108_v13 }
 0xff8   : > { %4041 = vmatprep.subr.bf16.mxu0 %v4040_v27 }
 0xff9   : > { %4043 = vmatpush3.bf16.msra.mxu0 %v4040_v27 }
 0xffc   : > { %3925 = vmatmul.mubr.msk.f32.vlgmr.msra.gmra.mrb[24].mxu0 %vm593_vm0, %v5493_v49 }
 0xffd   : > { %3927 = vmatprep.mubr.msk.f32.mxu0 %vm593_vm0, %v5495_v5 }
0x1000   : > { %3928 = vmatmul.mubr.msk.f32.gmra.mrb[26].mxu0 %vm593_vm0, %v5501_v41 }
0x1001   : > { %3938 = vmatprep.mubr.msk.f32.mxu0 %vm593_vm0, %v575_v0 }
0x10cf   : > { %v3926_v60 = vpop.f32.mrb[24].mxu0 }
0x10d0   : > { %v3196_v9 = vsub.f32 %v3107_v4, %v3926_v60  ;;  %v3176_v52 = vpop.f32.mrb[25].mxu0 }
0x10d1   : > { %v3195_v26 = vsub.f32 %v3106_v28, %v3176_v52  ;;  %v577_v52 = vld [vmem:[#allocation11 + $0x30] sm:$0xff] }
0x10d2   : > { %v3202_v30 = vsel %vm593_vm0, %v3196_v9, 0.0 }
0x10d3   : > { %3203 = vadd.xlane.f32.xlu0 %v3202_v30  ;;  %v3929_v22 = vpop.f32.mrb[26].mxu0  ;;  %v3199_v16 = vsel %vm593_vm0, %v3195_v26, 0.0 }
0x10d4   : > { %v3198_v32 = vsub.f32 %v3109_v53, %v3929_v22  ;;  %3200 = vadd.xlane.f32.xlu1 %v3199_v16  ;;  %v3186_v8 = vpop.f32.mrb[27].mxu0 }
0x10d5   : > { %v3197_v3 = vsub.f32 %v3108_v13, %v3186_v8 }
0x10d6   : > { %v3208_v63 = vsel %vm593_vm0, %v3198_v32, 0.0 }
0x10d7   : > { %v3205_v33 = vsel %vm593_vm0, %v3197_v3, 0.0 }
0x10d8   : > { %3209 = vadd.xlane.f32.xlu1 %v3208_v63  ;;  %3206 = vadd.xlane.f32.xlu0 %v3205_v33 }
0x1160   : > { %v3204_v12 = vpop.xlane.xlu0 %3203 }
0x1161   : > { %v3213_v7 = vmul.f32 0.03125, %v3204_v12  ;;  %v3201_v37 = vpop.xlane.xlu1 %3200 }
0x1162   : > { %v3212_v20 = vmul.f32 0.03125, %v3201_v37 }
0x1163   : > { %v3217_v6 = vsub.f32 %v3196_v9, %v3213_v7  ;;  %v576_v9 = vld [vmem:[#allocation11 + $0x28] sm:$0xff] }
0x1164   : > { %v3216_v39 = vsub.f32 %v3195_v26, %v3212_v20  ;;  %v578_v26 = vld [vmem:[#allocation11 + $0x38] sm:$0xff] }
0x1165   : > { %v3210_v1 = vpop.xlane.xlu1 %3209  ;;  %v3207_v34 = vpop.xlane.xlu0 %3206  ;;  %v3221_v49 = vmul.f32 %v3217_v6, %v3217_v6 }
0x1166   : > { %v3215_v5 = vmul.f32 0.03125, %v3210_v1  ;;  %v3214_v41 = vmul.f32 0.03125, %v3207_v34  ;;  %v3220_v42 = vmul.f32 %v3216_v39, %v3216_v39 }
0x1167   : > { %v3227_v43 = vsel %vm593_vm0, %v3221_v49, 0.0 }
0x1168   : > { %v3219_v44 = vsub.f32 %v3198_v32, %v3215_v5  ;;  %v3218_v45 = vsub.f32 %v3197_v3, %v3214_v41  ;;  %3228 = vadd.xlane.f32.xlu1 %v3227_v43  ;;  %v3224_v46 = vsel %vm593_vm0, %v3220_v42, 0.0 }
0x1169   : > { %3225 = vadd.xlane.f32.xlu0 %v3224_v46 }
0x116a   : > { %v3223_v10 = vmul.f32 %v3219_v44, %v3219_v44  ;;  %v3222_v55 = vmul.f32 %v3218_v45, %v3218_v45 }
0x116c   : > { %v3233_v38 = vsel %vm593_vm0, %v3223_v10, 0.0  ;;  %v3230_v29 = vsel %vm593_vm0, %v3222_v55, 0.0 }
0x116d   : > { %3234 = vadd.xlane.f32.xlu1 %v3233_v38  ;;  %3231 = vadd.xlane.f32.xlu0 %v3230_v29 }
0x11f5   : > { %v3229_v19 = vpop.xlane.xlu1 %3228 }
0x11f6   : > { %v3237_v48 = vmul.f32 0.03125, %v3229_v19  ;;  %v3226_v2 = vpop.xlane.xlu0 %3225 }
0x11f7   : > { %v3236_v25 = vmul.f32 0.03125, %v3226_v2 }
0x11f8   : > { %v3241_v31 = vadd.f32 1e-05, %v3237_v48 }
0x11f9   : > { %v3240_v54 = vadd.f32 1e-05, %v3236_v25 }
0x11fa   : > { %4242 = vrsqrt.f32 %v3241_v31  ;;  %v3235_v17 = vpop.xlane.xlu1 %3234  ;;  %v3232_v50 = vpop.xlane.xlu0 %3231 }
0x11fb   : > { %4244 = vrsqrt.f32 %v3240_v54  ;;  %v3239_v18 = vmul.f32 0.03125, %v3235_v17  ;;  %v3238_v15 = vmul.f32 0.03125, %v3232_v50 }
0x11fd   : > { %v3243_v62 = vadd.f32 1e-05, %v3239_v18  ;;  %v3242_v56 = vadd.f32 1e-05, %v3238_v15 }
0x11ff   : > { %4246 = vrsqrt.f32 %v3243_v62 }
0x1200   : > { %4248 = vrsqrt.f32 %v3242_v56 }
0x1204   : > { %v4243_v47 = vpop.eup %4242 }
0x1205   : > { %v4245_v40 = vpop.eup %4244  ;;  %v3249_v35 = vmul.f32 %v4243_v47, %v3217_v6 }
0x1206   : > { %v3248_v51 = vmul.f32 %v4245_v40, %v3216_v39 }
0x1207   : > { %v3260_v24 = vmul.f32 %v3619_v57, %v3249_v35 }
0x1208   : > { %v3259_v36 = vmul.f32 %v3619_v57, %v3248_v51 }
0x1209   : > { %v4247_v59 = vpop.eup %4246  ;;  %v3271_v58 = vadd.f32 %v3620_v23, %v3260_v24 }
0x120a   : > { %v4249_v4 = vpop.eup %4248  ;;  %v3270_v21 = vadd.f32 %v3620_v23, %v3259_v36  ;;  %v3251_v28 = vmul.f32 %v4247_v59, %v3219_v44 }
0x120b   : > { %v3250_v14 = vmul.f32 %v4249_v4, %v3218_v45 }
0x120c   : > { %v4044_v61 = vpack.c.bf16 %v3271_v58, %v3270_v21  ;;  %v3262_v53 = vmul.f32 %v3619_v57, %v3251_v28 }
0x120d   : > { %v3261_v11 = vmul.f32 %v3619_v57, %v3250_v14 }
0x120e   : > { %4045 = vmatprep.subr.bf16.mxu0 %v4044_v61  ;;  %v3273_v13 = vadd.f32 %v3620_v23, %v3262_v53 }
0x120f   : > { %4047 = vmatpush3.bf16.msra.mxu0 %v4044_v61  ;;  %v3272_v27 = vadd.f32 %v3620_v23, %v3261_v11 }
0x1211   : > { %v4048_v60 = vpack.c.bf16 %v3273_v13, %v3272_v27 }
0x1213   : > { %4049 = vmatprep.subr.bf16.mxu0 %v4048_v60 }
0x1214   : > { %4051 = vmatpush3.bf16.msra.mxu0 %v4048_v60 }
0x1217   : > { %3939 = vmatmul.mubr.msk.f32.vlgmr.msra.gmra.mrb[28].mxu0 %vm593_vm0, %v576_v9 }
0x1218   : > { %3941 = vmatprep.mubr.msk.f32.mxu0 %vm593_vm0, %v577_v52 }
0x121b   : > { %3942 = vmatmul.mubr.msk.f32.gmra.mrb[30].mxu0 %vm593_vm0, %v578_v26 }
0x12ea   : > { %v3940_v30 = vpop.f32.mrb[28].mxu0 }
0x12eb   : > { %3372 = vst.msk [vmem:[%s565_s29 + $0x8] sm:$0xff] %vm593_vm0, %v3940_v30  ;;  %v3352_v22 = vpop.f32.mrb[29].mxu0 }
0x12ec   : > { %3371 = vst.msk [vmem:[%s565_s29] sm:$0xff] %vm593_vm0, %v3352_v22 }
0x12ee   : > { %v3943_v16 = vpop.f32.mrb[30].mxu0 }
0x12ef   : > { %3374 = vst.msk [vmem:[%s565_s29 + $0x18] sm:$0xff] %vm593_vm0, %v3943_v16  ;;  %v3362_v32 = vpop.f32.mrb[31].mxu0 }
0x12f0   : > { %3373 = vst.msk [vmem:[%s565_s29 + $0x10] sm:$0xff] %vm593_vm0, %v3362_v32 }
0x12f1 PF: > { %p26_p4 = scmp.ge.s32.totalorder %s4815_s18, 4   ;;  %s5622_s25 = smov %s4518_s26 }
0x12f2   : > { %s5623_s26 = smov %s4522_s27  ;;  %s5624_s27 = smov %s4827_s8 }
0x12f3   : > { %s5625_s28 = smov %s4815_s18  ;;  %28 = sbr.rel (!%p26_p4) target bundleno = 13 (0xd), region = 157 }
0x12fa   :  { %3396 = vsyncpa [#allocation4], 1 }
0x12fb   :  { %3398 = vsyncpa [#allocation4 + $0x1], 1 }
0x12fc   :  { %3399 = vsyncpa [#allocation6], 1 }
0x12fd   :  { %3400 = vsyncpa [#allocation9], 1 }
0x12fe   :  { %3401 = vsyncpa [#allocation12], 1 }

</bundles_post_ra>
